<compile_context>
chip_gen: v7x
topology: tpu7x:2x2x1
jax: 0.10.0
libtpu: 0.0.40
codegen_flags: <defaults>
</compile_context>

<pallas_src>
import functools

import jax
import jax.numpy as jnp
from jax.experimental import pallas as pl
from jax.experimental.pallas import tpu as pltpu


def _const_spec(shape, index_map):
    """BlockSpec for grid-constant inputs; single-buffered to halve their VMEM."""
    try:
        return pl.BlockSpec(shape, index_map, pipeline_mode=pl.Buffered(1))
    except TypeError:       # older BlockSpec signature without pipeline_mode
        return pl.BlockSpec(shape, index_map)


def basic_block_kernel(xp_ref, w1_ref, s1_ref, b1_ref,
                       w2_ref, s2_ref, b2_ref, out_ref, *, w_real):
    # xp_ref : (1, H+4, Wp, Cp)  input: 2 zero halo rows top/bottom, W->Wp, C->Cp pads
    # w1/w2  : (3, 3*Cp, Cp)     K-fused conv taps: rows [kx*Cp:(kx+1)*Cp] = tap (ky, kx)
    # s*/b*  : (1, Cp)           folded BN scale / bias (f32)
    # out_ref: (1, TH, Wp, Cp)   one lane-dense row tile of the output
    _, TH, Wp, Cp = out_ref.shape
    M1 = (TH + 2) * Wp           # conv1 rows incl. the 1-row halo above and below
    M2 = TH * Wp
    cdt = xp_ref.dtype           # compute dtype (f32 or bf16)

    r = pl.program_id(1)
    is_first = r == 0
    is_last = r == pl.num_programs(1) - 1
    row0 = pl.multiple_of(r * TH, TH)          # first output row of this tile

    # ---- hoisted border masks: built once per grid step, no per-(ky,kx) iota chains,
    # ---- no integer % / // over the big operand (3-D iotas + relayout-free reshape).
    shape3 = (TH + 2, Wp, Cp)
    xidx = jax.lax.broadcasted_iota(jnp.int32, shape3, 1)   # column index within a row
    eidx = jax.lax.broadcasted_iota(jnp.int32, shape3, 0)   # extended-row index
    keep_l1 = (xidx >= 1).reshape(M1, Cp)        # kx=0 shift: zero column x == 0
    keep_r1 = (xidx <= Wp - 2).reshape(M1, Cp)   # kx=2 shift: zero column x == Wp-1
    keep_l2 = keep_l1[:M2]                       # aligned static slices (Wp % 8 == 0)
    keep_r2 = keep_r1[:M2]
    # h1 rows outside the image (only possible on the first/last row tile) and the
    # W-pad columns must be zero before conv2 (this IS conv2's zero padding).
    bad = ((eidx == 0) & is_first) | ((eidx == TH + 1) & is_last)
    if Wp > w_real:
        bad = bad | (xidx >= w_real)
    h1_keep = jnp.logical_not(bad).reshape(M1, Cp)

    def conv3x3(flat_of_ky, w_ref, keep_l, keep_r, m):
        # One K-fused MXU matmul per ky: (m, 3*Cp) x (3*Cp, Cp), f32 accumulation.
        # Column (kx) shifts use pltpu.roll (XLU); wrapped rows always land on masked
        # columns, so the circular roll exactly reproduces the conv's zero W-padding.
        acc = None
        for ky in range(3):
            flat = flat_of_ky(ky)                               # (m, Cp)
            s0 = jnp.where(keep_l, pltpu.roll(flat, shift=1, axis=0), 0)      # x-1 tap
            s2 = jnp.where(keep_r, pltpu.roll(flat, shift=m - 1, axis=0), 0)  # x+1 tap
            patch = jnp.concatenate([s0, flat, s2], axis=-1)    # (m, 3*Cp)
            d = jnp.dot(patch, w_ref[ky], preferred_element_type=jnp.float32)
            acc = d if acc is None else acc + d                 # 3 RMW passes per conv
        return acc

    # ---- conv1 over TH+2 rows (1-row halo each side, recomputed per tile) ----
    def conv1_rows(ky):
        rows = xp_ref[0, pl.ds(row0 + ky, TH + 2), :, :]        # (TH+2, Wp, Cp)
        return rows.reshape(M1, Cp)                             # free (Wp % 8 == 0)

    acc1 = conv3x3(conv1_rows, w1_ref, keep_l1, keep_r1, M1)    # (M1, Cp) f32

    # ---- BN1 (folded) + ReLU; zero out-of-image halo rows and W-pad columns ----
    h1 = jnp.maximum(acc1 * s1_ref[...] + b1_ref[...], 0.0)
    h1 = jnp.where(h1_keep, h1, 0.0).astype(cdt)

    # ---- conv2 over the TH output rows (halo comes from h1's extra rows) ----
    def conv2_rows(ky):
        return h1[ky * Wp: ky * Wp + M2]                        # aligned static slice

    acc2 = conv3x3(conv2_rows, w2_ref, keep_l2, keep_r2, M2)    # (M2, Cp) f32

    # ---- BN2 (folded) + residual add + ReLU, lane-dense store ----
    residual = xp_ref[0, pl.ds(row0 + 2, TH), :, :].reshape(M2, Cp).astype(jnp.float32)
    out = jnp.maximum(acc2 * s2_ref[...] + b2_ref[...] + residual, 0.0)
    out_ref[0] = out.reshape(TH, Wp, Cp).astype(out_ref.dtype)


def _round_up(x, m):
    return -(-x // m) * m


def _pick_row_tile(H, Wp, row_tile=None):
    if row_tile is not None and 0 < row_tile <= H and H % row_tile == 0:
        return row_tile
    divs = [d for d in range(1, H + 1) if H % d == 0]
    # Prefer M2 = TH*Wp <= 1024 (bounded accumulators / spill) and >= 2 row tiles
    # (v7x megacore split on the r axis when N == 1).
    cands = [d for d in divs if d * Wp <= 1024 and H // d >= 2]
    if not cands:
        cands = [d for d in divs if d * Wp <= 1024] or [1]
    return max(cands)


def _default_compute_dtype():
    # bf16 compute (f32 MXU accumulation) on v6e / v7x; f32 on v5e and older chips
    # whose VPU is f32-only.
    try:
        kind = jax.devices()[0].device_kind.lower()
    except Exception:
        kind = ""
    if any(v in kind for v in ("v2", "v3", "v4", "v5")):
        return jnp.float32
    return jnp.bfloat16


def _vmem_limit_bytes(H, Wp, Cp, TH, cdt_size, out_size):
    xp_b = (H + 4) * Wp * Cp * cdt_size * 2          # double-buffered input image block
    w_b = 2 * 9 * Cp * Cp * cdt_size                 # single-buffered conv taps
    bn_b = 4 * Cp * 4                                 # single-buffered BN scale / bias
    out_b = TH * Wp * Cp * out_size * 2               # double-buffered output tile
    M1 = (TH + 2) * Wp
    inter = M1 * Cp * (4 + 4 + cdt_size + 3 * cdt_size + 4)  # acc1+acc2+h1+patch+resid
    total = xp_b + w_b + bn_b + out_b + inter
    limit = int(total * 1.5) + (8 << 20)
    try:
        cap = int(pltpu.get_tpu_info().vmem_capacity_bytes * 0.85)
    except Exception:
        cap = 56 << 20                                 # conservative (v7x: 64 MiB / TC)
    return min(max(limit, 32 << 20), cap)


@functools.partial(jax.jit, static_argnames=("compute_dtype", "row_tile"))
def basic_block_pallas(x_nchw, w1_oihw, g1, be1, m1, v1,
                       w2_oihw, g2, be2, m2, v2,
                       eps=1e-5, compute_dtype=None, row_tile=None):
    N, C, H, W = x_nchw.shape
    Cp = max(128, _round_up(C, 128))                  # lane-dense channel count
    Wp = max(8, _round_up(W, 8))                      # sublane-aligned width
    TH = _pick_row_tile(H, Wp, row_tile)
    cdt = (jnp.dtype(compute_dtype) if compute_dtype is not None
           else jnp.dtype(_default_compute_dtype()))

    # NCHW -> NHWC; fuse the H halo pad (+2 rows each side), the W pad and the channel
    # pad into a single jnp.pad.
    x_nhwc = jnp.transpose(x_nchw, (0, 2, 3, 1))
    xp = jnp.pad(x_nhwc, ((0, 0), (2, 2), (0, Wp - W), (0, Cp - C))).astype(cdt)
    # TODO(synk): in the bf16 path the residual is read from the bf16-cast xp, so the
    # skip connection adds a bf16-rounded x (f32 accumulation); pass x separately if
    # tighter parity with the f32 PyTorch reference is required.

    def prep_w(w):
        wt = jnp.transpose(w, (2, 3, 1, 0))                     # (3, 3, Cin, Cout)
        wt = jnp.pad(wt, ((0, 0), (0, 0), (0, Cp - C), (0, Cp - C)))
        return wt.reshape(3, 3 * Cp, Cp).astype(cdt)            # K-fused over (kx, cin)

    w1_taps, w2_taps = prep_w(w1_oihw), prep_w(w2_oihw)

    def fold_bn(g, b, m, v):
        inv = (g / jnp.sqrt(v + eps)).astype(jnp.float32)
        s = jnp.pad(inv, (0, Cp - C)).reshape(1, Cp)
        bb = jnp.pad((b - m * inv).astype(jnp.float32), (0, Cp - C)).reshape(1, Cp)
        return s, bb

    s1, b1 = fold_bn(g1, be1, m1, v1)
    s2, b2 = fold_bn(g2, be2, m2, v2)

    kernel = functools.partial(basic_block_kernel, w_real=W)
    out_nhwc = pl.pallas_call(
        kernel,
        out_shape=jax.ShapeDtypeStruct((N, H, Wp, Cp), x_nchw.dtype),
        grid_spec=pltpu.PrefetchScalarGridSpec(
            num_scalar_prefetch=0,
            grid=(N, H // TH),      # row-tile axis innermost -> xp block stays resident
            in_specs=[
                # TODO(synk): for very large images on v7x, replace this whole-image
                # block with a row-haloed manual DMA (memory_space=pl.ANY +
                # make_async_copy) so VMEM scales with TH instead of H.
                pl.BlockSpec((1, H + 4, Wp, Cp), lambda n, r: (n, 0, 0, 0)),
                _const_spec((3, 3 * Cp, Cp), lambda n, r: (0, 0, 0)),
                _const_spec((1, Cp), lambda n, r: (0, 0)),
                _const_spec((1, Cp), lambda n, r: (0, 0)),
                _const_spec((3, 3 * Cp, Cp), lambda n, r: (0, 0, 0)),
                _const_spec((1, Cp), lambda n, r: (0, 0)),
                _const_spec((1, Cp), lambda n, r: (0, 0)),
            ],
            out_specs=pl.BlockSpec((1, TH, Wp, Cp), lambda n, r: (n, r, 0, 0)),
        ),
        compiler_params=pltpu.CompilerParams(
            dimension_semantics=("parallel", "parallel"),
            vmem_limit_bytes=_vmem_limit_bytes(
                H, Wp, Cp, TH, jnp.dtype(cdt).itemsize,
                jnp.dtype(x_nchw.dtype).itemsize),
        ),
    )(xp, w1_taps, s1, b1, w2_taps, s2, b2)

    # Strip W / channel padding and return NCHW (a NHWC/Cp-native consumer could keep
    # the padded layout end-to-end and skip this slice + transpose).
    return jnp.transpose(out_nhwc[:, :, :W, :C], (0, 3, 1, 2))


def basic_block_reference(x, w1, g1, be1, m1, v1, w2, g2, be2, m2, v2, eps=1e-5):
    """Pure-JAX NCHW reference mirroring the PyTorch forward (eval-mode BN)."""
    conv = lambda a, w: jax.lax.conv_general_dilated(
        a, w, (1, 1), ((1, 1), (1, 1)),
        dimension_numbers=('NCHW', 'OIHW', 'NCHW'))
    bn = lambda y, g, b, m, v: ((y - m[None, :, None, None]) /
                                jnp.sqrt(v[None, :, None, None] + eps) *
                                g[None, :, None, None] + b[None, :, None, None])
    out = jnp.maximum(bn(conv(x, w1), g1, be1, m1, v1), 0.0)
    out = bn(conv(out, w2), g2, be2, m2, v2)
    return jnp.maximum(out + x, 0.0)


if __name__ == "__main__":
    key = jax.random.PRNGKey(0)

    def make_params(k, C):
        ks = jax.random.split(k, 10)
        w1 = jax.random.normal(ks[0], (C, C, 3, 3), jnp.float32) * 0.1
        w2 = jax.random.normal(ks[1], (C, C, 3, 3), jnp.float32) * 0.1
        g1 = 1.0 + 0.1 * jax.random.normal(ks[2], (C,), jnp.float32)
        be1 = 0.1 * jax.random.normal(ks[3], (C,), jnp.float32)
        m1 = 0.1 * jax.random.normal(ks[4], (C,), jnp.float32)
        v1 = 1.0 + 0.1 * jnp.abs(jax.random.normal(ks[5], (C,), jnp.float32))
        g2 = 1.0 + 0.1 * jax.random.normal(ks[6], (C,), jnp.float32)
        be2 = 0.1 * jax.random.normal(ks[7], (C,), jnp.float32)
        m2 = 0.1 * jax.random.normal(ks[8], (C,), jnp.float32)
        v2 = 1.0 + 0.1 * jnp.abs(jax.random.normal(ks[9], (C,), jnp.float32))
        return (w1, g1, be1, m1, v1, w2, g2, be2, m2, v2)

    # --- main shape: N=2, C=8, 16x16 (stride=1, inplanes==planes, no downsample) ---
    kx, kp = jax.random.split(key)
    x = jax.random.normal(kx, (2, 8, 16, 16), jnp.float32)
    params = make_params(kp, 8)
    ref = jax.block_until_ready(basic_block_reference(x, *params))

    # f32 compute path (tight correctness check)
    out = jax.block_until_ready(
        basic_block_pallas(x, *params, compute_dtype=jnp.float32))
    assert out.shape == x.shape
    err = float(jnp.max(jnp.abs(out - ref)))
    assert jnp.allclose(out, ref, atol=2e-4, rtol=2e-4), f"f32 max abs diff = {err}"

    # default compute path (bf16 on v6e/v7x, f32 on v5e and older): loose tolerance
    out_d = jax.block_until_ready(basic_block_pallas(x, *params))
    err_d = float(jnp.max(jnp.abs(out_d - ref)))
    assert jnp.allclose(out_d, ref, atol=2.5e-1, rtol=1e-1), (
        f"default-path max abs diff = {err_d}")

    # --- odd shape: exercises W pad (14 -> 16), channel pad (4 -> 128), TH picker ---
    kx2, kp2 = jax.random.split(kx)
    x2 = jax.random.normal(kx2, (1, 4, 12, 14), jnp.float32)
    params2 = make_params(kp2, 4)
    ref2 = jax.block_until_ready(basic_block_reference(x2, *params2))
    out2 = jax.block_until_ready(
        basic_block_pallas(x2, *params2, compute_dtype=jnp.float32))
    err2 = float(jnp.max(jnp.abs(out2 - ref2)))
    assert jnp.allclose(out2, ref2, atol=2e-4, rtol=2e-4), (
        f"odd-shape max abs diff = {err2}")

    print("KERNEL_OK")
</pallas_src>

<mosaic_0001>
module attributes {stable_mosaic.version = 11 : i64} {
  func.func @basic_block_kernel(%arg0: i32, %arg1: i32, %arg2: memref<1x20x16x128xf32, #tpu.memory_space<vmem>>, %arg3: memref<3x384x128xf32, #tpu.memory_space<vmem>>, %arg4: memref<1x128xf32, #tpu.memory_space<vmem>>, %arg5: memref<1x128xf32, #tpu.memory_space<vmem>>, %arg6: memref<3x384x128xf32, #tpu.memory_space<vmem>>, %arg7: memref<1x128xf32, #tpu.memory_space<vmem>>, %arg8: memref<1x128xf32, #tpu.memory_space<vmem>>, %arg9: memref<1x8x16x128xf32, #tpu.memory_space<vmem>>) attributes {dimension_semantics = [#tpu.dimension_semantics<parallel>, #tpu.dimension_semantics<parallel>], iteration_bounds = array<i64: 2, 2>, scalar_prefetch = 0 : i64, scratch_operands = 0 : i64, tpu.core_type = #tpu.core_type<tc>, window_params = [{transform_indices = @transform_0, window_bounds = array<i64: 1, 20, 16, 128>}, {pipeline_mode = #tpu.pipeline_mode<synchronous>, transform_indices = @transform_1, window_bounds = array<i64: 3, 384, 128>}, {pipeline_mode = #tpu.pipeline_mode<synchronous>, transform_indices = @transform_2, window_bounds = array<i64: 1, 128>}, {pipeline_mode = #tpu.pipeline_mode<synchronous>, transform_indices = @transform_3, window_bounds = array<i64: 1, 128>}, {pipeline_mode = #tpu.pipeline_mode<synchronous>, transform_indices = @transform_4, window_bounds = array<i64: 3, 384, 128>}, {pipeline_mode = #tpu.pipeline_mode<synchronous>, transform_indices = @transform_5, window_bounds = array<i64: 1, 128>}, {pipeline_mode = #tpu.pipeline_mode<synchronous>, transform_indices = @transform_6, window_bounds = array<i64: 1, 128>}, {transform_indices = @transform_7, window_bounds = array<i64: 1, 8, 16, 128>}]} {
    %c0_i32 = arith.constant 0 : i32
    %0 = arith.cmpi eq, %arg1, %c0_i32 : i32
    %c1_i32 = arith.constant 1 : i32
    %1 = arith.cmpi eq, %arg1, %c1_i32 : i32
    %c8_i32 = arith.constant 8 : i32
    %2 = arith.muli %arg1, %c8_i32 : i32
    %3 = tpu.assume_multiple %2, 8 : i32
    %4 = tpu.iota {dimensions = array<i32: 1>} : vector<10x16x128xi32>
    %5 = tpu.iota {dimensions = array<i32: 0>} : vector<10x16x128xi32>
    %c1_i32_0 = arith.constant 1 : i32
    %6 = vector.broadcast %c1_i32_0 : i32 to vector<10x16x128xi32>
    %7 = arith.cmpi sge, %4, %6 : vector<10x16x128xi32>
    %8 = vector.shape_cast %7 : vector<10x16x128xi1> to vector<160x128xi1>
    %c14_i32 = arith.constant 14 : i32
    %9 = vector.broadcast %c14_i32 : i32 to vector<10x16x128xi32>
    %10 = arith.cmpi sle, %4, %9 : vector<10x16x128xi32>
    %11 = vector.shape_cast %10 : vector<10x16x128xi1> to vector<160x128xi1>
    %12 = vector.extract_strided_slice %8 {offsets = [0, 0], sizes = [128, 128], strides = [1, 1]} : vector<160x128xi1> to vector<128x128xi1>
    %13 = vector.extract_strided_slice %11 {offsets = [0, 0], sizes = [128, 128], strides = [1, 1]} : vector<160x128xi1> to vector<128x128xi1>
    %c0_i32_1 = arith.constant 0 : i32
    %14 = vector.broadcast %c0_i32_1 : i32 to vector<10x16x128xi32>
    %15 = arith.cmpi eq, %5, %14 : vector<10x16x128xi32>
    %16 = vector.broadcast %0 : i1 to vector<10x16x128xi1>
    %17 = arith.andi %15, %16 : vector<10x16x128xi1>
    %c9_i32 = arith.constant 9 : i32
    %18 = vector.broadcast %c9_i32 : i32 to vector<10x16x128xi32>
    %19 = arith.cmpi eq, %5, %18 : vector<10x16x128xi32>
    %20 = vector.broadcast %1 : i1 to vector<10x16x128xi1>
    %21 = arith.andi %19, %20 : vector<10x16x128xi1>
    %22 = arith.ori %17, %21 : vector<10x16x128xi1>
    %cst = arith.constant dense<true> : vector<10x16x128xi1>
    %23 = arith.xori %22, %cst : vector<10x16x128xi1>
    %24 = vector.shape_cast %23 : vector<10x16x128xi1> to vector<160x128xi1>
    %c0_i32_2 = arith.constant 0 : i32
    %25 = arith.addi %3, %c0_i32_2 : i32
    %c0 = arith.constant 0 : index
    %26 = arith.index_cast %25 : i32 to index
    %c0_3 = arith.constant 0 : index
    %c0_4 = arith.constant 0 : index
    %27 = vector.load %arg2[%c0, %26, %c0_3, %c0_4] : memref<1x20x16x128xf32, #tpu.memory_space<vmem>>, vector<1x10x16x128xf32>
    %28 = vector.shape_cast %27 : vector<1x10x16x128xf32> to vector<10x16x128xf32>
    %29 = vector.shape_cast %28 : vector<10x16x128xf32> to vector<160x128xf32>
    %c1_i32_5 = arith.constant 1 : i32
    %30 = tpu.dynamic_rotate %29 by %c1_i32_5 dim 0 : vector<160x128xf32>, i32 -> vector<160x128xf32>
    %c0_i32_6 = arith.constant 0 : i32
    %31 = arith.sitofp %c0_i32_6 : i32 to f32
    %32 = vector.broadcast %31 : f32 to vector<160x128xf32>
    %33 = arith.select %8, %30, %32 : vector<160x128xi1>, vector<160x128xf32>
    %c159_i32 = arith.constant 159 : i32
    %34 = tpu.dynamic_rotate %29 by %c159_i32 dim 0 : vector<160x128xf32>, i32 -> vector<160x128xf32>
    %c0_i32_7 = arith.constant 0 : i32
    %35 = arith.sitofp %c0_i32_7 : i32 to f32
    %36 = vector.broadcast %35 : f32 to vector<160x128xf32>
    %37 = arith.select %11, %34, %36 : vector<160x128xi1>, vector<160x128xf32>
    %38 = tpu.concatenate %33, %29, %37 in 1 : vector<160x128xf32>, vector<160x128xf32>, vector<160x128xf32> -> vector<160x384xf32>
    %c0_8 = arith.constant 0 : index
    %c0_9 = arith.constant 0 : index
    %c0_10 = arith.constant 0 : index
    %39 = vector.load %arg3[%c0_8, %c0_9, %c0_10] : memref<3x384x128xf32, #tpu.memory_space<vmem>>, vector<1x384x128xf32>
    %40 = vector.shape_cast %39 : vector<1x384x128xf32> to vector<384x128xf32>
    %cst_11 = arith.constant dense<0.000000e+00> : vector<160x128xf32>
    %41 = tpu.matmul %38, %40, %cst_11 {dimension_numbers = #tpu.dot_dimension_numbers<[1], [0], [0], [1], [0, 0, 1, 1], [], []>} : vector<160x384xf32>, vector<384x128xf32>, vector<160x128xf32> -> vector<160x128xf32>
    %c1_i32_12 = arith.constant 1 : i32
    %42 = arith.addi %3, %c1_i32_12 : i32
    %c0_13 = arith.constant 0 : index
    %43 = arith.index_cast %42 : i32 to index
    %c0_14 = arith.constant 0 : index
    %c0_15 = arith.constant 0 : index
    %44 = vector.load %arg2[%c0_13, %43, %c0_14, %c0_15] : memref<1x20x16x128xf32, #tpu.memory_space<vmem>>, vector<1x10x16x128xf32>
    %45 = vector.shape_cast %44 : vector<1x10x16x128xf32> to vector<10x16x128xf32>
    %46 = vector.shape_cast %45 : vector<10x16x128xf32> to vector<160x128xf32>
    %c1_i32_16 = arith.constant 1 : i32
    %47 = tpu.dynamic_rotate %46 by %c1_i32_16 dim 0 : vector<160x128xf32>, i32 -> vector<160x128xf32>
    %c0_i32_17 = arith.constant 0 : i32
    %48 = arith.sitofp %c0_i32_17 : i32 to f32
    %49 = vector.broadcast %48 : f32 to vector<160x128xf32>
    %50 = arith.select %8, %47, %49 : vector<160x128xi1>, vector<160x128xf32>
    %c159_i32_18 = arith.constant 159 : i32
    %51 = tpu.dynamic_rotate %46 by %c159_i32_18 dim 0 : vector<160x128xf32>, i32 -> vector<160x128xf32>
    %c0_i32_19 = arith.constant 0 : i32
    %52 = arith.sitofp %c0_i32_19 : i32 to f32
    %53 = vector.broadcast %52 : f32 to vector<160x128xf32>
    %54 = arith.select %11, %51, %53 : vector<160x128xi1>, vector<160x128xf32>
    %55 = tpu.concatenate %50, %46, %54 in 1 : vector<160x128xf32>, vector<160x128xf32>, vector<160x128xf32> -> vector<160x384xf32>
    %c1 = arith.constant 1 : index
    %c0_20 = arith.constant 0 : index
    %c0_21 = arith.constant 0 : index
    %56 = vector.load %arg3[%c1, %c0_20, %c0_21] : memref<3x384x128xf32, #tpu.memory_space<vmem>>, vector<1x384x128xf32>
    %57 = vector.shape_cast %56 : vector<1x384x128xf32> to vector<384x128xf32>
    %cst_22 = arith.constant dense<0.000000e+00> : vector<160x128xf32>
    %58 = tpu.matmul %55, %57, %cst_22 {dimension_numbers = #tpu.dot_dimension_numbers<[1], [0], [0], [1], [0, 0, 1, 1], [], []>} : vector<160x384xf32>, vector<384x128xf32>, vector<160x128xf32> -> vector<160x128xf32>
    %59 = arith.addf %41, %58 : vector<160x128xf32>
    %c2_i32 = arith.constant 2 : i32
    %60 = arith.addi %3, %c2_i32 : i32
    %c0_23 = arith.constant 0 : index
    %61 = arith.index_cast %60 : i32 to index
    %c0_24 = arith.constant 0 : index
    %c0_25 = arith.constant 0 : index
    %62 = vector.load %arg2[%c0_23, %61, %c0_24, %c0_25] : memref<1x20x16x128xf32, #tpu.memory_space<vmem>>, vector<1x10x16x128xf32>
    %63 = vector.shape_cast %62 : vector<1x10x16x128xf32> to vector<10x16x128xf32>
    %64 = vector.shape_cast %63 : vector<10x16x128xf32> to vector<160x128xf32>
    %c1_i32_26 = arith.constant 1 : i32
    %65 = tpu.dynamic_rotate %64 by %c1_i32_26 dim 0 : vector<160x128xf32>, i32 -> vector<160x128xf32>
    %c0_i32_27 = arith.constant 0 : i32
    %66 = arith.sitofp %c0_i32_27 : i32 to f32
    %67 = vector.broadcast %66 : f32 to vector<160x128xf32>
    %68 = arith.select %8, %65, %67 : vector<160x128xi1>, vector<160x128xf32>
    %c159_i32_28 = arith.constant 159 : i32
    %69 = tpu.dynamic_rotate %64 by %c159_i32_28 dim 0 : vector<160x128xf32>, i32 -> vector<160x128xf32>
    %c0_i32_29 = arith.constant 0 : i32
    %70 = arith.sitofp %c0_i32_29 : i32 to f32
    %71 = vector.broadcast %70 : f32 to vector<160x128xf32>
    %72 = arith.select %11, %69, %71 : vector<160x128xi1>, vector<160x128xf32>
    %73 = tpu.concatenate %68, %64, %72 in 1 : vector<160x128xf32>, vector<160x128xf32>, vector<160x128xf32> -> vector<160x384xf32>
    %c2 = arith.constant 2 : index
    %c0_30 = arith.constant 0 : index
    %c0_31 = arith.constant 0 : index
    %74 = vector.load %arg3[%c2, %c0_30, %c0_31] : memref<3x384x128xf32, #tpu.memory_space<vmem>>, vector<1x384x128xf32>
    %75 = vector.shape_cast %74 : vector<1x384x128xf32> to vector<384x128xf32>
    %cst_32 = arith.constant dense<0.000000e+00> : vector<160x128xf32>
    %76 = tpu.matmul %73, %75, %cst_32 {dimension_numbers = #tpu.dot_dimension_numbers<[1], [0], [0], [1], [0, 0, 1, 1], [], []>} : vector<160x384xf32>, vector<384x128xf32>, vector<160x128xf32> -> vector<160x128xf32>
    %77 = arith.addf %59, %76 : vector<160x128xf32>
    %c0_33 = arith.constant 0 : index
    %c0_34 = arith.constant 0 : index
    %78 = vector.load %arg4[%c0_33, %c0_34] : memref<1x128xf32, #tpu.memory_space<vmem>>, vector<1x128xf32>
    %79 = vector.broadcast %78 : vector<1x128xf32> to vector<160x128xf32>
    %80 = arith.mulf %77, %79 : vector<160x128xf32>
    %c0_35 = arith.constant 0 : index
    %c0_36 = arith.constant 0 : index
    %81 = vector.load %arg5[%c0_35, %c0_36] : memref<1x128xf32, #tpu.memory_space<vmem>>, vector<1x128xf32>
    %82 = vector.broadcast %81 : vector<1x128xf32> to vector<160x128xf32>
    %83 = arith.addf %80, %82 : vector<160x128xf32>
    %cst_37 = arith.constant 0.000000e+00 : f32
    %84 = vector.broadcast %cst_37 : f32 to vector<160x128xf32>
    %85 = arith.maximumf %83, %84 : vector<160x128xf32>
    %cst_38 = arith.constant 0.000000e+00 : f32
    %86 = vector.broadcast %cst_38 : f32 to vector<160x128xf32>
    %87 = arith.select %24, %85, %86 : vector<160x128xi1>, vector<160x128xf32>
    %88 = vector.extract_strided_slice %87 {offsets = [0, 0], sizes = [128, 128], strides = [1, 1]} : vector<160x128xf32> to vector<128x128xf32>
    %c1_i32_39 = arith.constant 1 : i32
    %89 = tpu.dynamic_rotate %88 by %c1_i32_39 dim 0 : vector<128x128xf32>, i32 -> vector<128x128xf32>
    %c0_i32_40 = arith.constant 0 : i32
    %90 = arith.sitofp %c0_i32_40 : i32 to f32
    %91 = vector.broadcast %90 : f32 to vector<128x128xf32>
    %92 = arith.select %12, %89, %91 : vector<128x128xi1>, vector<128x128xf32>
    %c127_i32 = arith.constant 127 : i32
    %93 = tpu.dynamic_rotate %88 by %c127_i32 dim 0 : vector<128x128xf32>, i32 -> vector<128x128xf32>
    %c0_i32_41 = arith.constant 0 : i32
    %94 = arith.sitofp %c0_i32_41 : i32 to f32
    %95 = vector.broadcast %94 : f32 to vector<128x128xf32>
    %96 = arith.select %13, %93, %95 : vector<128x128xi1>, vector<128x128xf32>
    %97 = tpu.concatenate %92, %88, %96 in 1 : vector<128x128xf32>, vector<128x128xf32>, vector<128x128xf32> -> vector<128x384xf32>
    %c0_42 = arith.constant 0 : index
    %c0_43 = arith.constant 0 : index
    %c0_44 = arith.constant 0 : index
    %98 = vector.load %arg6[%c0_42, %c0_43, %c0_44] : memref<3x384x128xf32, #tpu.memory_space<vmem>>, vector<1x384x128xf32>
    %99 = vector.shape_cast %98 : vector<1x384x128xf32> to vector<384x128xf32>
    %cst_45 = arith.constant dense<0.000000e+00> : vector<128x128xf32>
    %100 = tpu.matmul %97, %99, %cst_45 {dimension_numbers = #tpu.dot_dimension_numbers<[1], [0], [0], [1], [0, 0, 1, 1], [], []>} : vector<128x384xf32>, vector<384x128xf32>, vector<128x128xf32> -> vector<128x128xf32>
    %101 = vector.extract_strided_slice %87 {offsets = [16, 0], sizes = [128, 128], strides = [1, 1]} : vector<160x128xf32> to vector<128x128xf32>
    %c1_i32_46 = arith.constant 1 : i32
    %102 = tpu.dynamic_rotate %101 by %c1_i32_46 dim 0 : vector<128x128xf32>, i32 -> vector<128x128xf32>
    %c0_i32_47 = arith.constant 0 : i32
    %103 = arith.sitofp %c0_i32_47 : i32 to f32
    %104 = vector.broadcast %103 : f32 to vector<128x128xf32>
    %105 = arith.select %12, %102, %104 : vector<128x128xi1>, vector<128x128xf32>
    %c127_i32_48 = arith.constant 127 : i32
    %106 = tpu.dynamic_rotate %101 by %c127_i32_48 dim 0 : vector<128x128xf32>, i32 -> vector<128x128xf32>
    %c0_i32_49 = arith.constant 0 : i32
    %107 = arith.sitofp %c0_i32_49 : i32 to f32
    %108 = vector.broadcast %107 : f32 to vector<128x128xf32>
    %109 = arith.select %13, %106, %108 : vector<128x128xi1>, vector<128x128xf32>
    %110 = tpu.concatenate %105, %101, %109 in 1 : vector<128x128xf32>, vector<128x128xf32>, vector<128x128xf32> -> vector<128x384xf32>
    %c1_50 = arith.constant 1 : index
    %c0_51 = arith.constant 0 : index
    %c0_52 = arith.constant 0 : index
    %111 = vector.load %arg6[%c1_50, %c0_51, %c0_52] : memref<3x384x128xf32, #tpu.memory_space<vmem>>, vector<1x384x128xf32>
    %112 = vector.shape_cast %111 : vector<1x384x128xf32> to vector<384x128xf32>
    %cst_53 = arith.constant dense<0.000000e+00> : vector<128x128xf32>
    %113 = tpu.matmul %110, %112, %cst_53 {dimension_numbers = #tpu.dot_dimension_numbers<[1], [0], [0], [1], [0, 0, 1, 1], [], []>} : vector<128x384xf32>, vector<384x128xf32>, vector<128x128xf32> -> vector<128x128xf32>
    %114 = arith.addf %100, %113 : vector<128x128xf32>
    %115 = vector.extract_strided_slice %87 {offsets = [32, 0], sizes = [128, 128], strides = [1, 1]} : vector<160x128xf32> to vector<128x128xf32>
    %c1_i32_54 = arith.constant 1 : i32
    %116 = tpu.dynamic_rotate %115 by %c1_i32_54 dim 0 : vector<128x128xf32>, i32 -> vector<128x128xf32>
    %c0_i32_55 = arith.constant 0 : i32
    %117 = arith.sitofp %c0_i32_55 : i32 to f32
    %118 = vector.broadcast %117 : f32 to vector<128x128xf32>
    %119 = arith.select %12, %116, %118 : vector<128x128xi1>, vector<128x128xf32>
    %c127_i32_56 = arith.constant 127 : i32
    %120 = tpu.dynamic_rotate %115 by %c127_i32_56 dim 0 : vector<128x128xf32>, i32 -> vector<128x128xf32>
    %c0_i32_57 = arith.constant 0 : i32
    %121 = arith.sitofp %c0_i32_57 : i32 to f32
    %122 = vector.broadcast %121 : f32 to vector<128x128xf32>
    %123 = arith.select %13, %120, %122 : vector<128x128xi1>, vector<128x128xf32>
    %124 = tpu.concatenate %119, %115, %123 in 1 : vector<128x128xf32>, vector<128x128xf32>, vector<128x128xf32> -> vector<128x384xf32>
    %c2_58 = arith.constant 2 : index
    %c0_59 = arith.constant 0 : index
    %c0_60 = arith.constant 0 : index
    %125 = vector.load %arg6[%c2_58, %c0_59, %c0_60] : memref<3x384x128xf32, #tpu.memory_space<vmem>>, vector<1x384x128xf32>
    %126 = vector.shape_cast %125 : vector<1x384x128xf32> to vector<384x128xf32>
    %cst_61 = arith.constant dense<0.000000e+00> : vector<128x128xf32>
    %127 = tpu.matmul %124, %126, %cst_61 {dimension_numbers = #tpu.dot_dimension_numbers<[1], [0], [0], [1], [0, 0, 1, 1], [], []>} : vector<128x384xf32>, vector<384x128xf32>, vector<128x128xf32> -> vector<128x128xf32>
    %128 = arith.addf %114, %127 : vector<128x128xf32>
    %c2_i32_62 = arith.constant 2 : i32
    %129 = arith.addi %3, %c2_i32_62 : i32
    %c0_63 = arith.constant 0 : index
    %130 = arith.index_cast %129 : i32 to index
    %c0_64 = arith.constant 0 : index
    %c0_65 = arith.constant 0 : index
    %131 = vector.load %arg2[%c0_63, %130, %c0_64, %c0_65] : memref<1x20x16x128xf32, #tpu.memory_space<vmem>>, vector<1x8x16x128xf32>
    %132 = vector.shape_cast %131 : vector<1x8x16x128xf32> to vector<8x16x128xf32>
    %133 = vector.shape_cast %132 : vector<8x16x128xf32> to vector<128x128xf32>
    %c0_66 = arith.constant 0 : index
    %c0_67 = arith.constant 0 : index
    %134 = vector.load %arg7[%c0_66, %c0_67] : memref<1x128xf32, #tpu.memory_space<vmem>>, vector<1x128xf32>
    %135 = vector.broadcast %134 : vector<1x128xf32> to vector<128x128xf32>
    %136 = arith.mulf %128, %135 : vector<128x128xf32>
    %c0_68 = arith.constant 0 : index
    %c0_69 = arith.constant 0 : index
    %137 = vector.load %arg8[%c0_68, %c0_69] : memref<1x128xf32, #tpu.memory_space<vmem>>, vector<1x128xf32>
    %138 = vector.broadcast %137 : vector<1x128xf32> to vector<128x128xf32>
    %139 = arith.addf %136, %138 : vector<128x128xf32>
    %140 = arith.addf %139, %133 : vector<128x128xf32>
    %cst_70 = arith.constant 0.000000e+00 : f32
    %141 = vector.broadcast %cst_70 : f32 to vector<128x128xf32>
    %142 = arith.maximumf %140, %141 : vector<128x128xf32>
    %143 = vector.shape_cast %142 : vector<128x128xf32> to vector<8x16x128xf32>
    %c0_71 = arith.constant 0 : index
    %c0_72 = arith.constant 0 : index
    %c0_73 = arith.constant 0 : index
    %c0_74 = arith.constant 0 : index
    %144 = vector.load %arg9[%c0_71, %c0_72, %c0_73, %c0_74] : memref<1x8x16x128xf32, #tpu.memory_space<vmem>>, vector<1x8x16x128xf32>
    %145 = vector.shape_cast %144 : vector<1x8x16x128xf32> to vector<8x16x128xf32>
    %146 = vector.shape_cast %143 : vector<8x16x128xf32> to vector<1x8x16x128xf32>
    tpu.vector_store %arg9[%c0_71, %c0_72, %c0_73, %c0_74], %146 {strides = array<i32>} : memref<1x8x16x128xf32, #tpu.memory_space<vmem>>, vector<1x8x16x128xf32>,
    return
  }
  func.func @transform_0(%arg0: i32, %arg1: i32) -> (i32, i32, i32, i32) {
    %c0_i32 = arith.constant 0 : i32
    %c0_i32_0 = arith.constant 0 : i32
    %c0_i32_1 = arith.constant 0 : i32
    %c0_i32_2 = arith.constant 0 : i32
    return %arg0, %c0_i32, %c0_i32_0, %c0_i32_1 : i32, i32, i32, i32
  }
  func.func @transform_1(%arg0: i32, %arg1: i32) -> (i32, i32, i32) {
    %c0_i32 = arith.constant 0 : i32
    %c0_i32_0 = arith.constant 0 : i32
    %c0_i32_1 = arith.constant 0 : i32
    %c0_i32_2 = arith.constant 0 : i32
    return %c0_i32, %c0_i32_0, %c0_i32_1 : i32, i32, i32
  }
  func.func @transform_2(%arg0: i32, %arg1: i32) -> (i32, i32) {
    %c0_i32 = arith.constant 0 : i32
    %c0_i32_0 = arith.constant 0 : i32
    %c0_i32_1 = arith.constant 0 : i32
    return %c0_i32, %c0_i32_0 : i32, i32
  }
  func.func @transform_3(%arg0: i32, %arg1: i32) -> (i32, i32) {
    %c0_i32 = arith.constant 0 : i32
    %c0_i32_0 = arith.constant 0 : i32
    %c0_i32_1 = arith.constant 0 : i32
    return %c0_i32, %c0_i32_0 : i32, i32
  }
  func.func @transform_4(%arg0: i32, %arg1: i32) -> (i32, i32, i32) {
    %c0_i32 = arith.constant 0 : i32
    %c0_i32_0 = arith.constant 0 : i32
    %c0_i32_1 = arith.constant 0 : i32
    %c0_i32_2 = arith.constant 0 : i32
    return %c0_i32, %c0_i32_0, %c0_i32_1 : i32, i32, i32
  }
  func.func @transform_5(%arg0: i32, %arg1: i32) -> (i32, i32) {
    %c0_i32 = arith.constant 0 : i32
    %c0_i32_0 = arith.constant 0 : i32
    %c0_i32_1 = arith.constant 0 : i32
    return %c0_i32, %c0_i32_0 : i32, i32
  }
  func.func @transform_6(%arg0: i32, %arg1: i32) -> (i32, i32) {
    %c0_i32 = arith.constant 0 : i32
    %c0_i32_0 = arith.constant 0 : i32
    %c0_i32_1 = arith.constant 0 : i32
    return %c0_i32, %c0_i32_0 : i32, i32
  }
  func.func @transform_7(%arg0: i32, %arg1: i32) -> (i32, i32, i32, i32) {
    %c0_i32 = arith.constant 0 : i32
    %c0_i32_0 = arith.constant 0 : i32
    %c0_i32_1 = arith.constant 0 : i32
    return %arg0, %arg1, %c0_i32, %c0_i32_0 : i32, i32, i32, i32
  }
}

</mosaic_0001>

<bundles_post_ra>
// kernel: basic_block_pallas.1
= control target key start
LH: loop header
LB: loop body
LE: loop exit
PB: predicated region body
PF: predicated region fallthrough
CT: control target
= control target key end

     0   :  { %s5196_s24 = smov 0   ;;  %s5198_s25 = smov 0   ;;  %s7934_s0 = inlined_call_operand.vmem [shape: f32[2,20,16,128], index: 0, kind: input, shape index: {}]   ;;  %s7935_s1 = inlined_call_operand.vmem [shape: f32[3,384,128], index: 1, kind: input, shape index: {}]   ;;  %s7936_s2 = inlined_call_operand.vmem [shape: f32[1,128], index: 2, kind: input, shape index: {}]   ;;  %s7937_s3 = inlined_call_operand.vmem [shape: f32[1,128], index: 3, kind: input, shape index: {}]   ;;  %s7938_s4 = inlined_call_operand.vmem [shape: f32[3,384,128], index: 4, kind: input, shape index: {}]   ;;  %s7939_s5 = inlined_call_operand.vmem [shape: f32[1,128], index: 5, kind: input, shape index: {}]   ;;  %s7940_s6 = inlined_call_operand.vmem [shape: f32[1,128], index: 6, kind: input, shape index: {}]   ;;  %s7941_s7 = inlined_call_operand.vmem [shape: f32[2,16,16,128], index: 7, kind: output, shape index: {}]  }
   0x1   :  { %s5200_s26 = smov 0   ;;  %s5202_s27 = smov 0  }
   0x2   :  { %s5204_s28 = smov 0  }
   0x3 LB: > { %s26_s29 = sadd.s32 1, %s5144_s26  ;;  %s29_s30 = sadd.s32 1, %s5148_s27  ;;  %s5152_s28 = sphi %s5204_s28, %s17_s28   ;;  %s5148_s27 = sphi %s5202_s27, %s8013_s27   ;;  %s5144_s26 = sphi %s5200_s26, %s8012_s26   ;;  %s5140_s25 = sphi %s5198_s25, %s8011_s25   ;;  %s5136_s24 = sphi %s5196_s24, %s8010_s24  }
   0x4   : > { %p27_p0 = scmp.ge.s32.totalorder %s26_s29, 2  ;;  %p3376_p1 = scmp.ge.s32.totalorder %s5152_s28, 1 }
   0x5   : > { %p251_p2 = scmp.lt.s32.totalorder %s5152_s28, 5 }
   0x6   : > { %s8015_s29 = smov (%p27_p0, %s26_s29), 0  ;;  %s8017_s30 = smov (!%p27_p0, %s29_s30), %s5148_s27 }
   0x7   : > { %p252_p3 = pnand %p3376_p1, %p251_p2  ;;  %p31_p4 = scmp.ge.s32.totalorder %s8017_s30, 2 }
   0x9   : > { %s8019_s30 = smov (%p31_p4, %s8017_s30), 0  ;;  %255 = sbr.rel (%p252_p3) target bundleno = 875 (0x36b), region = 48 }
  0x10   : > { %v3406_v0 = vld [vmem:[%s7935_s1 + $0x180] sm:$0xff]  ;;  %v3407_v1 = vld [vmem:[%s7935_s1 + $0x188] sm:$0xff]  ;;  %p288_p5 = scmp.lt.s32.totalorder %s5140_s25, 1  ;;  %v7944_v3 = vmov 0.0|0.0   ;;  %v3408_v6 = vld [vmem:[%s7935_s1 + $0x190] sm:$0xff]  ;;  %v307_v15 = vlaneseq  ;;  %s3754_s17 = sshll.u32 %s5136_s24, 7 }
  0x11   : > { %v3438_v2 = vld [vmem:[%s7935_s1 + $0x280] sm:$0xff]  ;;  %4555 = vmatprep.subr.bf16.mxu0 %v7944_v3  ;;  %v4556_v4 = vpack.c.bf16 %v3407_v1, %v3406_v0  ;;  %v3439_v5 = vld [vmem:[%s7935_s1 + $0x288] sm:$0xff]  ;;  %v3409_v7 = vld [vmem:[%s7935_s1 + $0x198] sm:$0xff]  ;;  %p304_p6 = scmp.eq.s32.totalorder %s5136_s24, 0  ;;  %vm5155_vm5 = vmmov 1   ;;  %p305_p7 = scmp.eq.s32.totalorder %s5136_s24, 1 }
  0x12   : > { %v4603_v8 = vpack.c.bf16 %v3439_v5, %v3438_v2  ;;  %v3440_v9 = vld [vmem:[%s7935_s1 + $0x290] sm:$0xff]  ;;  %v3441_v10 = vld [vmem:[%s7935_s1 + $0x298] sm:$0xff]  ;;  %s8021_s25 = smov (!%p288_p5, %s5140_s25), 1  ;;  %v4559_v11 = vpack.c.bf16 %v3409_v7, %v3408_v6  ;;  %v3442_v13 = vld [vmem:[%s7935_s1 + $0x2a0] sm:$0xff]  ;;  %v5279_v22 = vshrl.u32 %v307_v15, 7  ;;  %s3378_s8 = sshll.u32 %s5136_s24, 3 }
  0x13   : > { %4557 = vmatpush1.bf16.msra.mxu0 %v4556_v4  ;;  %v4607_v12 = vpack.c.bf16 %v3441_v10, %v3440_v9  ;;  %v3443_v14 = vld [vmem:[%s7935_s1 + $0x2a8] sm:$0xff]  ;;  %v3410_v16 = vld [vmem:[%s7935_s1 + $0x1a0] sm:$0xff]  ;;  %s5067_s16 = smul.u32 320, %s8021_s25  ;;  %v3444_v20 = vld [vmem:[%s7935_s1 + $0x2b0] sm:$0xff]  ;;  %p296_p8 = scmp.lt.s32.totalorder %s3378_s8, 15 }
  0x14   : > { %4604 = vmatprep.subr.bf16.mxu1 %v4603_v8  ;;  %4558 = vmatprep.subr.bf16.mxu0 %v7944_v3  ;;  %v3411_v17 = vld [vmem:[%s7935_s1 + $0x1a8] sm:$0xff]  ;;  %v4611_v18 = vpack.c.bf16 %v3443_v14, %v3442_v13  ;;  %v3445_v21 = vld [vmem:[%s7935_s1 + $0x2b8] sm:$0xff]  ;;  %v3412_v23 = vld [vmem:[%s7935_s1 + $0x1b0] sm:$0xff]  ;;  %vm425_vm0 = vcmp.lt.s32.totalorder %v5279_v22, 7  ;;  %v5374_v60 = vadd.s32 8, %v5279_v22  ;;  %vm364_vm2 = vcmp.lt.s32.totalorder %v5279_v22, 1 }
  0x15   : > { %4606 = vmatpush3.bf16.msra.mxu1 %v4603_v8  ;;  %s292_s20 = scalar_lea.vmem %s7934_s0, %s5067_s16  ;;  %v4562_v19 = vpack.c.bf16 %v3411_v17, %v3410_v16  ;;  %v3413_v24 = vld [vmem:[%s7935_s1 + $0x1b8] sm:$0xff]  ;;  %v4615_v25 = vpack.c.bf16 %v3445_v21, %v3444_v20  ;;  %v3446_v28 = vld [vmem:[%s7935_s1 + $0x2c0] sm:$0xff]  ;;  %v3447_v29 = vld [vmem:[%s7935_s1 + $0x2c8] sm:$0xff]  ;;  %vm310_vm3 = vcmp.ge.s32.totalorder %v5279_v22, 1  ;;  %s8023_s8 = smov (!%p296_p8, %s3378_s8), 15 }
  0x16   : > { %4608 = vmatprep.subr.bf16.mxu1 %v4607_v12  ;;  %s5281_s9 = scalar_lea.vmem %s292_s20, %s3754_s17  ;;  %v4565_v27 = vpack.c.bf16 %v3413_v24, %v3412_v23  ;;  %v3414_v32 = vld [vmem:[%s7935_s1 + $0x1c0] sm:$0xff]  ;;  %v3415_v33 = vld [vmem:[%s7935_s1 + $0x1c8] sm:$0xff]  ;;  %v4619_v35 = vpack.c.bf16 %v3447_v29, %v3446_v28  ;;  %v3448_v38 = vld [vmem:[%s7935_s1 + $0x2d0] sm:$0xff]  ;;  %vm313_vm1 = vcmp.le.s32.totalorder %v5374_v60, 14  ;;  %s3379_s24 = sshll.u32 %s8023_s8, 1 }
  0x17   : > { %4560 = vmatpush1.bf16.msra.mxu0 %v4559_v11  ;;  %v5291_v26 = vld [vmem:[%s5281_s9 + $0x10] sm:$0xff]  ;;  %v5301_v30 = vld [vmem:[%s5281_s9 + $0x18] sm:$0xff]  ;;  %v4568_v37 = vpack.c.bf16 %v3415_v33, %v3414_v32  ;;  %v3450_v44 = vld [vmem:[%s7935_s1 + $0x2e0] sm:$0xff]  ;;  %s314_s14 = scalar_select %p304_p6, 1, 0 }
  0x18   : > { %4561 = vmatprep.subr.bf16.mxu0 %v7944_v3  ;;  %v5304_v31 = vrot.slane %v5291_v26, 1  ;;  %770 = vmatprep.mubr.f32.mxu0 %v5291_v26  ;;  %v598_v34 = vrot.slane %v5301_v30, 1  ;;  %v3449_v39 = vld [vmem:[%s7935_s1 + $0x2d8] sm:$0xff]  ;;  %v3416_v40 = vld [vmem:[%s7935_s1 + $0x1d0] sm:$0xff]  ;;  %v3451_v45 = vld [vmem:[%s7935_s1 + $0x2e8] sm:$0xff]  ;;  %s3380_s10 = sshll.u32 %s8021_s25, 5 }
  0x19   : > { %4610 = vmatpush3.bf16.msra.mxu1 %v4607_v12  ;;  %v3417_v41 = vld [vmem:[%s7935_s1 + $0x1d8] sm:$0xff]  ;;  %v4623_v42 = vpack.c.bf16 %v3449_v39, %v3448_v38  ;;  %v3418_v46 = vld [vmem:[%s7935_s1 + $0x1e0] sm:$0xff]  ;;  %v3419_v47 = vld [vmem:[%s7935_s1 + $0x1e8] sm:$0xff]  ;;  %v4627_v48 = vpack.c.bf16 %v3451_v45, %v3450_v44  ;;  %s317_s23 = scalar_select %p305_p7, 1, 0 }
  0x1a   : > { %4612 = vmatprep.subr.bf16.mxu1 %v4611_v18  ;;  %v5318_v36 = vsel %vm425_vm0, %v5304_v31, %v598_v34  ;;  %v4571_v43 = vpack.c.bf16 %v3417_v41, %v3416_v40  ;;  %v4574_v49 = vpack.c.bf16 %v3419_v47, %v3418_v46  ;;  %v3452_v50 = vld [vmem:[%s7935_s1 + $0x2f0] sm:$0xff]  ;;  %v3453_v51 = vld [vmem:[%s7935_s1 + $0x2f8] sm:$0xff]  ;;  %v5361_v55 = vld [vmem:[%s5281_s9 + $0x20] sm:$0xff]  ;;  %s300_s13 = sadd.s32 %s3380_s10, %s3379_s24 }
  0x1b   : > { %4563 = vmatpush1.bf16.msra.mxu0 %v4562_v19  ;;  %4233 = vmatprep.mubr.f32.mxu1 %v5318_v36  ;;  %v3420_v52 = vld [vmem:[%s7935_s1 + $0x1f0] sm:$0xff]  ;;  %v3421_v53 = vld [vmem:[%s7935_s1 + $0x1f8] sm:$0xff]  ;;  %v4631_v54 = vpack.c.bf16 %v3453_v51, %v3452_v50  ;;  %v5364_v57 = vld [vmem:[%s5281_s9 + $0x28] sm:$0xff]  ;;  %v599_v61 = vrot.slane %v5361_v55, 1  ;;  %s3381_s25 = sshll.u32 %s300_s13, 3 }
  0x1c   : > { %4564 = vmatprep.subr.bf16.mxu0 %v7944_v3  ;;  %v4577_v56 = vpack.c.bf16 %v3421_v53, %v3420_v52  ;;  %v3422_v58 = vld [vmem:[%s7935_s1 + $0x200] sm:$0xff]  ;;  %v3423_v59 = vld [vmem:[%s7935_s1 + $0x208] sm:$0xff]  ;;  %v600_v0 = vrot.slane %v5364_v57, 1  ;;  %v5385_v1 = vld [vmem:[%s5281_s9 + $0x30] sm:$0xff]  ;;  %s7817_s18 = scalar_lea.vmem %s7941_s7, %s3381_s25 }
  0x1d   : > { %4614 = vmatpush3.bf16.msra.mxu1 %v4611_v18  ;;  %v466_v62 = vld [vmem:[%s7935_s1] sm:$0xff]  ;;  %v467_v63 = vld [vmem:[%s7935_s1 + $0x8] sm:$0xff]  ;;  %v4580_v2 = vpack.c.bf16 %v3423_v59, %v3422_v58  ;;  %v5388_v4 = vld [vmem:[%s5281_s9 + $0x38] sm:$0xff]  ;;  %v5400_v7 = vsel %vm425_vm0, %v598_v34, %v599_v61  ;;  %v601_v9 = vrot.slane %v5385_v1, 1 }
  0x1e   : > { %4616 = vmatprep.subr.bf16.mxu1 %v4615_v25  ;;  %v3424_v5 = vld [vmem:[%s7935_s1 + $0x210] sm:$0xff]  ;;  %v3425_v6 = vld [vmem:[%s7935_s1 + $0x218] sm:$0xff]  ;;  %v4636_v8 = vpack.c.bf16 %v467_v63, %v466_v62  ;;  %v5412_v12 = vsel %vm425_vm0, %v599_v61, %v600_v0  ;;  %v602_v13 = vrot.slane %v5388_v4, 1  ;;  %v5416_v14 = vld [vmem:[%s5281_s9 + $0x40] sm:$0xff] }
  0x1f   : > { %4566 = vmatpush1.bf16.msra.mxu0 %v4565_v27  ;;  %v468_v10 = vld [vmem:[%s7935_s1 + $0x10] sm:$0xff]  ;;  %v469_v11 = vld [vmem:[%s7935_s1 + $0x18] sm:$0xff]  ;;  %v4583_v15 = vpack.c.bf16 %v3425_v6, %v3424_v5  ;;  %v5419_v16 = vld [vmem:[%s5281_s9 + $0x48] sm:$0xff]  ;;  %v5434_v20 = vsel %vm425_vm0, %v600_v0, %v601_v9  ;;  %v603_v21 = vrot.slane %v5416_v14, 1 }
  0x20   : > { %4567 = vmatprep.subr.bf16.mxu0 %v7944_v3  ;;  %v3426_v17 = vld [vmem:[%s7935_s1 + $0x220] sm:$0xff]  ;;  %v3427_v18 = vld [vmem:[%s7935_s1 + $0x228] sm:$0xff]  ;;  %v4639_v19 = vpack.c.bf16 %v469_v11, %v468_v10  ;;  %v604_v27 = vrot.slane %v5419_v16, 1  ;;  %v5450_v28 = vld [vmem:[%s5281_s9 + $0x50] sm:$0xff] }
  0x21   : > { %4618 = vmatpush3.bf16.msra.mxu1 %v4615_v25  ;;  %v470_v23 = vld [vmem:[%s7935_s1 + $0x20] sm:$0xff]  ;;  %v471_v24 = vld [vmem:[%s7935_s1 + $0x28] sm:$0xff]  ;;  %v5446_v25 = vsel %vm425_vm0, %v601_v9, %v602_v13  ;;  %v4586_v29 = vpack.c.bf16 %v3427_v18, %v3426_v17  ;;  %v5453_v32 = vld [vmem:[%s5281_s9 + $0x58] sm:$0xff]  ;;  %v605_v38 = vrot.slane %v5450_v28, 1 }
  0x22   : > { %4620 = vmatprep.subr.bf16.mxu1 %v4619_v35  ;;  %v3428_v33 = vld [vmem:[%s7935_s1 + $0x230] sm:$0xff]  ;;  %v3429_v34 = vld [vmem:[%s7935_s1 + $0x238] sm:$0xff]  ;;  %v5480_v41 = vsel %vm425_vm0, %v603_v21, %v604_v27  ;;  %v5487_v45 = vld [vmem:[%s5281_s9 + $0x68] sm:$0xff] }
  0x23   : > { %4569 = vmatpush1.bf16.msra.mxu0 %v4568_v37  ;;  %v5468_v37 = vsel %vm425_vm0, %v602_v13, %v603_v21  ;;  %v472_v39 = vld [vmem:[%s7935_s1 + $0x30] sm:$0xff]  ;;  %v473_v40 = vld [vmem:[%s7935_s1 + $0x38] sm:$0xff]  ;;  %v4589_v44 = vpack.c.bf16 %v3429_v34, %v3428_v33  ;;  %v3430_v46 = vld [vmem:[%s7935_s1 + $0x240] sm:$0xff] }
  0x24   : > { %4570 = vmatprep.subr.bf16.mxu0 %v7944_v3  ;;  %v3431_v47 = vld [vmem:[%s7935_s1 + $0x248] sm:$0xff]  ;;  %v474_v51 = vld [vmem:[%s7935_s1 + $0x40] sm:$0xff]  ;;  %v5521_v59 = vld [vmem:[%s5281_s9 + $0x78] sm:$0xff] }
  0x25   : > { %4622 = vmatpush3.bf16.msra.mxu1 %v4619_v35  ;;  %v4642_v35 = vpack.c.bf16 %v471_v24, %v470_v23  ;;  %v475_v52 = vld [vmem:[%s7935_s1 + $0x48] sm:$0xff]  ;;  %v4592_v58 = vpack.c.bf16 %v3431_v47, %v3430_v46  ;;  %v5524_v61 = vld [vmem:[%s5281_s9 + $0x98] sm:$0xff]  ;;  %v3432_v62 = vld [vmem:[%s7935_s1 + $0x250] sm:$0xff]  ;;  %v5557_v11 = vrot.slane %v5521_v59, 1 }
  0x26   : > { %4624 = vmatprep.subr.bf16.mxu1 %v4623_v42  ;;  %v3433_v63 = vld [vmem:[%s7935_s1 + $0x258] sm:$0xff]  ;;  %v4648_v0 = vpack.c.bf16 %v475_v52, %v474_v51  ;;  %v5543_v6 = vld [vmem:[%s5281_s9] sm:$0xff]  ;;  %v3435_v23 = vld [vmem:[%s7935_s1 + $0x268] sm:$0xff] }
  0x27   : > { %4572 = vmatpush1.bf16.msra.mxu0 %v4571_v43  ;;  %v5484_v43 = vld [vmem:[%s5281_s9 + $0x60] sm:$0xff]  ;;  %v477_v9 = vld [vmem:[%s7935_s1 + $0x58] sm:$0xff]  ;;  %7968 = vst [vmem:[#allocation2_spill] sm:$0xff] %v5557_v11  ;;  %v7942_v17 = vrot.slane %v5543_v6, 1  ;;  %v4595_v18 = vpack.c.bf16 %v3433_v63, %v3432_v62  ;;  %v5618_v47 = vld [vmem:[%s5281_s9 + $0xa8] sm:$0xff] }
  0x28   : > { %4573 = vmatprep.subr.bf16.mxu0 %v7944_v3  ;;  %v607_v50 = vrot.slane %v5484_v43, 1  ;;  %v5560_v13 = vld [vmem:[%s5281_s9 + $0x80] sm:$0xff]  ;;  %v3437_v46 = vld [vmem:[%s7935_s1 + $0x278] sm:$0xff] }
  0x29   : > { %4626 = vmatpush3.bf16.msra.mxu1 %v4623_v42  ;;  %v606_v42 = vrot.slane %v5453_v32, 1  ;;  %v3434_v21 = vld [vmem:[%s7935_s1 + $0x260] sm:$0xff]  ;;  %v611_v33 = vrot.slane %v5560_v13, 1  ;;  %v481_v62 = vld [vmem:[%s7935_s1 + $0x78] sm:$0xff] }
  0x2a   : > { %4628 = vmatprep.subr.bf16.mxu1 %v4627_v48  ;;  %v478_v34 = vld [vmem:[%s7935_s1 + $0x60] sm:$0xff] }
  0x2b   : > { %4575 = vmatpush1.bf16.msra.mxu0 %v4574_v49  ;;  %v5502_v49 = vsel %vm425_vm0, %v604_v27, %v605_v38  ;;  %v5514_v53 = vsel %vm425_vm0, %v605_v38, %v606_v42  ;;  %v498_v52 = vld [vmem:[%s7935_s1 + $0x100] sm:$0xff] }
  0x2c   : > { %4576 = vmatprep.subr.bf16.mxu0 %v7944_v3 }
  0x2d   : > { %4630 = vmatpush3.bf16.msra.mxu1 %v4627_v48  ;;  %v4645_v48 = vpack.c.bf16 %v473_v40, %v472_v39  ;;  %v5608_v40 = vld [vmem:[%s5281_s9 + $0x90] sm:$0xff] }
  0x2e   : > { %4632 = vmatprep.subr.bf16.mxu1 %v4631_v54  ;;  %v613_v51 = vrot.slane %v5608_v40, 1 }
  0x2f   : > { %4578 = vmatpush1.bf16.msra.mxu0 %v4577_v56  ;;  %v5518_v56 = vld [vmem:[%s5281_s9 + $0x70] sm:$0xff] }
  0x30   : > { %4579 = vmatprep.subr.bf16.mxu0 %v7944_v3  ;;  %v609_v5 = vrot.slane %v5518_v56, 1 }
  0x31   : > { %4634 = vmatpush3.bf16.msra.mxu1 %v4631_v54  ;;  %v608_v54 = vrot.slane %v5487_v45, 1 }
  0x32   : > { %4635 = vmatprep.subr.bf16.mxu1 %v7944_v3  ;;  %v5602_v38 = vsel %vm425_vm0, %v609_v5, %v5557_v11 }
  0x33   : > { %4581 = vmatpush1.bf16.msra.mxu0 %v4580_v2  ;;  %v5539_v2 = vsel %vm425_vm0, %v606_v42, %v607_v50  ;;  %v5554_v10 = vsel %vm425_vm0, %v607_v50, %v608_v54  ;;  %v4598_v42 = vpack.c.bf16 %v3435_v23, %v3434_v21  ;;  %v5627_v50 = vsel %vm425_vm0, %v5557_v11, %v611_v33  ;;  %v3549_v11 = vld [vmem:[%s7935_s1 + $0x408] sm:$0xff] }
  0x34   : > { %4234 = vmatmul.mubr.msk.f32.vlgmr.msra.gmra.mrb[0].mxu1 %vm313_vm1, %v5400_v7  ;;  %4582 = vmatprep.subr.bf16.mxu0 %v7944_v3 }
  0x35   : > { %4637 = vmatpush1.bf16.msra.mxu1 %v4636_v8  ;;  %4236 = vmatprep.mubr.f32.mxu1 %v5412_v12  ;;  %v476_v8 = vld [vmem:[%s7935_s1 + $0x50] sm:$0xff] }
  0x36   : > { %4638 = vmatprep.subr.bf16.mxu1 %v7944_v3  ;;  %v4651_v27 = vpack.c.bf16 %v477_v9, %v476_v8  ;;  %v5652_v8 = vrot.slane %v5291_v26, 7  ;;  %v7943_v9 = vrot.slane %v5618_v47, 7 }
  0x37   : > { %4584 = vmatpush1.bf16.msra.mxu0 %v4583_v15  ;;  %v5563_v15 = vrot.slane %v5524_v61, 1 }
  0x38   : > { %4585 = vmatprep.subr.bf16.mxu0 %v7944_v3  ;;  %4237 = vmatmul.mubr.msk.f32.gmra.mrb[2].mxu1 %vm313_vm1, %v5434_v20 }
  0x39   : > { %4640 = vmatpush1.bf16.msra.mxu1 %v4639_v19  ;;  %4239 = vmatprep.mubr.f32.mxu1 %v5446_v25  ;;  %v5567_v19 = vld [vmem:[%s5281_s9 + $0x88] sm:$0xff]  ;;  %v5584_v24 = vsel %vm425_vm0, %v5563_v15, %v7942_v17 }
  0x3a   : > { %4641 = vmatprep.subr.bf16.mxu1 %v7944_v3  ;;  %7969 = vst [vmem:[#allocation3_spill] sm:$0xff] %v5584_v24  ;;  %v5605_v39 = vrot.slane %v5567_v19, 1  ;;  %v5869_v24 = vrot.slane %v5524_v61, 7 }
  0x3b   : > { %4587 = vmatpush1.bf16.msra.mxu0 %v4586_v29  ;;  %v5589_v29 = vsel %vm425_vm0, %v608_v54, %v609_v5  ;;  %v499_v54 = vld [vmem:[%s7935_s1 + $0x108] sm:$0xff] }
  0x3c   : > { %4588 = vmatprep.subr.bf16.mxu0 %v7944_v3  ;;  %4240 = vmatmul.mubr.msk.f32.gmra.mrb[4].mxu1 %vm313_vm1, %v5468_v37  ;;  %7970 = vst [vmem:[#allocation4_spill] sm:$0xff] %v5605_v39  ;;  %v5646_v63 = vsel %vm425_vm0, %v611_v33, %v5605_v39  ;;  %v5664_v23 = vsel %vm425_vm0, %v5605_v39, %v613_v51  ;;  %v500_v33 = vld [vmem:[%s7935_s1 + $0x110] sm:$0xff]  ;;  %v513_v39 = vld [vmem:[%s7935_s1 + $0x178] sm:$0xff] }
  0x3d   : > { %4643 = vmatpush1.bf16.msra.mxu1 %v4642_v35  ;;  %4242 = vmatprep.mubr.f32.mxu1 %v5480_v41  ;;  %v479_v35 = vld [vmem:[%s7935_s1 + $0x68] sm:$0xff]  ;;  %7971 = vst [vmem:[#allocation5_spill] sm:$0xff] %v5646_v63  ;;  %7972 = vst [vmem:[#allocation6_spill] sm:$0xff] %v5664_v23 }
  0x3e   : > { %4644 = vmatprep.subr.bf16.mxu1 %v7944_v3 }
  0x3f   : > { %4590 = vmatpush1.bf16.msra.mxu0 %v4589_v44  ;;  %v3436_v44 = vld [vmem:[%s7935_s1 + $0x270] sm:$0xff] }
  0x40   : > { %4591 = vmatprep.subr.bf16.mxu0 %v7944_v3  ;;  %4243 = vmatmul.mubr.msk.f32.gmra.mrb[6].mxu1 %vm313_vm1, %v5502_v49  ;;  %v4601_v5 = vpack.c.bf16 %v3437_v46, %v3436_v44  ;;  %v5685_v44 = vsel %vm425_vm0, %v613_v51, %v5563_v15  ;;  %v616_v46 = vrot.slane %v5618_v47, 1 }
  0x41   : > { %4646 = vmatpush1.bf16.msra.mxu1 %v4645_v48  ;;  %4245 = vmatprep.mubr.f32.mxu1 %v5514_v53  ;;  %v4654_v48 = vpack.c.bf16 %v479_v35, %v478_v34  ;;  %v501_v34 = vld [vmem:[%s7935_s1 + $0x118] sm:$0xff]  ;;  %v482_v35 = vld [vmem:[%s7935_s1 + $0x80] sm:$0xff]  ;;  %7974 = vst [vmem:[#allocation8_spill] sm:$0xff] %v5685_v44 }
  0x42   : > { %4647 = vmatprep.subr.bf16.mxu1 %v7944_v3  ;;  %v4687_v51 = vpack.c.bf16 %v501_v34, %v500_v33  ;;  %v636_v17 = vsel %vm425_vm0, %v616_v46, %v5304_v31 }
  0x43   : > { %4593 = vmatpush1.bf16.msra.mxu0 %v4592_v58  ;;  %v480_v58 = vld [vmem:[%s7935_s1 + $0x70] sm:$0xff] }
  0x44   : > { %4594 = vmatprep.subr.bf16.mxu0 %v7944_v3  ;;  %4246 = vmatmul.mubr.msk.f32.gmra.mrb[8].mxu1 %vm313_vm1, %v5539_v2  ;;  %v4657_v21 = vpack.c.bf16 %v481_v62, %v480_v58  ;;  %v502_v62 = vld [vmem:[%s7935_s1 + $0x120] sm:$0xff] }
  0x45   : > { %4649 = vmatpush1.bf16.msra.mxu1 %v4648_v0  ;;  %4248 = vmatprep.mubr.f32.mxu1 %v5554_v10  ;;  %v5649_v0 = vld [vmem:[%s5281_s9 + $0xa0] sm:$0xff] }
  0x46   : > { %4650 = vmatprep.subr.bf16.mxu1 %v7944_v3 }
  0x47   : > { %4596 = vmatpush1.bf16.msra.mxu0 %v4595_v18  ;;  %v4683_v18 = vpack.c.bf16 %v499_v54, %v498_v52  ;;  %v538_v52 = vrot.slane %v5301_v30, 7 }
  0x48   : > { %4597 = vmatprep.subr.bf16.mxu0 %v7944_v3  ;;  %4249 = vmatmul.mubr.msk.f32.gmra.mrb[10].mxu1 %vm313_vm1, %v5589_v29 }
  0x49   : > { %4652 = vmatpush1.bf16.msra.mxu1 %v4651_v27  ;;  %4251 = vmatprep.mubr.f32.mxu1 %v5602_v38  ;;  %v5667_v27 = vrot.slane %v5649_v0, 1  ;;  %v5727_v34 = vsel %vm364_vm2, %v5652_v8, %v538_v52 }
  0x4a   : > { %4653 = vmatprep.subr.bf16.mxu1 %v7944_v3 }
  0x4b   : > { %4599 = vmatpush1.bf16.msra.mxu0 %v4598_v42  ;;  %7973 = vst [vmem:[#allocation7_spill] sm:$0xff] %v5667_v27  ;;  %v483_v42 = vld [vmem:[%s7935_s1 + $0x88] sm:$0xff]  ;;  %v5703_v58 = vsel %vm425_vm0, %v5563_v15, %v5667_v27  ;;  %v485_v15 = vld [vmem:[%s7935_s1 + $0x98] sm:$0xff]  ;;  %v617_v33 = vsel %vm425_vm0, %v5667_v27, %v616_v46 }
  0x4c   : > { %4600 = vmatprep.subr.bf16.mxu0 %v7944_v3  ;;  %4252 = vmatmul.mubr.msk.f32.gmra.mrb[12].mxu1 %vm313_vm1, %v5627_v50  ;;  %v4660_v54 = vpack.c.bf16 %v483_v42, %v482_v35  ;;  %7975 = vst [vmem:[#allocation9_spill] sm:$0xff] %v5703_v58  ;;  %v539_v35 = vrot.slane %v5361_v55, 7  ;;  %v487_v46 = vld [vmem:[%s7935_s1 + $0xa8] sm:$0xff] }
  0x4d   : > { %4655 = vmatpush1.bf16.msra.mxu1 %v4654_v48  ;;  %4254 = vmatprep.mubr.f32.mxu1 %v5646_v63  ;;  %v576_v48 = vsel %vm364_vm2, %v7943_v9, %v5652_v8  ;;  %v504_v9 = vld [vmem:[%s7935_s1 + $0x130] sm:$0xff]  ;;  %v511_v27 = vld [vmem:[%s7935_s1 + $0x168] sm:$0xff] }
  0x4e   : > { %4656 = vmatprep.subr.bf16.mxu1 %v7944_v3  ;;  %v3521_v63 = vld [vmem:[%s7935_s1 + $0x328] sm:$0xff] }
  0x4f   : > { %4602 = vmatpush1.bf16.msra.mxu0 %v4601_v5  ;;  %v503_v5 = vld [vmem:[%s7935_s1 + $0x128] sm:$0xff] }
  0x50   : > { %4255 = vmatmul.mubr.msk.f32.gmra.mrb[14].mxu1 %vm313_vm1, %v5664_v23  ;;  %4684 = vmatprep.subr.bf16.mxu0 %v4683_v18  ;;  %v4691_v42 = vpack.c.bf16 %v503_v5, %v502_v62  ;;  %v5753_v62 = vsel %vm364_vm2, %v538_v52, %v539_v35  ;;  %v540_v5 = vrot.slane %v5364_v57, 7  ;;  %v507_v52 = vld [vmem:[%s7935_s1 + $0x148] sm:$0xff] }
  0x51   : > { %4658 = vmatpush1.bf16.msra.mxu1 %v4657_v21  ;;  %4257 = vmatprep.mubr.f32.mxu1 %v5685_v44  ;;  %v484_v21 = vld [vmem:[%s7935_s1 + $0x90] sm:$0xff] }
  0x52   : > { %3454 = vmatmul.mubr.msk.f32.vlgmr.msra.gmra.mrb[0].mxu0 %vm310_vm3, %v576_v48  ;;  %4659 = vmatprep.subr.bf16.mxu1 %v7944_v3  ;;  %v4663_v48 = vpack.c.bf16 %v485_v15, %v484_v21 }
  0x53   : > { %775 = vmatprep.mubr.f32.mxu0 %v5301_v30  ;;  %4686 = vmatpush3.bf16.msra.mxu0 %v4683_v18  ;;  %v505_v18 = vld [vmem:[%s7935_s1 + $0x138] sm:$0xff] }
  0x54   : > { %4258 = vmatmul.mubr.msk.f32.gmra.mrb[16].mxu1 %vm313_vm1, %v5703_v58  ;;  %4688 = vmatprep.subr.bf16.mxu0 %v4687_v51  ;;  %v4695_v21 = vpack.c.bf16 %v505_v18, %v504_v9  ;;  %v489_v9 = vld [vmem:[%s7935_s1 + $0xb8] sm:$0xff]  ;;  %v7976_v58 = vmov 0.0|0.0  }
  0x55   : > { %4661 = vmatpush1.bf16.msra.mxu1 %v4660_v54  ;;  %4260 = vmatprep.mubr.f32.mxu1 %v617_v33  ;;  %v486_v54 = vld [vmem:[%s7935_s1 + $0xa0] sm:$0xff] }
  0x56   : > { %776 = vmatmul.mubr.f32.gmra.mrb[2].mxu0 %v5727_v34  ;;  %4662 = vmatprep.subr.bf16.mxu1 %v7944_v3  ;;  %v4666_v15 = vpack.c.bf16 %v487_v46, %v486_v54  ;;  %v506_v33 = vld [vmem:[%s7935_s1 + $0x140] sm:$0xff]  ;;  %v508_v46 = vld [vmem:[%s7935_s1 + $0x150] sm:$0xff] }
  0x57   : > { %780 = vmatprep.mubr.f32.mxu0 %v5361_v55  ;;  %4690 = vmatpush3.bf16.msra.mxu0 %v4687_v51  ;;  %v5778_v51 = vsel %vm364_vm2, %v539_v35, %v540_v5  ;;  %v4699_v18 = vpack.c.bf16 %v507_v52, %v506_v33  ;;  %v490_v35 = vld [vmem:[%s7935_s1 + $0xc0] sm:$0xff]  ;;  %v542_v33 = vrot.slane %v5388_v4, 7 }
  0x58   : > { %4261 = vmatmul.mubr.msk.f32.gmra.mrb[18].mxu1 %vm313_vm1, %v636_v17  ;;  %4692 = vmatprep.subr.bf16.mxu0 %v4691_v42  ;;  %v488_v17 = vld [vmem:[%s7935_s1 + $0xb0] sm:$0xff] }
  0x59   : > { %4664 = vmatpush1.bf16.msra.mxu1 %v4663_v48  ;;  %1100 = vmatprep.mubr.f32.mxu1 %v5543_v6  ;;  %v541_v48 = vrot.slane %v5385_v1, 7  ;;  %v4669_v54 = vpack.c.bf16 %v489_v9, %v488_v17  ;;  %v510_v9 = vld [vmem:[%s7935_s1 + $0x160] sm:$0xff] }
  0x5a   : > { %3455 = vmatmul.mubr.msk.f32.gmra.mrb[4].mxu0 %vm310_vm3, %v5753_v62  ;;  %4665 = vmatprep.subr.bf16.mxu1 %v7944_v3  ;;  %v509_v3 = vld [vmem:[%s7935_s1 + $0x158] sm:$0xff] }
  0x5b   : > { %785 = vmatprep.mubr.f32.mxu0 %v5364_v57  ;;  %4694 = vmatpush3.bf16.msra.mxu0 %v4691_v42  ;;  %v491_v42 = vld [vmem:[%s7935_s1 + $0xc8] sm:$0xff]  ;;  %v4703_v52 = vpack.c.bf16 %v509_v3, %v508_v46  ;;  %v492_v3 = vld [vmem:[%s7935_s1 + $0xd0] sm:$0xff]  ;;  %v4707_v46 = vpack.c.bf16 %v511_v27, %v510_v9 }
  0x5c   : > { %4696 = vmatprep.subr.bf16.mxu0 %v4695_v21  ;;  %v4672_v17 = vpack.c.bf16 %v491_v42, %v490_v35  ;;  %v512_v42 = vld [vmem:[%s7935_s1 + $0x170] sm:$0xff]  ;;  %v495_v27 = vld [vmem:[%s7935_s1 + $0xe8] sm:$0xff] }
  0x5d   : > { %4667 = vmatpush1.bf16.msra.mxu1 %v4666_v15  ;;  %v5798_v15 = vsel %vm364_vm2, %v540_v5, %v541_v48  ;;  %v493_v5 = vld [vmem:[%s7935_s1 + $0xd8] sm:$0xff]  ;;  %v4711_v9 = vpack.c.bf16 %v513_v39, %v512_v42  ;;  %v496_v39 = vld [vmem:[%s7935_s1 + $0xf0] sm:$0xff] }
  0x5e   : > { %786 = vmatmul.mubr.f32.gmra.mrb[6].mxu0 %v5778_v51  ;;  %4668 = vmatprep.subr.bf16.mxu1 %v7976_v58  ;;  %v4675_v35 = vpack.c.bf16 %v493_v5, %v492_v3  ;;  %v3548_v5 = vld [vmem:[%s7935_s1 + $0x400] sm:$0xff] }
  0x5f   : > { %790 = vmatprep.mubr.f32.mxu0 %v5385_v1  ;;  %4698 = vmatpush3.bf16.msra.mxu0 %v4695_v21  ;;  %v5820_v21 = vsel %vm364_vm2, %v541_v48, %v542_v33  ;;  %v494_v48 = vld [vmem:[%s7935_s1 + $0xe0] sm:$0xff]  ;;  %v5865_v42 = vpack.c.bf16 %v3549_v11, %v3548_v5  ;;  %v3517_v11 = vld [vmem:[%s7935_s1 + $0x308] sm:$0xff]  ;;  %v546_v5 = vrot.slane %v5453_v32, 7 }
  0x60   : > { %4700 = vmatprep.subr.bf16.mxu0 %v4699_v18  ;;  %v4678_v3 = vpack.c.bf16 %v495_v27, %v494_v48  ;;  %v344_v27 = vrot.slane %v5543_v6, 7 }
  0x61   : > { %4670 = vmatpush1.bf16.msra.mxu1 %v4669_v54  ;;  %v543_v54 = vrot.slane %v5416_v14, 7 }
  0x62   : > { %3456 = vmatmul.mubr.msk.f32.gmra.mrb[8].mxu0 %vm310_vm3, %v5798_v15  ;;  %4671 = vmatprep.subr.bf16.mxu1 %v7976_v58 }
  0x63   : > { %795 = vmatprep.mubr.f32.mxu0 %v5388_v4  ;;  %4702 = vmatpush3.bf16.msra.mxu0 %v4699_v18  ;;  %v5840_v18 = vsel %vm364_vm2, %v542_v33, %v543_v54  ;;  %v497_v33 = vld [vmem:[%s7935_s1 + $0xf8] sm:$0xff] }
  0x64   : > { %4704 = vmatprep.subr.bf16.mxu0 %v4703_v52  ;;  %v4681_v48 = vpack.c.bf16 %v497_v33, %v496_v39  ;;  %v384_v39 = vsel %vm364_vm2, %v5869_v24, %v344_v27 }
  0x65   : > { %4673 = vmatpush1.bf16.msra.mxu1 %v4672_v17  ;;  %v544_v17 = vrot.slane %v5419_v16, 7 }
  0x66   : > { %796 = vmatmul.mubr.f32.gmra.mrb[10].mxu0 %v5820_v21  ;;  %4674 = vmatprep.subr.bf16.mxu1 %v7976_v58 }
  0x67   : > { %800 = vmatprep.mubr.f32.mxu0 %v5416_v14  ;;  %4706 = vmatpush3.bf16.msra.mxu0 %v4703_v52  ;;  %v5862_v52 = vsel %vm364_vm2, %v543_v54, %v544_v17  ;;  %v3516_v54 = vld [vmem:[%s7935_s1 + $0x300] sm:$0xff] }
  0x68   : > { %4708 = vmatprep.subr.bf16.mxu0 %v4707_v46  ;;  %v4716_v33 = vpack.c.bf16 %v3517_v11, %v3516_v54  ;;  %v547_v54 = vrot.slane %v5484_v43, 7 }
  0x69   : > { %4676 = vmatpush1.bf16.msra.mxu1 %v4675_v35  ;;  %v545_v35 = vrot.slane %v5450_v28, 7 }
  0x6a   : > { %3457 = vmatmul.mubr.msk.f32.gmra.mrb[12].mxu0 %vm310_vm3, %v5840_v18  ;;  %4677 = vmatprep.subr.bf16.mxu1 %v7976_v58 }
  0x6b   : > { %805 = vmatprep.mubr.f32.mxu0 %v5419_v16  ;;  %4710 = vmatpush3.bf16.msra.mxu0 %v4707_v46  ;;  %v5880_v46 = vld [vmem:[%s5281_s9 + $0x8] sm:$0xff] }
  0x6c   : > { %4712 = vmatprep.subr.bf16.mxu0 %v4711_v9  ;;  %v345_v44 = vrot.slane %v5880_v46, 7 }
  0x6d   : > { %4679 = vmatpush1.bf16.msra.mxu1 %v4678_v3  ;;  %v5885_v3 = vsel %vm364_vm2, %v544_v17, %v545_v35  ;;  %v3518_v17 = vld [vmem:[%s7935_s1 + $0x310] sm:$0xff] }
  0x6e   : > { %806 = vmatmul.mubr.f32.gmra.mrb[14].mxu0 %v5862_v52  ;;  %4680 = vmatprep.subr.bf16.mxu1 %v7976_v58  ;;  %v383_v11 = vsel %vm364_vm2, %v344_v27, %v345_v44  ;;  %v548_v27 = vrot.slane %v5487_v45, 7 }
  0x6f   : > { %810 = vmatprep.mubr.f32.mxu0 %v5450_v28  ;;  %4714 = vmatpush3.bf16.msra.mxu0 %v4711_v9  ;;  %v3519_v9 = vld [vmem:[%s7935_s1 + $0x318] sm:$0xff] }
  0x70   : > { %4764 = vmatprep.subr.bf16.mxu0 %v5865_v42  ;;  %v4719_v23 = vpack.c.bf16 %v3519_v9, %v3518_v17  ;;  %v3525_v9 = vld [vmem:[%s7935_s1 + $0x348] sm:$0xff] }
  0x71   : > { %4682 = vmatpush1.bf16.msra.mxu1 %v4681_v48  ;;  %v5906_v48 = vsel %vm364_vm2, %v545_v35, %v546_v5  ;;  %v3520_v35 = vld [vmem:[%s7935_s1 + $0x320] sm:$0xff] }
  0x72   : > { %3458 = vmatmul.mubr.msk.f32.gmra.mrb[16].mxu0 %vm310_vm3, %v5885_v3  ;;  %4715 = vmatprep.subr.bf16.mxu1 %v7976_v58  ;;  %v4722_v17 = vpack.c.bf16 %v3521_v63, %v3520_v35  ;;  %v549_v63 = vrot.slane %v5518_v56, 7  ;;  %v3526_v35 = vld [vmem:[%s7935_s1 + $0x350] sm:$0xff] }
  0x73   : > { %815 = vmatprep.mubr.f32.mxu0 %v5453_v32 }
  0x74   : > { %3474 = vmatmul.mubr.msk.f32.vlgmr.msra.gmra.mrb[20].mxu1 %vm310_vm3, %v384_v39  ;;  %v5925_v39 = vsel %vm364_vm2, %v546_v5, %v547_v54  ;;  %v3522_v5 = vld [vmem:[%s7935_s1 + $0x330] sm:$0xff] }
  0x75   : > { %4717 = vmatpush1.bf16.msra.mxu1 %v4716_v33  ;;  %1105 = vmatprep.mubr.f32.mxu1 %v5880_v46  ;;  %v382_v33 = vsel %vm364_vm2, %v345_v44, %v5652_v8  ;;  %v3524_v44 = vld [vmem:[%s7935_s1 + $0x340] sm:$0xff] }
  0x76   : > { %816 = vmatmul.mubr.f32.gmra.mrb[18].mxu0 %v5906_v48  ;;  %4718 = vmatprep.subr.bf16.mxu1 %v7976_v58 }
  0x77   : > { %820 = vmatprep.mubr.f32.mxu0 %v5484_v43 }
  0x78   : > { %1106 = vmatmul.mubr.f32.gmra.mrb[22].mxu1 %v383_v11  ;;  %v4728_v11 = vpack.c.bf16 %v3525_v9, %v3524_v44  ;;  %v3532_v9 = vld [vmem:[%s7935_s1 + $0x380] sm:$0xff] }
  0x79   : > { %4720 = vmatpush1.bf16.msra.mxu1 %v4719_v23  ;;  %1110 = vmatprep.mubr.f32.mxu1 %v5291_v26  ;;  %v3523_v23 = vld [vmem:[%s7935_s1 + $0x338] sm:$0xff]  ;;  %v5945_v26 = vsel %vm364_vm2, %v547_v54, %v548_v27  ;;  %v5962_v54 = vsel %vm364_vm2, %v548_v27, %v549_v63 }
  0x7a   : > { %3459 = vmatmul.mubr.msk.f32.gmra.mrb[20].mxu0 %vm310_vm3, %v5925_v39  ;;  %4721 = vmatprep.subr.bf16.mxu1 %v7976_v58  ;;  %v4725_v8 = vpack.c.bf16 %v3523_v23, %v3522_v5  ;;  %v3527_v27 = vld [vmem:[%s7935_s1 + $0x358] sm:$0xff]  ;;  %v3529_v5 = vld [vmem:[%s7935_s1 + $0x368] sm:$0xff] }
  0x7b   : > { %825 = vmatprep.mubr.f32.mxu0 %v5487_v45 }
  0x7c   : > { %3475 = vmatmul.mubr.msk.f32.gmra.mrb[24].mxu1 %vm310_vm3, %v382_v33  ;;  %v4731_v33 = vpack.c.bf16 %v3527_v27, %v3526_v35  ;;  %v3534_v35 = vld [vmem:[%s7935_s1 + $0x390] sm:$0xff]  ;;  %v3535_v27 = vld [vmem:[%s7935_s1 + $0x398] sm:$0xff] }
  0x7d   : > { %1115 = vmatprep.mubr.f32.mxu1 %v5301_v30  ;;  %4723 = vmatpush1.bf16.msra.mxu1 %v4722_v17  ;;  %v5965_v30 = vrot.slane %v5521_v59, 7  ;;  %v3528_v17 = vld [vmem:[%s7935_s1 + $0x360] sm:$0xff] }
  0x7e   : > { %826 = vmatmul.mubr.f32.gmra.mrb[22].mxu0 %v5945_v26  ;;  %4724 = vmatprep.subr.bf16.mxu1 %v7976_v58  ;;  %v4734_v23 = vpack.c.bf16 %v3529_v5, %v3528_v17  ;;  %v3537_v17 = vld [vmem:[%s7935_s1 + $0x3a8] sm:$0xff] }
  0x7f   : > { %830 = vmatprep.mubr.f32.mxu0 %v5518_v56 }
  0x80   : > { %1116 = vmatmul.mubr.f32.gmra.mrb[26].mxu1 %v5727_v34  ;;  %v551_v34 = vrot.slane %v5560_v13, 7 }
  0x81   : > { %1120 = vmatprep.mubr.f32.mxu1 %v5361_v55  ;;  %4726 = vmatpush1.bf16.msra.mxu1 %v4725_v8  ;;  %v5983_v55 = vsel %vm364_vm2, %v549_v63, %v5965_v30  ;;  %v3530_v63 = vld [vmem:[%s7935_s1 + $0x370] sm:$0xff]  ;;  %v3531_v8 = vld [vmem:[%s7935_s1 + $0x378] sm:$0xff] }
  0x82   : > { %3460 = vmatmul.mubr.msk.f32.gmra.mrb[24].mxu0 %vm310_vm3, %v5962_v54  ;;  %4727 = vmatprep.subr.bf16.mxu1 %v7976_v58  ;;  %v4737_v44 = vpack.c.bf16 %v3531_v8, %v3530_v63 }
  0x83   : > { %835 = vmatprep.mubr.f32.mxu0 %v5521_v59 }
  0x84   : > { %3476 = vmatmul.mubr.msk.f32.gmra.mrb[28].mxu1 %vm310_vm3, %v5753_v62  ;;  %v6005_v62 = vrot.slane %v5567_v19, 7 }
  0x85   : > { %1125 = vmatprep.mubr.f32.mxu1 %v5364_v57  ;;  %4729 = vmatpush1.bf16.msra.mxu1 %v4728_v11  ;;  %v6002_v57 = vsel %vm364_vm2, %v5965_v30, %v551_v34  ;;  %v3533_v11 = vld [vmem:[%s7935_s1 + $0x388] sm:$0xff] }
  0x86   : > { %836 = vmatmul.mubr.f32.gmra.mrb[26].mxu0 %v5983_v55  ;;  %4730 = vmatprep.subr.bf16.mxu1 %v7976_v58 }
  0x87   : > { %840 = vmatprep.mubr.f32.mxu0 %v5560_v13 }
  0x88   : > { %1126 = vmatmul.mubr.f32.gmra.mrb[30].mxu1 %v5778_v51  ;;  %v553_v51 = vrot.slane %v5608_v40, 7 }
  0x89   : > { %1130 = vmatprep.mubr.f32.mxu1 %v5385_v1  ;;  %4732 = vmatpush1.bf16.msra.mxu1 %v4731_v33  ;;  %v6023_v1 = vsel %vm364_vm2, %v551_v34, %v6005_v62  ;;  %v4743_v34 = vpack.c.bf16 %v3535_v27, %v3534_v35  ;;  %v3536_v33 = vld [vmem:[%s7935_s1 + $0x3a0] sm:$0xff]  ;;  %v3554_v27 = vld [vmem:[%s7935_s1 + $0x430] sm:$0xff] }
  0x8a   : > { %3461 = vmatmul.mubr.msk.f32.gmra.mrb[28].mxu0 %vm310_vm3, %v6002_v57  ;;  %4733 = vmatprep.subr.bf16.mxu1 %v7976_v58  ;;  %v4746_v5 = vpack.c.bf16 %v3537_v17, %v3536_v33  ;;  %v3557_v33 = vld [vmem:[%s7935_s1 + $0x448] sm:$0xff]  ;;  %v3559_v17 = vld [vmem:[%s7935_s1 + $0x458] sm:$0xff] }
  0x8b   : > { %845 = vmatprep.mubr.f32.mxu0 %v5567_v19 }
  0x8c   : > { %3477 = vmatmul.mubr.msk.f32.gmra.mrb[32].mxu1 %vm310_vm3, %v5798_v15  ;;  %v4740_v15 = vpack.c.bf16 %v3533_v11, %v3532_v9  ;;  %v3552_v11 = vld [vmem:[%s7935_s1 + $0x420] sm:$0xff] }
  0x8d   : > { %1135 = vmatprep.mubr.f32.mxu1 %v5388_v4  ;;  %4735 = vmatpush1.bf16.msra.mxu1 %v4734_v23  ;;  %v6042_v4 = vsel %vm364_vm2, %v6005_v62, %v553_v51  ;;  %v3538_v23 = vld [vmem:[%s7935_s1 + $0x3b0] sm:$0xff] }
  0x8e   : > { %846 = vmatmul.mubr.f32.gmra.mrb[30].mxu0 %v6023_v1  ;;  %4736 = vmatprep.subr.bf16.mxu1 %v7976_v58 }
  0x8f   : > { %850 = vmatprep.mubr.f32.mxu0 %v5608_v40 }
  0x90   : > { %1136 = vmatmul.mubr.f32.gmra.mrb[34].mxu1 %v5820_v21  ;;  %v6063_v21 = vrot.slane %v5649_v0, 7 }
  0x91   : > { %1140 = vmatprep.mubr.f32.mxu1 %v5416_v14  ;;  %4738 = vmatpush1.bf16.msra.mxu1 %v4737_v44  ;;  %v6060_v14 = vsel %vm364_vm2, %v553_v51, %v5869_v24  ;;  %v3551_v51 = vld [vmem:[%s7935_s1 + $0x418] sm:$0xff] }
  0x92   : > { %3462 = vmatmul.mubr.msk.f32.gmra.mrb[32].mxu0 %vm310_vm3, %v6042_v4  ;;  %4739 = vmatprep.subr.bf16.mxu1 %v7976_v58 }
  0x93   : > { %855 = vmatprep.mubr.f32.mxu0 %v5524_v61 }
  0x94   : > { %3478 = vmatmul.mubr.msk.f32.gmra.mrb[36].mxu1 %vm310_vm3, %v5840_v18  ;;  %v406_v18 = vrot.slane %v5880_v46, 1  ;;  %v7978_v46 = vrot.slane %v5543_v6, 1  ;;  %v3540_v6 = vld [vmem:[%s7935_s1 + $0x3c0] sm:$0xff] }
  0x95   : > { %1145 = vmatprep.mubr.f32.mxu1 %v5419_v16  ;;  %4741 = vmatpush1.bf16.msra.mxu1 %v4740_v15  ;;  %v6082_v16 = vsel %vm364_vm2, %v5869_v24, %v6063_v21  ;;  %v3539_v24 = vld [vmem:[%s7935_s1 + $0x3b8] sm:$0xff]  ;;  %v3553_v15 = vld [vmem:[%s7935_s1 + $0x428] sm:$0xff] }
  0x96   : > { %856 = vmatmul.mubr.f32.gmra.mrb[34].mxu0 %v6060_v14  ;;  %4742 = vmatprep.subr.bf16.mxu1 %v7976_v58  ;;  %v444_v63 = vsel %vm425_vm0, %v7978_v46, %v406_v18  ;;  %v4749_v8 = vpack.c.bf16 %v3539_v24, %v3538_v23 }
  0x97   : > { %860 = vmatprep.mubr.f32.mxu0 %v5649_v0 }
  0x98   : > { %1146 = vmatmul.mubr.f32.gmra.mrb[38].mxu1 %v5862_v52 }
  0x99   : > { %1150 = vmatprep.mubr.f32.mxu1 %v5450_v28  ;;  %4744 = vmatpush1.bf16.msra.mxu1 %v4743_v34  ;;  %v7977_v28 = vrot.slane %v5618_v47, 7  ;;  %v3556_v34 = vld [vmem:[%s7935_s1 + $0x440] sm:$0xff] }
  0x9a   : > { %3463 = vmatmul.mubr.msk.f32.gmra.mrb[36].mxu0 %vm310_vm3, %v6082_v16  ;;  %4745 = vmatprep.subr.bf16.mxu1 %v7976_v58 }
  0x9b   : > { %865 = vmatprep.mubr.f32.mxu0 %v5618_v47  ;;  %v557_v52 = vsel %vm364_vm2, %v6063_v21, %v7977_v28  ;;  %v3550_v47 = vld [vmem:[%s7935_s1 + $0x410] sm:$0xff] }
  0x9c   : > { %3479 = vmatmul.mubr.msk.f32.gmra.mrb[40].mxu1 %vm310_vm3, %v5885_v3  ;;  %v443_v3 = vsel %vm425_vm0, %v406_v18, %v5304_v31  ;;  %v4767_v44 = vpack.c.bf16 %v3551_v51, %v3550_v47  ;;  %v3542_v31 = vld [vmem:[%s7935_s1 + $0x3d0] sm:$0xff]  ;;  %v7982_v47 = vld [vmem:[#allocation3_spill] sm:$0xff] }
  0x9d   : > { %1155 = vmatprep.mubr.f32.mxu1 %v5453_v32  ;;  %4747 = vmatpush1.bf16.msra.mxu1 %v4746_v5  ;;  %v3541_v32 = vld [vmem:[%s7935_s1 + $0x3c8] sm:$0xff]  ;;  %v7981_v5 = vld [vmem:[#allocation8_spill] sm:$0xff] }
  0x9e   : > { %866 = vmatmul.mubr.f32.gmra.mrb[38].mxu0 %v557_v52  ;;  %4748 = vmatprep.subr.bf16.mxu1 %v7976_v58  ;;  %v4752_v9 = vpack.c.bf16 %v3541_v32, %v3540_v6  ;;  %v3500_v52 = vld [vmem:[%s5281_s9 + $0x40] sm:$0xff] }
  0x9f   : > { %4295 = vmatprep.mubr.f32.mxu0 %v444_v63  ;;  %v1453_v6 = vrot.slane %v3500_v52, 1 }
  0xa0   : > { %1156 = vmatmul.mubr.f32.gmra.mrb[42].mxu1 %v5906_v48  ;;  %v4771_v48 = vpack.c.bf16 %v3553_v15, %v3552_v11  ;;  %v3503_v15 = vld [vmem:[%s5281_s9 + $0x58] sm:$0xff] }
  0xa1   : > { %1160 = vmatprep.mubr.f32.mxu1 %v5484_v43  ;;  %4750 = vmatpush1.bf16.msra.mxu1 %v4749_v8  ;;  %v3543_v43 = vld [vmem:[%s7935_s1 + $0x3d8] sm:$0xff]  ;;  %v3501_v8 = vld [vmem:[%s5281_s9 + $0x48] sm:$0xff] }
  0xa2   : > { %4296 = vmatmul.mubr.msk.f32.vlgmr.msra.gmra.mrb[40].mxu0 %vm313_vm1, %v443_v3  ;;  %4751 = vmatprep.subr.bf16.mxu1 %v7976_v58  ;;  %v4755_v35 = vpack.c.bf16 %v3543_v43, %v3542_v31  ;;  %v1454_v3 = vrot.slane %v3501_v8, 1 }
  0xa3   : > { %4298 = vmatprep.mubr.f32.mxu0 %v5318_v36  ;;  %4766 = vmatpush3.bf16.msra.mxu0 %v5865_v42  ;;  %v3555_v36 = vld [vmem:[%s7935_s1 + $0x438] sm:$0xff]  ;;  %v3545_v42 = vld [vmem:[%s7935_s1 + $0x3e8] sm:$0xff] }
  0xa4   : > { %3480 = vmatmul.mubr.msk.f32.gmra.mrb[44].mxu1 %vm310_vm3, %v5925_v39  ;;  %4768 = vmatprep.subr.bf16.mxu0 %v4767_v44  ;;  %v4775_v39 = vpack.c.bf16 %v3555_v36, %v3554_v27  ;;  %v3504_v27 = vld [vmem:[%s5281_s9 + $0x60] sm:$0xff] }
  0xa5   : > { %1165 = vmatprep.mubr.f32.mxu1 %v5487_v45  ;;  %4753 = vmatpush1.bf16.msra.mxu1 %v4752_v9  ;;  %v3544_v45 = vld [vmem:[%s7935_s1 + $0x3e0] sm:$0xff] }
  0xa6   : > { %4299 = vmatmul.mubr.msk.f32.gmra.mrb[42].mxu0 %vm313_vm1, %v5400_v7  ;;  %4754 = vmatprep.subr.bf16.mxu1 %v7976_v58  ;;  %v4758_v7 = vpack.c.bf16 %v3545_v42, %v3544_v45  ;;  %v1393_v45 = vrot.slane %v3500_v52, 7  ;;  %v6296_v42 = vld [vmem:[%s5281_s9 + $0x68] sm:$0xff] }
  0xa7   : > { %4301 = vmatprep.mubr.f32.mxu0 %v5412_v12  ;;  %4770 = vmatpush3.bf16.msra.mxu0 %v4767_v44  ;;  %v3546_v12 = vld [vmem:[%s7935_s1 + $0x3f0] sm:$0xff] }
  0xa8   : > { %1166 = vmatmul.mubr.f32.gmra.mrb[46].mxu1 %v5945_v26  ;;  %4772 = vmatprep.subr.bf16.mxu0 %v4771_v48  ;;  %v4779_v26 = vpack.c.bf16 %v3557_v33, %v3556_v34  ;;  %v3502_v44 = vld [vmem:[%s5281_s9 + $0x50] sm:$0xff]  ;;  %v1458_v33 = vrot.slane %v6296_v42, 1 }
  0xa9   : > { %1170 = vmatprep.mubr.f32.mxu1 %v5518_v56  ;;  %4756 = vmatpush1.bf16.msra.mxu1 %v4755_v35  ;;  %v3547_v56 = vld [vmem:[%s7935_s1 + $0x3f8] sm:$0xff]  ;;  %v1455_v43 = vrot.slane %v3502_v44, 1  ;;  %v1456_v35 = vrot.slane %v3503_v15, 1 }
  0xaa   : > { %4302 = vmatmul.mubr.msk.f32.gmra.mrb[44].mxu0 %vm313_vm1, %v5434_v20  ;;  %4757 = vmatprep.subr.bf16.mxu1 %v7976_v58  ;;  %v3558_v20 = vld [vmem:[%s7935_s1 + $0x450] sm:$0xff]  ;;  %v4761_v18 = vpack.c.bf16 %v3547_v56, %v3546_v12 }
  0xab   : > { %4304 = vmatprep.mubr.f32.mxu0 %v5446_v25  ;;  %4774 = vmatpush3.bf16.msra.mxu0 %v4771_v48  ;;  %v4783_v25 = vpack.c.bf16 %v3559_v17, %v3558_v20  ;;  %v1483_v48 = vsel %vm425_vm0, %v1453_v6, %v1454_v3  ;;  %v1481_v34 = vsel %vm425_vm0, %v1455_v43, %v1456_v35  ;;  %v6306_v12 = vld [vmem:[%s5281_s9 + $0x70] sm:$0xff] }
  0xac   : > { %3481 = vmatmul.mubr.msk.f32.gmra.mrb[48].mxu1 %vm310_vm3, %v5962_v54  ;;  %4776 = vmatprep.subr.bf16.mxu0 %v4775_v39  ;;  %v1459_v17 = vrot.slane %v6306_v12, 1 }
  0xad   : > { %1175 = vmatprep.mubr.f32.mxu1 %v5521_v59  ;;  %4759 = vmatpush1.bf16.msra.mxu1 %v4758_v7  ;;  %v3560_v59 = vld [vmem:[%s7935_s1 + $0x460] sm:$0xff]  ;;  %v1457_v7 = vrot.slane %v3504_v27, 1 }
  0xae   : > { %4305 = vmatmul.mubr.msk.f32.gmra.mrb[46].mxu0 %vm313_vm1, %v5468_v37  ;;  %4760 = vmatprep.subr.bf16.mxu1 %v7976_v58  ;;  %v3561_v37 = vld [vmem:[%s7935_s1 + $0x468] sm:$0xff]  ;;  %v6236_v58 = vld [vmem:[%s5281_s9 + $0xb8] sm:$0xff] }
  0xaf   : > { %4307 = vmatprep.mubr.f32.mxu0 %v5480_v41  ;;  %4778 = vmatpush3.bf16.msra.mxu0 %v4775_v39  ;;  %v4787_v41 = vpack.c.bf16 %v3561_v37, %v3560_v59  ;;  %v1482_v39 = vsel %vm425_vm0, %v1454_v3, %v1455_v43  ;;  %v1480_v20 = vsel %vm425_vm0, %v1456_v35, %v1457_v7  ;;  %v1395_v37 = vrot.slane %v3502_v44, 7  ;;  %v5112_v43 = vld [vmem:[%s5281_s9 + $0x90] sm:$0xff] }
  0xb0   : > { %1176 = vmatmul.mubr.f32.gmra.mrb[50].mxu1 %v5983_v55  ;;  %4780 = vmatprep.subr.bf16.mxu0 %v4779_v26 }
  0xb1   : > { %1180 = vmatprep.mubr.f32.mxu1 %v5560_v13  ;;  %4762 = vmatpush1.bf16.msra.mxu1 %v4761_v18  ;;  %v3562_v13 = vld [vmem:[%s7935_s1 + $0x470] sm:$0xff]  ;;  %v1479_v18 = vsel %vm425_vm0, %v1457_v7, %v1458_v33 }
  0xb2   : > { %4308 = vmatmul.mubr.msk.f32.gmra.mrb[48].mxu0 %vm313_vm1, %v5502_v49  ;;  %v3563_v49 = vld [vmem:[%s7935_s1 + $0x478] sm:$0xff] }
  0xb3   : > { %4310 = vmatprep.mubr.f32.mxu0 %v5514_v53  ;;  %4782 = vmatpush3.bf16.msra.mxu0 %v4779_v26  ;;  %v4791_v53 = vpack.c.bf16 %v3563_v49, %v3562_v13  ;;  %v1394_v26 = vrot.slane %v3501_v8, 7  ;;  %v7983_v49 = vld [vmem:[#allocation2_spill] sm:$0xff] }
  0xb4   : > { %3482 = vmatmul.mubr.msk.f32.gmra.mrb[52].mxu1 %vm310_vm3, %v6002_v57  ;;  %4784 = vmatprep.subr.bf16.mxu0 %v4783_v25  ;;  %v3499_v57 = vld [vmem:[%s5281_s9 + $0x38] sm:$0xff] }
  0xb5   : > { %1185 = vmatprep.mubr.f32.mxu1 %v5567_v19  ;;  %v6233_v19 = vld [vmem:[%s5281_s9 + $0x20] sm:$0xff]  ;;  %v1452_v28 = vrot.slane %v3499_v57, 1  ;;  %v1392_v11 = vrot.slane %v3499_v57, 7  ;;  %v1423_v59 = vsel %vm364_vm2, %v1393_v45, %v1394_v26 }
  0xb6   : > { %4311 = vmatmul.mubr.msk.f32.gmra.mrb[50].mxu0 %vm313_vm1, %v5539_v2  ;;  %v1389_v2 = vrot.slane %v6233_v19, 7 }
  0xb7   : > { %4313 = vmatprep.mubr.f32.mxu0 %v5554_v10  ;;  %4786 = vmatpush3.bf16.msra.mxu0 %v4783_v25  ;;  %v1408_v10 = vrot.slane %v6236_v58, 7  ;;  %v1484_v31 = vsel %vm425_vm0, %v1452_v28, %v1453_v6  ;;  %v1424_v56 = vsel %vm364_vm2, %v1392_v11, %v1393_v45  ;;  %v6320_v25 = vld [vmem:[%s5281_s9 + $0x80] sm:$0xff]  ;;  %v7986_v6 = vld [vmem:[#allocation9_spill] sm:$0xff]  ;;  %v2131_v45 = vld [vmem:[%s7938_s4 + $0x108] sm:$0xff] }
  0xb8   : > { %1186 = vmatmul.mubr.f32.gmra.mrb[54].mxu1 %v6023_v1  ;;  %4788 = vmatprep.subr.bf16.mxu0 %v4787_v41  ;;  %v7980_v1 = vld [vmem:[#allocation6_spill] sm:$0xff]  ;;  %v1461_v13 = vrot.slane %v6320_v25, 1 }
  0xb9   : > { %1190 = vmatprep.mubr.f32.mxu1 %v5608_v40  ;;  %v7979_v40 = vld [vmem:[#allocation5_spill] sm:$0xff]  ;;  %v1428_v55 = vsel %vm364_vm2, %v1408_v10, %v1389_v2 }
  0xba   : > { %4314 = vmatmul.mubr.msk.f32.gmra.mrb[52].mxu0 %vm313_vm1, %v5589_v29  ;;  %v3497_v29 = vld [vmem:[%s5281_s9 + $0x28] sm:$0xff] }
  0xbb   : > { %4316 = vmatprep.mubr.f32.mxu0 %v5602_v38  ;;  %4790 = vmatpush3.bf16.msra.mxu0 %v4787_v41  ;;  %v1449_v38 = vrot.slane %v6233_v19, 1  ;;  %v1450_v54 = vrot.slane %v3497_v29, 1  ;;  %v1478_v41 = vsel %vm425_vm0, %v1458_v33, %v1459_v17 }
  0xbc   : > { %3483 = vmatmul.mubr.msk.f32.gmra.mrb[56].mxu1 %vm310_vm3, %v6042_v4  ;;  %4792 = vmatprep.subr.bf16.mxu0 %v4791_v53 }
  0xbd   : > { %1195 = vmatprep.mubr.f32.mxu1 %v5524_v61  ;;  %v3498_v61 = vld [vmem:[%s5281_s9 + $0x30] sm:$0xff]  ;;  %v1487_v24 = vsel %vm425_vm0, %v1449_v38, %v1450_v54 }
  0xbe   : > { %4317 = vmatmul.mubr.msk.f32.gmra.mrb[54].mxu0 %vm313_vm1, %v5627_v50  ;;  %v1390_v50 = vrot.slane %v3497_v29, 7  ;;  %v1451_v23 = vrot.slane %v3498_v61, 1  ;;  %v1391_v63 = vrot.slane %v3498_v61, 7 }
  0xbf   : > { %4319 = vmatprep.mubr.f32.mxu0 %v7979_v40  ;;  %4794 = vmatpush3.bf16.msra.mxu0 %v4791_v53  ;;  %v1477_v53 = vsel %vm425_vm0, %v1459_v17, %v7983_v49  ;;  %v1476_v40 = vsel %vm425_vm0, %v7983_v49, %v1461_v13  ;;  %v2138_v49 = vld [vmem:[%s7938_s4 + $0x140] sm:$0xff] }
  0xc0   : > { %1196 = vmatmul.mubr.f32.gmra.mrb[58].mxu1 %v6060_v14  ;;  %v1427_v46 = vsel %vm364_vm2, %v1389_v2, %v1390_v50  ;;  %v1486_v51 = vsel %vm425_vm0, %v1450_v54, %v1451_v23  ;;  %v1485_v32 = vsel %vm425_vm0, %v1451_v23, %v1452_v28  ;;  %v1426_v9 = vsel %vm364_vm2, %v1390_v50, %v1391_v63  ;;  %v7984_v54 = vld [vmem:[#allocation4_spill] sm:$0xff] }
  0xc1   : > { %1622 = vmatprep.mubr.f32.mxu1 %v6233_v19  ;;  %v1425_v36 = vsel %vm364_vm2, %v1391_v63, %v1392_v11  ;;  %v1422_v2 = vsel %vm364_vm2, %v1394_v26, %v1395_v37  ;;  %v1397_v50 = vrot.slane %v3504_v27, 7  ;;  %v7985_v63 = vld [vmem:[#allocation7_spill] sm:$0xff] }
  0xc2   : > { %4320 = vmatmul.mubr.msk.f32.gmra.mrb[56].mxu0 %vm313_vm1, %v7980_v1  ;;  %v2135_v26 = vld [vmem:[%s7938_s4 + $0x128] sm:$0xff] }
  0xc3   : > { %4322 = vmatprep.mubr.f32.mxu0 %v7981_v5 }
  0xc4   : > { %3564 = vmatmul.mubr.msk.f32.vlgmr.msra.gmra.mrb[60].mxu1 %vm310_vm3, %v1428_v55 }
  0xc5   : > { %1627 = vmatprep.mubr.f32.mxu1 %v3497_v29  ;;  %v1396_v29 = vrot.slane %v3503_v15, 7 }
  0xc6   : > { %4323 = vmatmul.mubr.msk.f32.gmra.mrb[58].mxu0 %vm313_vm1, %v7982_v47  ;;  %v1468_v47 = vrot.slane %v6236_v58, 1 }
  0xc7   : > { %4357 = vmatprep.mubr.f32.mxu0 %v1487_v24  ;;  %v1421_v55 = vsel %vm364_vm2, %v1395_v37, %v1396_v29  ;;  %v3514_v24 = vld [vmem:[%s5281_s9 + $0xb0] sm:$0xff]  ;;  %v1420_v28 = vsel %vm364_vm2, %v1396_v29, %v1397_v50 }
  0xc8   : > { %1628 = vmatmul.mubr.f32.gmra.mrb[62].mxu1 %v1427_v46  ;;  %v1467_v46 = vrot.slane %v3514_v24, 1  ;;  %v1407_v35 = vrot.slane %v3514_v24, 7 }
  0xc9   : > { %1632 = vmatprep.mubr.f32.mxu1 %v3498_v61  ;;  %v1475_v61 = vsel %vm425_vm0, %v1461_v13, %v7984_v54  ;;  %v2140_v54 = vld [vmem:[%s7938_s4 + $0x150] sm:$0xff] }
  0xca   : > { %4358 = vmatmul.mubr.msk.f32.vlgmr.msra.gmra.mrb[60].mxu0 %vm313_vm1, %v1486_v51 }
  0xcb   : > { %4360 = vmatprep.mubr.f32.mxu0 %v1485_v32  ;;  %v1469_v32 = vsel %vm425_vm0, %v1467_v46, %v1468_v47 }
  0xcc   : > { %3565 = vmatmul.mubr.msk.f32.gmra.mrb[64].mxu1 %vm310_vm3, %v1426_v9  ;;  %v5110_v9 = vld [vmem:[%s5281_s9 + $0x78] sm:$0xff] }
  0xcd   : > { %1637 = vmatprep.mubr.f32.mxu1 %v3499_v57  ;;  %v3513_v57 = vld [vmem:[%s5281_s9 + $0xa8] sm:$0xff] }
  0xce   : > { %4361 = vmatmul.mubr.msk.f32.gmra.mrb[62].mxu0 %vm313_vm1, %v1484_v31  ;;  %v1466_v23 = vrot.slane %v3513_v57, 1 }
  0xcf   : > { %4363 = vmatprep.mubr.f32.mxu0 %v1483_v48  ;;  %v5113_v48 = vld [vmem:[%s5281_s9 + $0x98] sm:$0xff] }
  0xd0   : > { %1638 = vmatmul.mubr.f32.gmra.mrb[66].mxu1 %v1425_v36  ;;  %v2130_v36 = vld [vmem:[%s7938_s4 + $0x100] sm:$0xff] }
  0xd1   : > { %1642 = vmatprep.mubr.f32.mxu1 %v3500_v52  ;;  %v1398_v52 = vrot.slane %v6296_v42, 7 }
  0xd2   : > { %4364 = vmatmul.mubr.msk.f32.gmra.mrb[64].mxu0 %vm313_vm1, %v1482_v39  ;;  %v4891_v39 = vpack.c.bf16 %v2131_v45, %v2130_v36 }
  0xd3   : > { %4366 = vmatprep.mubr.f32.mxu0 %v1481_v34  ;;  %v1419_v51 = vsel %vm364_vm2, %v1397_v50, %v1398_v52 }
  0xd4   : > { %3566 = vmatmul.mubr.msk.f32.gmra.mrb[68].mxu1 %vm310_vm3, %v1424_v56  ;;  %4892 = vmatprep.subr.bf16.mxu1 %v4891_v39  ;;  %v2134_v56 = vld [vmem:[%s7938_s4 + $0x120] sm:$0xff] }
  0xd5   : > { %1647 = vmatprep.mubr.f32.mxu1 %v3501_v8  ;;  %v1471_v8 = vsel %vm425_vm0, %v7985_v63, %v1466_v23  ;;  %4894 = vmatpush3.bf16.msra.mxu1 %v4891_v39  ;;  %v4899_v17 = vpack.c.bf16 %v2135_v26, %v2134_v56  ;;  %v3587_v56 = vld [vmem:[%s7938_s4 + $0x188] sm:$0xff] }
  0xd6   : > { %4367 = vmatmul.mubr.msk.f32.gmra.mrb[66].mxu0 %vm313_vm1, %v1480_v20 }
  0xd7   : > { %4369 = vmatprep.mubr.f32.mxu0 %v1479_v18 }
  0xd8   : > { %1648 = vmatmul.mubr.f32.gmra.mrb[70].mxu1 %v1423_v59  ;;  %v2137_v59 = vld [vmem:[%s7938_s4 + $0x138] sm:$0xff] }
  0xd9   : > { %1652 = vmatprep.mubr.f32.mxu1 %v3502_v44  ;;  %v1488_v44 = vsel %vm425_vm0, %v1468_v47, %v1449_v38  ;;  %v5111_v38 = vld [vmem:[%s5281_s9 + $0x88] sm:$0xff] }
  0xda   : > { %4370 = vmatmul.mubr.msk.f32.gmra.mrb[68].mxu0 %vm313_vm1, %v1478_v41 }
  0xdb   : > { %4372 = vmatprep.mubr.f32.mxu0 %v1477_v53  ;;  %v2139_v53 = vld [vmem:[%s7938_s4 + $0x148] sm:$0xff] }
  0xdc   : > { %3567 = vmatmul.mubr.msk.f32.gmra.mrb[72].mxu1 %vm310_vm3, %v1422_v2  ;;  %v4907_v29 = vpack.c.bf16 %v2139_v53, %v2138_v49  ;;  %v3604_v49 = vld [vmem:[%s7938_s4 + $0x210] sm:$0xff]  ;;  %v3605_v53 = vld [vmem:[%s7938_s4 + $0x218] sm:$0xff] }
  0xdd   : > { %1657 = vmatprep.mubr.f32.mxu1 %v3503_v15  ;;  %v1401_v15 = vrot.slane %v6320_v25, 7 }
  0xde   : > { %4373 = vmatmul.mubr.msk.f32.gmra.mrb[70].mxu0 %vm313_vm1, %v1476_v40 }
  0xdf   : > { %4375 = vmatprep.mubr.f32.mxu0 %v1475_v61  ;;  %v1416_v19 = vsel %vm364_vm2, %v5965_v30, %v1401_v15  ;;  %v1415_v31 = vsel %vm364_vm2, %v1401_v15, %v6005_v62  ;;  %v2141_v61 = vld [vmem:[%s7938_s4 + $0x158] sm:$0xff] }
  0xe0   : > { %1658 = vmatmul.mubr.f32.gmra.mrb[74].mxu1 %v1421_v55  ;;  %v4911_v50 = vpack.c.bf16 %v2141_v61, %v2140_v54  ;;  %v4799_v54 = vpack.c.bf16 %v3605_v53, %v3604_v49  ;;  %v3588_v61 = vld [vmem:[%s7938_s4 + $0x190] sm:$0xff] }
  0xe1   : > { %1662 = vmatprep.mubr.f32.mxu1 %v3504_v27 }
  0xe2   : > { %4376 = vmatmul.mubr.msk.f32.gmra.mrb[72].mxu0 %vm313_vm1, %v7980_v1  ;;  %v1399_v1 = vrot.slane %v6306_v12, 7 }
  0xe3   : > { %4378 = vmatprep.mubr.f32.mxu0 %v7981_v5  ;;  %v1470_v5 = vsel %vm425_vm0, %v1466_v23, %v1467_v46  ;;  %v2143_v46 = vld [vmem:[%s7938_s4 + $0x168] sm:$0xff] }
  0xe4   : > { %3568 = vmatmul.mubr.msk.f32.gmra.mrb[76].mxu1 %vm310_vm3, %v1420_v28  ;;  %v1418_v3 = vsel %vm364_vm2, %v1398_v52, %v1399_v1  ;;  %v1417_v11 = vsel %vm364_vm2, %v1399_v1, %v5965_v30  ;;  %v1406_v30 = vrot.slane %v3513_v57, 7  ;;  %v2142_v52 = vld [vmem:[%s7938_s4 + $0x160] sm:$0xff] }
  0xe5   : > { %1667 = vmatprep.mubr.f32.mxu1 %v6296_v42 }
  0xe6   : > { %4379 = vmatmul.mubr.msk.f32.gmra.mrb[74].mxu0 %vm313_vm1, %v7986_v6  ;;  %v1411_v62 = vsel %vm364_vm2, %v6063_v21, %v1406_v30  ;;  %v1409_v21 = vsel %vm364_vm2, %v1407_v35, %v1408_v10  ;;  %v2133_v10 = vld [vmem:[%s7938_s4 + $0x118] sm:$0xff] }
  0xe7   : > { %4381 = vmatprep.mubr.f32.mxu0 %v1471_v8  ;;  %v4915_v8 = vpack.c.bf16 %v2143_v46, %v2142_v52 }
  0xe8   : > { %1668 = vmatmul.mubr.f32.gmra.mrb[78].mxu1 %v1419_v51 }
  0xe9   : > { %1672 = vmatprep.mubr.f32.mxu1 %v6306_v12 }
  0xea   : > { %4382 = vmatmul.mubr.msk.f32.gmra.mrb[76].mxu0 %vm313_vm1, %v1470_v5  ;;  %v2144_v5 = vld [vmem:[%s7938_s4 + $0x170] sm:$0xff] }
  0xeb   : > { %4384 = vmatprep.mubr.f32.mxu0 %v1469_v32  ;;  %v2145_v32 = vld [vmem:[%s7938_s4 + $0x178] sm:$0xff] }
  0xec   : > { %3569 = vmatmul.mubr.msk.f32.gmra.mrb[80].mxu1 %vm310_vm3, %v1418_v3 }
  0xed   : > { %1677 = vmatprep.mubr.f32.mxu1 %v5110_v9 }
  0xee   : > { %4385 = vmatmul.mubr.msk.f32.gmra.mrb[78].mxu0 %vm313_vm1, %v1488_v44  ;;  %v4919_v44 = vpack.c.bf16 %v2145_v32, %v2144_v5  ;;  %v3590_v5 = vld [vmem:[%s7938_s4 + $0x1a0] sm:$0xff] }
  0xef   : > { %v3684_v32 = vld [vmem:[%s7938_s4 + $0x380] sm:$0xff] }
  0xf0   : > { %1678 = vmatmul.mubr.f32.gmra.mrb[82].mxu1 %v1417_v11 }
  0xf1   : > { %1682 = vmatprep.mubr.f32.mxu1 %v6320_v25  ;;  %v2136_v25 = vld [vmem:[%s7938_s4 + $0x130] sm:$0xff] }
  0xf2   : > { %v4903_v41 = vpack.c.bf16 %v2137_v59, %v2136_v25 }
  0xf4   : > { %3570 = vmatmul.mubr.msk.f32.gmra.mrb[84].mxu1 %vm310_vm3, %v1416_v19 }
  0xf5   : > { %1687 = vmatprep.mubr.f32.mxu1 %v5111_v38 }
  0xf8   : > { %1688 = vmatmul.mubr.f32.gmra.mrb[86].mxu1 %v1415_v31 }
  0xf9   : > { %1692 = vmatprep.mubr.f32.mxu1 %v5112_v43 }
  0xfc   : > { %3571 = vmatmul.mubr.msk.f32.gmra.mrb[88].mxu1 %vm310_vm3, %v6042_v4 }
  0xfd   : > { %1697 = vmatprep.mubr.f32.mxu1 %v5113_v48 }
 0x100   : > { %1698 = vmatmul.mubr.f32.gmra.mrb[90].mxu1 %v6060_v14  ;;  %v1410_v14 = vsel %vm364_vm2, %v1406_v30, %v1407_v35 }
 0x101   : > { %1702 = vmatprep.mubr.f32.mxu1 %v5649_v0 }
 0x104   : > { %3572 = vmatmul.mubr.msk.f32.gmra.mrb[92].mxu1 %vm310_vm3, %v6082_v16 }
 0x105   : > { %1707 = vmatprep.mubr.f32.mxu1 %v3513_v57 }
 0x107   : > { %v6415_v27 = vpop.f32.mrb[0].mxu1 }
 0x108   : > { %v937_v4 = vpop.f32.mrb[1].mxu1  ;;  %1708 = vmatmul.mubr.f32.gmra.mrb[94].mxu1 %v1411_v62 }
 0x109   : > { %1712 = vmatprep.mubr.f32.mxu1 %v3514_v24 }
 0x10b   : > { %v6419_v0 = vpop.f32.mrb[2].mxu1 }
 0x10c   : > { %3573 = vmatmul.mubr.msk.f32.gmra.mrb[96].mxu1 %vm310_vm3, %v1410_v14  ;;  %v6423_v16 = vpop.f32.mrb[3].mxu1 }
 0x10d   : > { %1717 = vmatprep.mubr.f32.mxu1 %v6236_v58  ;;  %v2132_v58 = vld [vmem:[%s7938_s4 + $0x110] sm:$0xff] }
 0x10e   : > { %v4895_v33 = vpack.c.bf16 %v2133_v10, %v2132_v58  ;;  %v3603_v10 = vld [vmem:[%s7938_s4 + $0x208] sm:$0xff] }
 0x10f   : > { %v6436_v42 = vpop.f32.mrb[4].mxu1 }
 0x110   : > { %1718 = vmatmul.mubr.f32.gmra.mrb[98].mxu1 %v1409_v21  ;;  %v6438_v7 = vpop.f32.mrb[5].mxu1  ;;  %4896 = vmatprep.subr.bf16.mxu1 %v4895_v33 }
 0x111   : > { %4898 = vmatpush3.bf16.msra.mxu1 %v4895_v33 }
 0x112   : > { %4900 = vmatprep.subr.bf16.mxu1 %v4899_v17 }
 0x113   : > { %v6446_v34 = vpop.f32.mrb[6].mxu1 }
 0x114   : > { %v6448_v12 = vpop.f32.mrb[7].mxu1 }
 0x115   : > { %4902 = vmatpush3.bf16.msra.mxu1 %v4899_v17 }
 0x116   : > { %4904 = vmatprep.subr.bf16.mxu1 %v4903_v41 }
 0x117   : > { %v6456_v20 = vpop.f32.mrb[8].mxu1 }
 0x118   : > { %v6458_v18 = vpop.f32.mrb[9].mxu1 }
 0x119   : > { %4906 = vmatpush3.bf16.msra.mxu1 %v4903_v41 }
 0x11a   : > { %4908 = vmatprep.subr.bf16.mxu1 %v4907_v29 }
 0x11b   : > { %v6466_v37 = vpop.f32.mrb[10].mxu1 }
 0x11c   : > { %v6468_v13 = vpop.f32.mrb[11].mxu1 }
 0x11d   : > { %4910 = vmatpush3.bf16.msra.mxu1 %v4907_v29 }
 0x11e   : > { %4912 = vmatprep.subr.bf16.mxu1 %v4911_v50 }
 0x11f   : > { %v6476_v2 = vpop.f32.mrb[12].mxu1 }
 0x120   : > { %v6478_v40 = vpop.f32.mrb[13].mxu1 }
 0x121   : > { %4914 = vmatpush3.bf16.msra.mxu1 %v4911_v50 }
 0x122   : > { %4916 = vmatprep.subr.bf16.mxu1 %v4915_v8 }
 0x123   : > { %v6486_v55 = vpop.f32.mrb[14].mxu1 }
 0x124   : > { %v6488_v57 = vpop.f32.mrb[15].mxu1 }
 0x125   : > { %v772_v23 = vpop.f32.mrb[0].mxu0  ;;  %4918 = vmatpush3.bf16.msra.mxu1 %v4915_v8  ;;  %v3606_v8 = vld [vmem:[%s7938_s4 + $0x220] sm:$0xff] }
 0x126   : > { %v938_v24 = vadd.f32 %v937_v4, %v772_v23  ;;  %v774_v28 = vpop.f32.mrb[1].mxu0  ;;  %4920 = vmatprep.subr.bf16.mxu1 %v4919_v44 }
 0x127   : > { %v6496_v63 = vpop.f32.mrb[16].mxu1 }
 0x128   : > { %v6498_v47 = vpop.f32.mrb[17].mxu1 }
 0x129   : > { %v777_v51 = vpop.f32.mrb[2].mxu0  ;;  %4922 = vmatpush3.bf16.msra.mxu1 %v4919_v44 }
 0x12a   : > { %v943_v1 = vadd.f32 %v6415_v27, %v777_v51  ;;  %v779_v6 = vpop.f32.mrb[3].mxu0  ;;  %v3607_v51 = vld [vmem:[%s7938_s4 + $0x228] sm:$0xff] }
 0x12b   : > { %v6507_v3 = vpop.f32.mrb[18].mxu1 }
 0x12c   : > { %v6509_v9 = vpop.f32.mrb[19].mxu1 }
 0x12d   : > { %v782_v11 = vpop.f32.mrb[4].mxu0 }
 0x12e   : > { %v948_v15 = vadd.f32 %v6423_v16, %v782_v11  ;;  %v784_v19 = vpop.f32.mrb[5].mxu0 }
 0x131   : > { %v787_v38 = vpop.f32.mrb[6].mxu0 }
 0x132   : > { %v6513_v31 = vadd.f32 %v6419_v0, %v787_v38  ;;  %v789_v43 = vpop.f32.mrb[7].mxu0  ;;  %v3685_v38 = vld [vmem:[%s7938_s4 + $0x388] sm:$0xff] }
 0x135   : > { %v792_v48 = vpop.f32.mrb[8].mxu0 }
 0x136   : > { %v6516_v30 = vadd.f32 %v6438_v7, %v792_v48  ;;  %v794_v62 = vpop.f32.mrb[9].mxu0  ;;  %v4923_v48 = vpack.c.bf16 %v3685_v38, %v3684_v32  ;;  %v3598_v32 = vld [vmem:[%s7938_s4 + $0x1e0] sm:$0xff] }
 0x138   : > { %4924 = vmatprep.subr.bf16.mxu1 %v4923_v48 }
 0x139   : > { %v797_v35 = vpop.f32.mrb[10].mxu0 }
 0x13a   : > { %v6519_v27 = vadd.f32 %v6436_v42, %v797_v35  ;;  %v799_v4 = vpop.f32.mrb[11].mxu0  ;;  %v3602_v42 = vld [vmem:[%s7938_s4 + $0x200] sm:$0xff] }
 0x13b   : > { %v3608_v4 = vld [vmem:[%s7938_s4 + $0x230] sm:$0xff] }
 0x13d   : > { %v802_v14 = vpop.f32.mrb[12].mxu0 }
 0x13e   : > { %v6522_v16 = vadd.f32 %v6448_v12, %v802_v14  ;;  %v804_v21 = vpop.f32.mrb[13].mxu0  ;;  %v4795_v12 = vpack.c.bf16 %v3603_v10, %v3602_v42 }
 0x140   : > { %4796 = vmatprep.subr.bf16.mxu0 %v4795_v12  ;;  %v3610_v12 = vld [vmem:[%s7938_s4 + $0x240] sm:$0xff] }
 0x141   : > { %v807_v36 = vpop.f32.mrb[14].mxu0 }
 0x142   : > { %v6525_v0 = vadd.f32 %v6446_v34, %v807_v36  ;;  %v809_v45 = vpop.f32.mrb[15].mxu0  ;;  %v3586_v34 = vld [vmem:[%s7938_s4 + $0x180] sm:$0xff]  ;;  %v3592_v36 = vld [vmem:[%s7938_s4 + $0x1b0] sm:$0xff] }
 0x145   : > { %v812_v39 = vpop.f32.mrb[16].mxu0 }
 0x146   : > { %v6528_v7 = vadd.f32 %v6458_v18, %v812_v39  ;;  %v814_v58 = vpop.f32.mrb[17].mxu0  ;;  %v4797_v18 = vpack.c.bf16 %v3587_v56, %v3586_v34  ;;  %v3611_v34 = vld [vmem:[%s7938_s4 + $0x248] sm:$0xff] }
 0x147   : > { %v1102_v33 = vpop.f32.mrb[20].mxu1 }
 0x148   : > { %v6542_v26 = vadd.f32 %v1102_v33, %v938_v24  ;;  %v1104_v17 = vpop.f32.mrb[21].mxu1  ;;  %4798 = vmatpush3.bf16.msra.mxu0 %v4797_v18 }
 0x149   : > { %v817_v25 = vpop.f32.mrb[18].mxu0  ;;  %4800 = vmatprep.subr.bf16.mxu0 %v4799_v54  ;;  %v3594_v17 = vld [vmem:[%s7938_s4 + $0x1c0] sm:$0xff]  ;;  %v3612_v54 = vld [vmem:[%s7938_s4 + $0x250] sm:$0xff] }
 0x14a   : > { %v6545_v59 = vadd.f32 %v6456_v20, %v817_v25  ;;  %v819_v41 = vpop.f32.mrb[19].mxu0  ;;  %v3589_v20 = vld [vmem:[%s7938_s4 + $0x198] sm:$0xff] }
 0x14b   : > { %v1107_v29 = vpop.f32.mrb[22].mxu1  ;;  %v4801_v24 = vpack.c.bf16 %v3589_v20, %v3588_v61  ;;  %v3613_v61 = vld [vmem:[%s7938_s4 + $0x258] sm:$0xff] }
 0x14c   : > { %v6559_v50 = vadd.f32 %v1107_v29, %v943_v1  ;;  %v1109_v23 = vpop.f32.mrb[23].mxu1  ;;  %v4803_v1 = vpack.c.bf16 %v3607_v51, %v3606_v8 }
 0x14d   : > { %v822_v28 = vpop.f32.mrb[20].mxu0  ;;  %4802 = vmatpush3.bf16.msra.mxu0 %v4801_v24  ;;  %v3596_v23 = vld [vmem:[%s7938_s4 + $0x1d0] sm:$0xff] }
 0x14e   : > { %v6562_v52 = vadd.f32 %v6468_v13, %v822_v28  ;;  %v824_v46 = vpop.f32.mrb[21].mxu0  ;;  %v3591_v13 = vld [vmem:[%s7938_s4 + $0x1a8] sm:$0xff]  ;;  %4804 = vmatprep.subr.bf16.mxu0 %v4803_v1  ;;  %v3614_v1 = vld [vmem:[%s7938_s4 + $0x260] sm:$0xff] }
 0x14f   : > { %v1112_v6 = vpop.f32.mrb[24].mxu1  ;;  %v4805_v19 = vpack.c.bf16 %v3591_v13, %v3590_v5  ;;  %v3615_v5 = vld [vmem:[%s7938_s4 + $0x268] sm:$0xff] }
 0x150   : > { %v6579_v44 = vadd.f32 %v1112_v6, %v948_v15  ;;  %v1114_v11 = vpop.f32.mrb[25].mxu1  ;;  %v3609_v15 = vld [vmem:[%s7938_s4 + $0x238] sm:$0xff] }
 0x151   : > { %v827_v43 = vpop.f32.mrb[22].mxu0  ;;  %4806 = vmatpush3.bf16.msra.mxu0 %v4805_v19  ;;  %v4807_v21 = vpack.c.bf16 %v3609_v15, %v3608_v4  ;;  %v3616_v15 = vld [vmem:[%s7938_s4 + $0x270] sm:$0xff] }
 0x152   : > { %v6585_v62 = vadd.f32 %v6466_v37, %v827_v43  ;;  %v829_v35 = vpop.f32.mrb[23].mxu0  ;;  %v3593_v37 = vld [vmem:[%s7938_s4 + $0x1b8] sm:$0xff] }
 0x153   : > { %v1117_v14 = vpop.f32.mrb[26].mxu1  ;;  %v4809_v58 = vpack.c.bf16 %v3593_v37, %v3592_v36  ;;  %4808 = vmatprep.subr.bf16.mxu0 %v4807_v21  ;;  %v3601_v37 = vld [vmem:[%s7938_s4 + $0x1f8] sm:$0xff] }
 0x154   : > { %v6600_v45 = vadd.f32 %v1117_v14, %v6513_v31  ;;  %v1119_v39 = vpop.f32.mrb[27].mxu1  ;;  %v4811_v31 = vpack.c.bf16 %v3611_v34, %v3610_v12  ;;  %v3617_v14 = vld [vmem:[%s7938_s4 + $0x278] sm:$0xff] }
 0x155   : > { %v832_v42 = vpop.f32.mrb[24].mxu0  ;;  %4810 = vmatpush3.bf16.msra.mxu0 %v4809_v58  ;;  %v4823_v36 = vpack.c.bf16 %v3617_v14, %v3616_v15 }
 0x156   : > { %v6603_v10 = vadd.f32 %v6478_v40, %v832_v42  ;;  %v834_v33 = vpop.f32.mrb[25].mxu0  ;;  %v3595_v40 = vld [vmem:[%s7938_s4 + $0x1c8] sm:$0xff]  ;;  %4812 = vmatprep.subr.bf16.mxu0 %v4811_v31 }
 0x157   : > { %v1122_v56 = vpop.f32.mrb[28].mxu1  ;;  %v4813_v41 = vpack.c.bf16 %v3595_v40, %v3594_v17 }
 0x158   : > { %v6618_v18 = vadd.f32 %v1122_v56, %v6516_v30  ;;  %v1124_v25 = vpop.f32.mrb[29].mxu1  ;;  %v4815_v30 = vpack.c.bf16 %v3613_v61, %v3612_v54  ;;  %v3618_v61 = vld [vmem:[%s7938_s4 + $0x280] sm:$0xff] }
 0x159   : > { %v837_v49 = vpop.f32.mrb[26].mxu0  ;;  %4814 = vmatpush3.bf16.msra.mxu0 %v4813_v41 }
 0x15a   : > { %v6621_v53 = vadd.f32 %v6476_v2, %v837_v49  ;;  %v839_v29 = vpop.f32.mrb[27].mxu0  ;;  %v3597_v2 = vld [vmem:[%s7938_s4 + $0x1d8] sm:$0xff]  ;;  %4816 = vmatprep.subr.bf16.mxu0 %v4815_v30 }
 0x15b   : > { %v1127_v20 = vpop.f32.mrb[30].mxu1  ;;  %v4817_v46 = vpack.c.bf16 %v3597_v2, %v3596_v23 }
 0x15c   : > { %v6636_v24 = vadd.f32 %v1127_v20, %v6519_v27  ;;  %v1129_v28 = vpop.f32.mrb[31].mxu1  ;;  %v4819_v27 = vpack.c.bf16 %v3615_v5, %v3614_v1 }
 0x15d   : > { %v842_v8 = vpop.f32.mrb[28].mxu0  ;;  %4818 = vmatpush3.bf16.msra.mxu0 %v4817_v46 }
 0x15e   : > { %v6639_v51 = vadd.f32 %v6488_v57, %v842_v8  ;;  %v844_v6 = vpop.f32.mrb[29].mxu0  ;;  %v3599_v57 = vld [vmem:[%s7938_s4 + $0x1e8] sm:$0xff]  ;;  %4820 = vmatprep.subr.bf16.mxu0 %v4819_v27 }
 0x15f   : > { %v1132_v13 = vpop.f32.mrb[32].mxu1  ;;  %v4821_v38 = vpack.c.bf16 %v3599_v57, %v3598_v32 }
 0x160   : > { %v6654_v11 = vadd.f32 %v1132_v13, %v6522_v16  ;;  %v1134_v19 = vpop.f32.mrb[33].mxu1 }
 0x161   : > { %v847_v43 = vpop.f32.mrb[30].mxu0  ;;  %4822 = vmatpush3.bf16.msra.mxu0 %v4821_v38 }
 0x162   : > { %v6657_v48 = vadd.f32 %v6486_v55, %v847_v43  ;;  %v849_v35 = vpop.f32.mrb[31].mxu0  ;;  %v3600_v55 = vld [vmem:[%s7938_s4 + $0x1f0] sm:$0xff]  ;;  %4824 = vmatprep.subr.bf16.mxu0 %v4823_v36 }
 0x163   : > { %v1137_v4 = vpop.f32.mrb[34].mxu1  ;;  %v4825_v58 = vpack.c.bf16 %v3601_v37, %v3600_v55 }
 0x164   : > { %v1138_v16 = vadd.f32 %v1137_v4, %v6525_v0  ;;  %v1139_v21 = vpop.f32.mrb[35].mxu1 }
 0x165   : > { %v852_v39 = vpop.f32.mrb[32].mxu0  ;;  %4826 = vmatpush3.bf16.msra.mxu0 %v4825_v58 }
 0x166   : > { %v1018_v42 = vadd.f32 %v6498_v47, %v852_v39  ;;  %v854_v33 = vpop.f32.mrb[33].mxu0 }
 0x167   : > { %v1142_v12 = vpop.f32.mrb[36].mxu1 }
 0x168   : > { %v1143_v0 = vadd.f32 %v1142_v12, %v6528_v7  ;;  %v1144_v34 = vpop.f32.mrb[37].mxu1  ;;  %v3619_v7 = vld [vmem:[%s7938_s4 + $0x288] sm:$0xff] }
 0x169   : > { %v857_v56 = vpop.f32.mrb[34].mxu0  ;;  %v6684_v30 = vpack.c.bf16 %v3619_v7, %v3618_v61 }
 0x16a   : > { %v1023_v31 = vadd.f32 %v6496_v63, %v857_v56  ;;  %v859_v17 = vpop.f32.mrb[35].mxu0 }
 0x16b   : > { %v1147_v40 = vpop.f32.mrb[38].mxu1  ;;  %4828 = vmatprep.subr.bf16.mxu0 %v6684_v30 }
 0x16c   : > { %v1148_v25 = vadd.f32 %v1147_v40, %v6545_v59  ;;  %v1149_v41 = vpop.f32.mrb[39].mxu1 }
 0x16d   : > { %v862_v49 = vpop.f32.mrb[36].mxu0 }
 0x16e   : > { %v1028_v29 = vadd.f32 %v6509_v9, %v862_v49  ;;  %v864_v54 = vpop.f32.mrb[37].mxu0 }
 0x16f   : > { %v1152_v47 = vpop.f32.mrb[40].mxu1 }
 0x170   : > { %v1153_v63 = vadd.f32 %v1152_v47, %v6562_v52  ;;  %v1154_v20 = vpop.f32.mrb[41].mxu1 }
 0x171   : > { %v867_v59 = vpop.f32.mrb[38].mxu0 }
 0x172   : > { %v1033_v23 = vadd.f32 %v6507_v3, %v867_v59  ;;  %v869_v2 = vpop.f32.mrb[39].mxu0 }
 0x173   : > { %v1157_v9 = vpop.f32.mrb[42].mxu1 }
 0x174   : > { %v1158_v28 = vadd.f32 %v1157_v9, %v6585_v62  ;;  %v1159_v46 = vpop.f32.mrb[43].mxu1 }
 0x175   : > { %v4297_v8 = vpop.f32.mrb[40].mxu0 }
 0x176   : > { %v6690_v6 = vadd.f32 %v4297_v8, %v6559_v50  ;;  %v1267_v1 = vpop.f32.mrb[41].mxu0 }
 0x177   : > { %v1162_v5 = vpop.f32.mrb[44].mxu1  ;;  %v6693_v52 = vadd.f32 %v1267_v1, %v6542_v26 }
 0x178   : > { %v1163_v13 = vadd.f32 %v1162_v5, %v6603_v10  ;;  %v1164_v27 = vpop.f32.mrb[45].mxu1 }
 0x179   : > { %v4300_v3 = vpop.f32.mrb[42].mxu0 }
 0x17a   : > { %v6697_v32 = vadd.f32 %v4300_v3, %v6600_v45  ;;  %v1277_v57 = vpop.f32.mrb[43].mxu0 }
 0x17b   : > { %v1167_v19 = vpop.f32.mrb[46].mxu1  ;;  %v6700_v62 = vadd.f32 %v1277_v57, %v6579_v44 }
 0x17c   : > { %v1168_v50 = vadd.f32 %v1167_v19, %v6621_v53  ;;  %v1169_v38 = vpop.f32.mrb[47].mxu1 }
 0x17d   : > { %v4303_v43 = vpop.f32.mrb[44].mxu0 }
 0x17e   : > { %v6704_v35 = vadd.f32 %v4303_v43, %v6636_v24  ;;  %v1287_v26 = vpop.f32.mrb[45].mxu0  ;;  %v6744_v43 = vld [vmem:[%s7936_s2] ss:$0 sm:$0xff] }
 0x17f   : > { %v1172_v4 = vpop.f32.mrb[48].mxu1  ;;  %v6707_v10 = vadd.f32 %v1287_v26, %v6618_v18 }
 0x180   : > { %v1173_v45 = vadd.f32 %v1172_v4, %v6639_v51  ;;  %v1174_v15 = vpop.f32.mrb[49].mxu1 }
 0x181   : > { %v4306_v14 = vpop.f32.mrb[46].mxu0 }
 0x182   : > { %v6710_v21 = vadd.f32 %v4306_v14, %v1138_v16  ;;  %v1297_v44 = vpop.f32.mrb[47].mxu0 }
 0x183   : > { %v1177_v36 = vpop.f32.mrb[50].mxu1  ;;  %v6713_v53 = vadd.f32 %v1297_v44, %v6654_v11  ;;  %v6750_v44 = vld [vmem:[%s7937_s3] ss:$0 sm:$0xff] }
 0x184   : > { %v1178_v55 = vadd.f32 %v1177_v36, %v6657_v48  ;;  %v1179_v24 = vpop.f32.mrb[51].mxu1 }
 0x185   : > { %v4309_v37 = vpop.f32.mrb[48].mxu0 }
 0x186   : > { %v6716_v39 = vadd.f32 %v4309_v37, %v1148_v25  ;;  %v1307_v58 = vpop.f32.mrb[49].mxu0 }
 0x187   : > { %v1182_v18 = vpop.f32.mrb[52].mxu1  ;;  %v6718_v33 = vadd.f32 %v1307_v58, %v1143_v0 }
 0x188   : > { %v1183_v51 = vadd.f32 %v1182_v18, %v1018_v42  ;;  %v1184_v12 = vpop.f32.mrb[53].mxu1 }
 0x189   : > { %v4312_v34 = vpop.f32.mrb[50].mxu0 }
 0x18a   : > { %v6720_v16 = vadd.f32 %v4312_v34, %v1158_v28  ;;  %v1317_v56 = vpop.f32.mrb[51].mxu0 }
 0x18b   : > { %v1187_v17 = vpop.f32.mrb[54].mxu1  ;;  %v6722_v40 = vadd.f32 %v1317_v56, %v1153_v63 }
 0x18c   : > { %v1188_v11 = vadd.f32 %v1187_v17, %v1023_v31  ;;  %v1189_v41 = vpop.f32.mrb[55].mxu1 }
 0x18d   : > { %v4315_v48 = vpop.f32.mrb[52].mxu0 }
 0x18e   : > { %v6724_v49 = vadd.f32 %v4315_v48, %v1168_v50  ;;  %v1327_v25 = vpop.f32.mrb[53].mxu0 }
 0x18f   : > { %v1192_v54 = vpop.f32.mrb[56].mxu1  ;;  %v6726_v47 = vadd.f32 %v1327_v25, %v1163_v13 }
 0x190   : > { %v1193_v0 = vadd.f32 %v1192_v54, %v1028_v29  ;;  %v1194_v42 = vpop.f32.mrb[57].mxu1 }
 0x191   : > { %v4318_v61 = vpop.f32.mrb[54].mxu0 }
 0x192   : > { %v6728_v7 = vadd.f32 %v4318_v61, %v1178_v55  ;;  %v1337_v20 = vpop.f32.mrb[55].mxu0 }
 0x193   : > { %v1197_v59 = vpop.f32.mrb[58].mxu1  ;;  %v6730_v2 = vadd.f32 %v1337_v20, %v1173_v45  ;;  %v315_v45 = vstv %s314_s14 }
 0x194   : > { %v1198_v63 = vadd.f32 %v1197_v59, %v1033_v23  ;;  %v1199_v31 = vpop.f32.mrb[59].mxu1  ;;  %vm316_vm4 = vcmp.eq.s32.totalorder %v315_v45, 1 }
 0x195   : > { %v4321_v9 = vpop.f32.mrb[56].mxu0  ;;  %vm6763_vm6 = vmxor %vm316_vm4, %vm5155_vm5 }
 0x196   : > { %v6732_v28 = vadd.f32 %v4321_v9, %v1188_v11  ;;  %v1347_v46 = vpop.f32.mrb[57].mxu0 }
 0x197   : > { %v6734_v8 = vadd.f32 %v1347_v46, %v1183_v51  ;;  %v1624_v1 = vpop.f32.mrb[60].mxu1 }
 0x198   : > { %v1626_v5 = vpop.f32.mrb[61].mxu1 }
 0x199   : > { %v4324_v29 = vpop.f32.mrb[58].mxu0 }
 0x19a   : > { %v6737_v13 = vadd.f32 %v4324_v29, %v1198_v63  ;;  %v1357_v27 = vpop.f32.mrb[59].mxu0 }
 0x19b   : > { %v6739_v3 = vadd.f32 %v1357_v27, %v1193_v0  ;;  %v1629_v57 = vpop.f32.mrb[62].mxu1  ;;  %v3668_v27 = vld [vmem:[%s7938_s4 + $0x300] sm:$0xff] }
 0x19c   : > { %v1631_v19 = vpop.f32.mrb[63].mxu1 }
 0x19d   : > { %v4359_v23 = vpop.f32.mrb[60].mxu0 }
 0x19e   : > { %v1795_v50 = vadd.f32 %v4359_v23, %v1629_v57  ;;  %v1789_v38 = vpop.f32.mrb[61].mxu0  ;;  %v3669_v57 = vld [vmem:[%s7938_s4 + $0x308] sm:$0xff] }
 0x19f   : > { %v1634_v26 = vpop.f32.mrb[64].mxu1  ;;  %v1790_v4 = vadd.f32 %v1789_v38, %v1624_v1  ;;  %v3687_v38 = vld [vmem:[%s7938_s4 + $0x398] sm:$0xff] }
 0x1a0   : > { %v1889_v15 = vadd.f32 %v1795_v50, %v6690_v6  ;;  %v1636_v14 = vpop.f32.mrb[65].mxu1 }
 0x1a1   : > { %v1888_v36 = vadd.f32 %v1790_v4, %v6693_v52  ;;  %v4362_v55 = vpop.f32.mrb[62].mxu0 }
 0x1a2   : > { %v1916_v24 = vmul.f32 %v6744_v43, %v1889_v15  ;;  %v1799_v37 = vpop.f32.mrb[63].mxu0 }
 0x1a3   : > { %v1915_v58 = vmul.f32 %v6744_v43, %v1888_v36  ;;  %v1639_v18 = vpop.f32.mrb[66].mxu1  ;;  %v1800_v51 = vadd.f32 %v1799_v37, %v1634_v26  ;;  %v4925_v37 = vpack.c.bf16 %v3669_v57, %v3668_v27 }
 0x1a4   : > { %v6756_v12 = vadd.f32 %v6750_v44, %v1916_v24  ;;  %v1805_v6 = vadd.f32 %v4362_v55, %v1639_v18  ;;  %v1641_v34 = vpop.f32.mrb[67].mxu1 }
 0x1a5   : > { %v6759_v56 = vadd.f32 %v6750_v44, %v1915_v58  ;;  %v1890_v17 = vadd.f32 %v1800_v51, %v6700_v62  ;;  %v4365_v52 = vpop.f32.mrb[64].mxu0 }
 0x1a6   : > { %v7956_v41 = vmax.f32 %v6756_v12, 0.0  ;;  %v1891_v48 = vadd.f32 %v1805_v6, %v6697_v32  ;;  %v1809_v25 = vpop.f32.mrb[65].mxu0 }
 0x1a7   : > { %v7958_v54 = vmax.f32 %v6759_v56, 0.0  ;;  %v1917_v0 = vmul.f32 %v6744_v43, %v1890_v17  ;;  %v1644_v42 = vpop.f32.mrb[68].mxu1 }
 0x1a8   : > { %v1918_v61 = vmul.f32 %v6744_v43, %v1891_v48  ;;  %v1810_v62 = vadd.f32 %v1809_v25, %v1644_v42  ;;  %v1646_v20 = vpop.f32.mrb[69].mxu1  ;;  %v1983_v59 = vsel %vm6763_vm6, %v7956_v41, 0.0  ;;  %v3670_v25 = vld [vmem:[%s7938_s4 + $0x310] sm:$0xff] }
 0x1a9   : > { %v1944_v63 = vadd.f32 %v6750_v44, %v1917_v0  ;;  %v4368_v31 = vpop.f32.mrb[66].mxu0  ;;  %v6781_v32 = vsel %vm6763_vm6, %v7958_v54, 0.0  ;;  %v2051_v9 = vrot.slane %v1983_v59, 1  ;;  %v2003_v26 = vrot.slane %v1983_v59, 7  ;;  %v3671_v0 = vld [vmem:[%s7938_s4 + $0x318] sm:$0xff] }
 0x1aa   : > { %v1945_v46 = vadd.f32 %v6750_v44, %v1918_v61  ;;  %v1892_v1 = vadd.f32 %v1810_v62, %v6707_v10  ;;  %v7959_v5 = vrot.slane %v6781_v32, 1  ;;  %v1819_v29 = vpop.f32.mrb[67].mxu0  ;;  %v7957_v50 = vrot.slane %v6781_v32, 7  ;;  %v3686_v10 = vld [vmem:[%s7938_s4 + $0x390] sm:$0xff] }
 0x1ab   : > { %v6792_v19 = vmax.f32 %v1944_v63, 0.0  ;;  %v1649_v23 = vpop.f32.mrb[70].mxu1  ;;  %v4927_v17 = vpack.c.bf16 %v3687_v38, %v3686_v10  ;;  %v4929_v10 = vpack.c.bf16 %v3671_v0, %v3670_v25 }
 0x1ac   : > { %v6801_v4 = vmax.f32 %v1945_v46, 0.0  ;;  %v1919_v45 = vmul.f32 %v6744_v43, %v1892_v1  ;;  %v1815_v15 = vadd.f32 %v4365_v52, %v1649_v23  ;;  %v1651_v14 = vpop.f32.mrb[71].mxu1  ;;  %v2080_v36 = vsel %vm425_vm0, %v7959_v5, %v2051_v9  ;;  %v3689_v46 = vld [vmem:[%s7938_s4 + $0x3a8] sm:$0xff] }
 0x1ad   : > { %2275 = vmatprep.mubr.f32.mxu0 %v6792_v19  ;;  %4475 = vmatprep.mubr.f32.mxu1 %v2080_v36  ;;  %v6810_v55 = vrot.slane %v6792_v19, 1  ;;  %v6812_v24 = vpop.f32.mrb[68].mxu0  ;;  %v6815_v58 = vrot.slane %v6792_v19, 7 }
 0x1ae   : > { %7989 = vst [vmem:[#allocation5_spill] sm:$0xff] %v6801_v4  ;;  %v1946_v18 = vadd.f32 %v6750_v44, %v1919_v45  ;;  %v1893_v51 = vadd.f32 %v1815_v15, %v6704_v35  ;;  %v2053_v6 = vrot.slane %v6801_v4, 1  ;;  %v1829_v34 = vpop.f32.mrb[69].mxu0  ;;  %v6833_v35 = vsel %vm364_vm2, %v7957_v50, %v2003_v26  ;;  %v3672_v45 = vld [vmem:[%s7938_s4 + $0x320] sm:$0xff]  ;;  %v3673_v15 = vld [vmem:[%s7938_s4 + $0x328] sm:$0xff] }
 0x1af   : > { %v1654_v52 = vpop.f32.mrb[72].mxu1  ;;  %v2079_v48 = vsel %vm425_vm0, %v2051_v9, %v6810_v55  ;;  %v6838_v42 = vsel %vm364_vm2, %v2003_v26, %v6815_v58  ;;  %v3688_v9 = vld [vmem:[%s7938_s4 + $0x3a0] sm:$0xff]  ;;  %v4933_v0 = vpack.c.bf16 %v3673_v15, %v3672_v45  ;;  %v3681_v50 = vld [vmem:[%s7938_s4 + $0x368] sm:$0xff] }
 0x1b0   : > { %7990 = vst [vmem:[#allocation6_spill] sm:$0xff] %v6838_v42  ;;  %v6840_v61 = vmax.f32 %v1946_v18, 0.0  ;;  %v1920_v62 = vmul.f32 %v6744_v43, %v1893_v51  ;;  %v1820_v20 = vadd.f32 %v1819_v29, %v1654_v52  ;;  %v1656_v59 = vpop.f32.mrb[73].mxu1  ;;  %4476 = vmatmul.mubr.msk.f32.vlgmr.msra.gmra.mrb[100].mxu1 %vm313_vm1, %v2079_v48  ;;  %v6848_v63 = vsel %vm425_vm0, %v6810_v55, %v2053_v6  ;;  %v3690_v51 = vld [vmem:[%s7938_s4 + $0x3b0] sm:$0xff] }
 0x1b1   : > { %4478 = vmatprep.mubr.f32.mxu1 %v6848_v63  ;;  %v6857_v1 = vpop.f32.mrb[70].mxu0  ;;  %4926 = vmatpush3.bf16.msra.mxu1 %v4925_v37  ;;  %v4931_v26 = vpack.c.bf16 %v3689_v46, %v3688_v9  ;;  %v3674_v59 = vld [vmem:[%s7938_s4 + $0x330] sm:$0xff]  ;;  %v3675_v9 = vld [vmem:[%s7938_s4 + $0x338] sm:$0xff] }
 0x1b2   : > { %v1947_v29 = vadd.f32 %v6750_v44, %v1920_v62  ;;  %v1894_v27 = vadd.f32 %v1820_v20, %v6713_v53  ;;  %v6862_v57 = vrot.slane %v6840_v61, 1  ;;  %v6864_v23 = vpop.f32.mrb[71].mxu0  ;;  %4928 = vmatprep.subr.bf16.mxu1 %v4927_v17  ;;  %v3691_v17 = vld [vmem:[%s7938_s4 + $0x3b8] sm:$0xff] }
 0x1b3   : > { %v1659_v38 = vpop.f32.mrb[74].mxu1  ;;  %v4935_v20 = vpack.c.bf16 %v3691_v17, %v3690_v51 }
 0x1b4   : > { %v6872_v14 = vmax.f32 %v1947_v29, 0.0  ;;  %v1921_v53 = vmul.f32 %v6744_v43, %v1894_v27  ;;  %v1825_v36 = vadd.f32 %v4368_v31, %v1659_v38  ;;  %v1661_v37 = vpop.f32.mrb[75].mxu1  ;;  %v6878_v18 = vsel %vm425_vm0, %v2053_v6, %v6862_v57  ;;  %v3692_v38 = vld [vmem:[%s7938_s4 + $0x3c0] sm:$0xff] }
 0x1b5   : > { %4479 = vmatmul.mubr.msk.f32.gmra.mrb[102].mxu1 %vm313_vm1, %v6878_v18  ;;  %v6889_v52 = vpop.f32.mrb[72].mxu0  ;;  %v4937_v37 = vpack.c.bf16 %v3675_v9, %v3674_v59  ;;  %v3695_v59 = vld [vmem:[%s7938_s4 + $0x3d8] sm:$0xff] }
 0x1b6   : > { %v1948_v31 = vadd.f32 %v6750_v44, %v1921_v53  ;;  %v1895_v48 = vadd.f32 %v1825_v36, %v6710_v21  ;;  %v2055_v6 = vrot.slane %v6872_v14, 1  ;;  %v6894_v25 = vpop.f32.mrb[73].mxu0  ;;  %4930 = vmatpush3.bf16.msra.mxu1 %v4929_v10 }
 0x1b7   : > { %v1664_v62 = vpop.f32.mrb[76].mxu1  ;;  %4932 = vmatprep.subr.bf16.mxu1 %v4931_v26  ;;  %v3693_v26 = vld [vmem:[%s7938_s4 + $0x3c8] sm:$0xff] }
 0x1b8   : > { %v6902_v46 = vmax.f32 %v1948_v31, 0.0  ;;  %v1922_v21 = vmul.f32 %v6744_v43, %v1895_v48  ;;  %v1830_v29 = vadd.f32 %v1829_v34, %v1664_v62  ;;  %v1666_v27 = vpop.f32.mrb[77].mxu1  ;;  %v6908_v10 = vsel %vm425_vm0, %v6862_v57, %v2055_v6  ;;  %v3676_v31 = vld [vmem:[%s7938_s4 + $0x340] sm:$0xff]  ;;  %v3677_v48 = vld [vmem:[%s7938_s4 + $0x348] sm:$0xff] }
 0x1b9   : > { %4481 = vmatprep.mubr.f32.mxu1 %v6908_v10  ;;  %v6917_v45 = vpop.f32.mrb[74].mxu0  ;;  %v4939_v17 = vpack.c.bf16 %v3693_v26, %v3692_v38  ;;  %v4941_v26 = vpack.c.bf16 %v3677_v48, %v3676_v31  ;;  %v3697_v31 = vld [vmem:[%s7938_s4 + $0x3e8] sm:$0xff] }
 0x1ba   : > { %v1949_v34 = vadd.f32 %v6750_v44, %v1922_v21  ;;  %v1896_v15 = vadd.f32 %v1830_v29, %v6718_v33  ;;  %v2056_v53 = vrot.slane %v6902_v46, 1  ;;  %v6922_v36 = vpop.f32.mrb[75].mxu0  ;;  %4934 = vmatpush3.bf16.msra.mxu1 %v4933_v0 }
 0x1bb   : > { %v1669_v51 = vpop.f32.mrb[78].mxu1  ;;  %4936 = vmatprep.subr.bf16.mxu1 %v4935_v20  ;;  %v3694_v20 = vld [vmem:[%s7938_s4 + $0x3d0] sm:$0xff] }
 0x1bc   : > { %v6930_v62 = vmax.f32 %v1949_v34, 0.0  ;;  %v1923_v33 = vmul.f32 %v6744_v43, %v1896_v15  ;;  %v1835_v21 = vadd.f32 %v6812_v24, %v1669_v51  ;;  %v1671_v29 = vpop.f32.mrb[79].mxu1  ;;  %v6936_v0 = vsel %vm425_vm0, %v2055_v6, %v2056_v53  ;;  %v3678_v51 = vld [vmem:[%s7938_s4 + $0x350] sm:$0xff] }
 0x1bd   : > { %4482 = vmatmul.mubr.msk.f32.gmra.mrb[104].mxu1 %vm313_vm1, %v6936_v0  ;;  %v6947_v9 = vpop.f32.mrb[76].mxu0  ;;  %v4943_v15 = vpack.c.bf16 %v3695_v59, %v3694_v20  ;;  %v3679_v29 = vld [vmem:[%s7938_s4 + $0x358] sm:$0xff] }
 0x1be   : > { %7991 = vst [vmem:[#allocation8_spill] sm:$0xff] %v6930_v62  ;;  %v1950_v24 = vadd.f32 %v6750_v44, %v1923_v33  ;;  %v1897_v27 = vadd.f32 %v1835_v21, %v6716_v39  ;;  %v2057_v6 = vrot.slane %v6930_v62, 1  ;;  %v6952_v38 = vpop.f32.mrb[77].mxu0  ;;  %4938 = vmatpush3.bf16.msra.mxu1 %v4937_v37  ;;  %v4945_v59 = vpack.c.bf16 %v3679_v29, %v3678_v51  ;;  %v3699_v51 = vld [vmem:[%s7938_s4 + $0x3f8] sm:$0xff] }
 0x1bf   : > { %v1674_v34 = vpop.f32.mrb[80].mxu1  ;;  %4940 = vmatprep.subr.bf16.mxu1 %v4939_v17  ;;  %v3696_v17 = vld [vmem:[%s7938_s4 + $0x3e0] sm:$0xff] }
 0x1c0   : > { %v6960_v33 = vmax.f32 %v1950_v24, 0.0  ;;  %v1924_v39 = vmul.f32 %v6744_v43, %v1897_v27  ;;  %v1840_v21 = vadd.f32 %v6864_v23, %v1674_v34  ;;  %v1676_v41 = vpop.f32.mrb[81].mxu1  ;;  %v6966_v37 = vsel %vm425_vm0, %v2056_v53, %v2057_v6  ;;  %v3680_v34 = vld [vmem:[%s7938_s4 + $0x360] sm:$0xff] }
 0x1c1   : > { %4484 = vmatprep.mubr.f32.mxu1 %v6966_v37  ;;  %v6975_v48 = vpop.f32.mrb[78].mxu0  ;;  %v4947_v27 = vpack.c.bf16 %v3697_v31, %v3696_v17 }
 0x1c2   : > { %7992 = vst [vmem:[#allocation3_spill] sm:$0xff] %v6960_v33  ;;  %v1951_v20 = vadd.f32 %v6750_v44, %v1924_v39  ;;  %v1898_v41 = vadd.f32 %v1840_v21, %v6722_v40  ;;  %v2058_v23 = vrot.slane %v6960_v33, 1  ;;  %v6980_v53 = vpop.f32.mrb[79].mxu0  ;;  %4942 = vmatpush3.bf16.msra.mxu1 %v4941_v26 }
 0x1c3   : > { %v1679_v24 = vpop.f32.mrb[82].mxu1  ;;  %4944 = vmatprep.subr.bf16.mxu1 %v4943_v15  ;;  %v3698_v15 = vld [vmem:[%s7938_s4 + $0x3f0] sm:$0xff] }
 0x1c4   : > { %v6988_v39 = vmax.f32 %v1951_v20, 0.0  ;;  %v1925_v40 = vmul.f32 %v6744_v43, %v1898_v41  ;;  %v1845_v21 = vadd.f32 %v6857_v1, %v1679_v24  ;;  %v1681_v54 = vpop.f32.mrb[83].mxu1  ;;  %v6994_v26 = vsel %vm425_vm0, %v2057_v6, %v2058_v23  ;;  %v3682_v20 = vld [vmem:[%s7938_s4 + $0x370] sm:$0xff]  ;;  %v3683_v41 = vld [vmem:[%s7938_s4 + $0x378] sm:$0xff] }
 0x1c5   : > { %4485 = vmatmul.mubr.msk.f32.gmra.mrb[106].mxu1 %vm313_vm1, %v6994_v26  ;;  %v4949_v6 = vpack.c.bf16 %v3681_v50, %v3680_v34  ;;  %v4951_v31 = vpack.c.bf16 %v3699_v51, %v3698_v15  ;;  %v4953_v51 = vpack.c.bf16 %v3683_v41, %v3682_v20  ;;  %v8007_v60 = vld [vmem:[#allocation8_spill] sm:$0xff] }
 0x1c6   : > { %v1952_v29 = vadd.f32 %v6750_v44, %v1925_v40  ;;  %v1899_v54 = vadd.f32 %v1845_v21, %v6720_v16  ;;  %v2059_v1 = vrot.slane %v6988_v39, 1  ;;  %4946 = vmatpush3.bf16.msra.mxu1 %v4945_v59  ;;  %v3700_v59 = vld [vmem:[%s7938_s4 + $0x400] sm:$0xff] }
 0x1c7   : > { %v1684_v17 = vpop.f32.mrb[84].mxu1  ;;  %4948 = vmatprep.subr.bf16.mxu1 %v4947_v27  ;;  %v3701_v27 = vld [vmem:[%s7938_s4 + $0x408] sm:$0xff] }
 0x1c8   : > { %v7014_v24 = vmax.f32 %v1952_v29, 0.0  ;;  %v1926_v40 = vmul.f32 %v6744_v43, %v1899_v54  ;;  %v1850_v16 = vadd.f32 %v6894_v25, %v1684_v17  ;;  %v1686_v21 = vpop.f32.mrb[85].mxu1  ;;  %v7020_v50 = vsel %vm425_vm0, %v2058_v23, %v2059_v1 }
 0x1c9   : > { %4487 = vmatprep.mubr.f32.mxu1 %v7020_v50  ;;  %v7032_v29 = vpack.c.bf16 %v3701_v27, %v3700_v59 }
 0x1ca   : > { %v1953_v34 = vadd.f32 %v6750_v44, %v1926_v40  ;;  %v1900_v15 = vadd.f32 %v1850_v16, %v6726_v47  ;;  %v2060_v25 = vrot.slane %v7014_v24, 1  ;;  %4950 = vmatpush3.bf16.msra.mxu1 %v4949_v6 }
 0x1cb   : > { %v1689_v23 = vpop.f32.mrb[86].mxu1  ;;  %4952 = vmatprep.subr.bf16.mxu1 %v4951_v31 }
 0x1cc   : > { %v7034_v54 = vmax.f32 %v1953_v34, 0.0  ;;  %v1927_v17 = vmul.f32 %v6744_v43, %v1900_v15  ;;  %v1855_v21 = vadd.f32 %v6889_v52, %v1689_v23  ;;  %v1691_v5 = vpop.f32.mrb[87].mxu1  ;;  %v7040_v40 = vsel %vm425_vm0, %v2059_v1, %v2060_v25 }
 0x1cd   : > { %4488 = vmatmul.mubr.msk.f32.gmra.mrb[108].mxu1 %vm313_vm1, %v7040_v40 }
 0x1ce   : > { %v1954_v47 = vadd.f32 %v6750_v44, %v1927_v17  ;;  %v1901_v6 = vadd.f32 %v1855_v21, %v6724_v49  ;;  %v2061_v31 = vrot.slane %v7034_v54, 1  ;;  %4954 = vmatpush3.bf16.msra.mxu1 %v4953_v51 }
 0x1cf   : > { %v1694_v20 = vpop.f32.mrb[88].mxu1  ;;  %4956 = vmatprep.subr.bf16.mxu1 %v7032_v29 }
 0x1d0   : > { %v7049_v52 = vmax.f32 %v1954_v47, 0.0  ;;  %v1928_v5 = vmul.f32 %v6744_v43, %v1901_v6  ;;  %v1860_v1 = vadd.f32 %v6922_v36, %v1694_v20  ;;  %v1696_v41 = vpop.f32.mrb[89].mxu1  ;;  %v7055_v16 = vsel %vm425_vm0, %v2060_v25, %v2061_v31 }
 0x1d1   : > { %4490 = vmatprep.mubr.f32.mxu1 %v7055_v16 }
 0x1d2   : > { %v1955_v49 = vadd.f32 %v6750_v44, %v1928_v5  ;;  %v1902_v59 = vadd.f32 %v1860_v1, %v6730_v2  ;;  %v2062_v27 = vrot.slane %v7049_v52, 1 }
 0x1d3   : > { %v1699_v34 = vpop.f32.mrb[90].mxu1 }
 0x1d4   : > { %v7061_v15 = vmax.f32 %v1955_v49, 0.0  ;;  %v1929_v51 = vmul.f32 %v6744_v43, %v1902_v59  ;;  %v1865_v36 = vadd.f32 %v6917_v45, %v1699_v34  ;;  %v1701_v23 = vpop.f32.mrb[91].mxu1  ;;  %v7067_v25 = vsel %vm425_vm0, %v2061_v31, %v2062_v27 }
 0x1d5   : > { %4491 = vmatmul.mubr.msk.f32.gmra.mrb[110].mxu1 %vm313_vm1, %v7067_v25 }
 0x1d6   : > { %v1956_v2 = vadd.f32 %v6750_v44, %v1929_v51  ;;  %v1903_v17 = vadd.f32 %v1865_v36, %v6728_v7  ;;  %v2063_v21 = vrot.slane %v7061_v15, 1 }
 0x1d7   : > { %v1704_v47 = vpop.f32.mrb[92].mxu1 }
 0x1d8   : > { %v7075_v6 = vmax.f32 %v1956_v2, 0.0  ;;  %v1930_v45 = vmul.f32 %v6744_v43, %v1903_v17  ;;  %v1870_v20 = vadd.f32 %v6952_v38, %v1704_v47  ;;  %v1706_v5 = vpop.f32.mrb[93].mxu1  ;;  %v7081_v31 = vsel %vm425_vm0, %v2062_v27, %v2063_v21 }
 0x1d9   : > { %4493 = vmatprep.mubr.f32.mxu1 %v7081_v31  ;;  %v318_v5 = vstv %s317_s23 }
 0x1da   : > { %v1957_v1 = vadd.f32 %v6750_v44, %v1930_v45  ;;  %v1904_v7 = vadd.f32 %v1870_v20, %v6734_v8  ;;  %v2064_v41 = vrot.slane %v7075_v6, 1  ;;  %v7993_v20 = vrot.slane %v6781_v32, 1 }
 0x1db   : > { %v1709_v49 = vpop.f32.mrb[94].mxu1  ;;  %vm319_vm7 = vcmp.eq.s32.totalorder %v318_v5, 1 }
 0x1dc   : > { %v7088_v59 = vmax.f32 %v1957_v1, 0.0  ;;  %v1931_v34 = vmul.f32 %v6744_v43, %v1904_v7  ;;  %v1875_v38 = vadd.f32 %v6947_v9, %v1709_v49  ;;  %v1711_v51 = vpop.f32.mrb[95].mxu1  ;;  %v7094_v27 = vsel %vm425_vm0, %v2063_v21, %v2064_v41  ;;  %vm7143_vm8 = vmxor %vm319_vm7, %vm5155_vm5 }
 0x1dd   : > { %4494 = vmatmul.mubr.msk.f32.gmra.mrb[112].mxu1 %vm313_vm1, %v7094_v27  ;;  %v3620_v51 = vld [vmem:[%s7938_s4 + $0x290] sm:$0xff] }
 0x1de   : > { %v1958_v8 = vadd.f32 %v6750_v44, %v1931_v34  ;;  %v1905_v36 = vadd.f32 %v1875_v38, %v6732_v28  ;;  %v2065_v23 = vrot.slane %v7088_v59, 1 }
 0x1df   : > { %v1714_v2 = vpop.f32.mrb[96].mxu1 }
 0x1e0   : > { %v7102_v17 = vmax.f32 %v1958_v8, 0.0  ;;  %v1932_v9 = vmul.f32 %v6744_v43, %v1905_v36  ;;  %v1880_v47 = vadd.f32 %v6980_v53, %v1714_v2  ;;  %v7108_v21 = vsel %vm425_vm0, %v2064_v41, %v2065_v23  ;;  %v1716_v45 = vpop.f32.mrb[97].mxu1 }
 0x1e1   : > { %4496 = vmatprep.mubr.f32.mxu1 %v7108_v21  ;;  %v2081_v28 = vsel %vm425_vm0, %v2065_v23, %v7993_v20 }
 0x1e2   : > { %v1959_v1 = vadd.f32 %v6750_v44, %v1932_v9  ;;  %v1906_v7 = vadd.f32 %v1880_v47, %v6739_v3  ;;  %4497 = vmatmul.mubr.msk.f32.gmra.mrb[114].mxu1 %vm313_vm1, %v2081_v28  ;;  %v2154_v53 = vrot.slane %v7102_v17, 1  ;;  %v3621_v3 = vld [vmem:[%s7938_s4 + $0x298] sm:$0xff]  ;;  %v7961_v36 = vrot.slane %v7102_v17, 7 }
 0x1e3   : > { %v1719_v41 = vpop.f32.mrb[98].mxu1  ;;  %2920 = vmatprep.mubr.f32.mxu1 %v6840_v61  ;;  %v2005_v28 = vrot.slane %v6801_v4, 7  ;;  %v4831_v5 = vpack.c.bf16 %v3621_v3, %v3620_v51 }
 0x1e4   : > { %v7121_v49 = vmax.f32 %v1959_v1, 0.0  ;;  %v1933_v34 = vmul.f32 %v6744_v43, %v1906_v7  ;;  %v1885_v38 = vadd.f32 %v6975_v48, %v1719_v41  ;;  %v1721_v8 = vpop.f32.mrb[99].mxu1  ;;  %v7134_v2 = vsel %vm425_vm0, %v2065_v23, %v2154_v53  ;;  %v3622_v7 = vld [vmem:[%s7938_s4 + $0x2a0] sm:$0xff]  ;;  %v3623_v41 = vld [vmem:[%s7938_s4 + $0x2a8] sm:$0xff] }
 0x1e6   : > { %v7137_v9 = vadd.f32 %v6750_v44, %v1933_v34  ;;  %v1907_v48 = vadd.f32 %v1885_v38, %v6737_v13  ;;  %v2147_v47 = vrot.slane %v7121_v49, 7  ;;  %v2155_v45 = vrot.slane %v7121_v49, 1 }
 0x1e8   : > { %v7960_v23 = vmax.f32 %v7137_v9, 0.0  ;;  %v1934_v1 = vmul.f32 %v6744_v43, %v1907_v48  ;;  %v2150_v13 = vsel %vm364_vm2, %v2147_v47, %v6815_v58  ;;  %v7163_v34 = vsel %vm364_vm2, %v7961_v36, %v2147_v47 }
 0x1e9   : > { %3634 = vmatmul.mubr.msk.f32.vlgmr.msra.gmra.mrb[80].mxu0 %vm310_vm3, %v2150_v13  ;;  %v7169_v43 = vsel %vm425_vm0, %v2154_v53, %v2155_v45  ;;  %v7174_v38 = vsel %vm425_vm0, %v2155_v45, %v6810_v55  ;;  %v4835_v53 = vpack.c.bf16 %v3623_v41, %v3622_v7  ;;  %v2006_v55 = vrot.slane %v6840_v61, 7  ;;  %v3702_v7 = vld [vmem:[%s7938_s4 + $0x410] sm:$0xff] }
 0x1ea   : > { %v7177_v51 = vadd.f32 %v6750_v44, %v1934_v1  ;;  %2280 = vmatprep.mubr.f32.mxu0 %v6801_v4  ;;  %4830 = vmatpush3.bf16.msra.mxu0 %v6684_v30  ;;  %v2000_v3 = vsel %vm7143_vm8, %v7960_v23, 0.0  ;;  %v7189_v44 = vsel %vm364_vm2, %v6815_v58, %v2005_v28  ;;  %v3624_v30 = vld [vmem:[%s7938_s4 + $0x2b0] sm:$0xff]  ;;  %v3625_v1 = vld [vmem:[%s7938_s4 + $0x2b8] sm:$0xff] }
 0x1eb   : > { %4832 = vmatprep.subr.bf16.mxu0 %v4831_v5  ;;  %v2791_v8 = vrot.slane %v2000_v3, 7  ;;  %v2799_v48 = vrot.slane %v2000_v3, 1  ;;  %7996 = vst [vmem:[#allocation2_spill] sm:$0xff] %v7189_v44  ;;  %v3703_v58 = vld [vmem:[%s7938_s4 + $0x418] sm:$0xff]  ;;  %v7220_v4 = vsel %vm364_vm2, %v2005_v28, %v2006_v55  ;;  %v4839_v42 = vpack.c.bf16 %v3625_v1, %v3624_v30  ;;  %v3627_v28 = vld [vmem:[%s7938_s4 + $0x2c8] sm:$0xff] }
 0x1ec   : > { %v7964_v13 = vmax.f32 %v7177_v51, 0.0 }
 0x1ed   : > { %2281 = vmatmul.mubr.f32.gmra.mrb[82].mxu0 %v7189_v44  ;;  %v7207_v41 = vsel %vm364_vm2, %v2147_v47, %v2791_v8  ;;  %v7211_v3 = vsel %vm425_vm0, %v2155_v45, %v2799_v48  ;;  %v2007_v47 = vrot.slane %v6872_v14, 7  ;;  %v4959_v45 = vpack.c.bf16 %v3703_v58, %v3702_v7  ;;  %v3704_v7 = vld [vmem:[%s7938_s4 + $0x420] sm:$0xff] }
 0x1ee   : > { %v2001_v23 = vsel %vm7143_vm8, %v7964_v13, 0.0  ;;  %2285 = vmatprep.mubr.f32.mxu0 %v6840_v61  ;;  %4834 = vmatpush3.bf16.msra.mxu0 %v4831_v5  ;;  %v3626_v5 = vld [vmem:[%s7938_s4 + $0x2c0] sm:$0xff] }
 0x1ef   : > { %v2792_v36 = vrot.slane %v2001_v23, 7  ;;  %4836 = vmatprep.subr.bf16.mxu0 %v4835_v53  ;;  %v2800_v44 = vrot.slane %v2001_v23, 1 }
 0x1f1   : > { %3635 = vmatmul.mubr.msk.f32.gmra.mrb[84].mxu0 %vm310_vm3, %v7220_v4  ;;  %v2795_v13 = vsel %vm364_vm2, %v2792_v36, %v2006_v55  ;;  %v7236_v23 = vsel %vm364_vm2, %v2791_v8, %v2792_v36  ;;  %v7240_v30 = vsel %vm425_vm0, %v2799_v48, %v2800_v44  ;;  %v7245_v1 = vsel %vm425_vm0, %v2800_v44, %v6862_v57  ;;  %v3705_v36 = vld [vmem:[%s7938_s4 + $0x428] sm:$0xff] }
 0x1f2   : > { %2290 = vmatprep.mubr.f32.mxu0 %v6872_v14  ;;  %3716 = vmatmul.mubr.msk.f32.vlgmr.msra.gmra.mrb[116].mxu1 %vm310_vm3, %v2795_v13  ;;  %v7259_v57 = vsel %vm364_vm2, %v2006_v55, %v2007_v47  ;;  %v2008_v8 = vrot.slane %v6902_v46, 7  ;;  %v4843_v48 = vpack.c.bf16 %v3627_v28, %v3626_v5  ;;  %v3628_v13 = vld [vmem:[%s7938_s4 + $0x2d0] sm:$0xff]  ;;  %v4963_v44 = vpack.c.bf16 %v3705_v36, %v3704_v7  ;;  %v3707_v55 = vld [vmem:[%s7938_s4 + $0x438] sm:$0xff]  ;;  %v3630_v7 = vld [vmem:[%s7938_s4 + $0x2e0] sm:$0xff] }
 0x1f3   : > { %2925 = vmatprep.mubr.f32.mxu1 %v6872_v14  ;;  %4838 = vmatpush3.bf16.msra.mxu0 %v4835_v53  ;;  %v3629_v53 = vld [vmem:[%s7938_s4 + $0x2d8] sm:$0xff]  ;;  %v2009_v5 = vrot.slane %v6930_v62, 7  ;;  %v3709_v36 = vld [vmem:[%s7938_s4 + $0x448] sm:$0xff]  ;;  %v8006_v11 = vld [vmem:[#allocation2_spill] sm:$0xff] }
 0x1f4   : > { %4840 = vmatprep.subr.bf16.mxu0 %v4839_v42  ;;  %4958 = vmatpush3.bf16.msra.mxu1 %v7032_v29  ;;  %v3706_v29 = vld [vmem:[%s7938_s4 + $0x430] sm:$0xff]  ;;  %v7281_v58 = vsel %vm364_vm2, %v2007_v47, %v2008_v8  ;;  %v4847_v28 = vpack.c.bf16 %v3629_v53, %v3628_v13  ;;  %v2010_v53 = vrot.slane %v6960_v33, 7 }
 0x1f5   : > { %2291 = vmatmul.mubr.f32.gmra.mrb[86].mxu0 %v7259_v57  ;;  %4960 = vmatprep.subr.bf16.mxu1 %v4959_v45  ;;  %v4967_v47 = vpack.c.bf16 %v3707_v55, %v3706_v29  ;;  %v7306_v13 = vsel %vm364_vm2, %v2008_v8, %v2009_v5  ;;  %v3632_v55 = vld [vmem:[%s7938_s4 + $0x2f0] sm:$0xff] }
 0x1f6   : > { %2295 = vmatprep.mubr.f32.mxu0 %v6902_v46  ;;  %2926 = vmatmul.mubr.f32.gmra.mrb[118].mxu1 %v7259_v57  ;;  %v3710_v8 = vld [vmem:[%s7938_s4 + $0x450] sm:$0xff] }
 0x1f7   : > { %2930 = vmatprep.mubr.f32.mxu1 %v6902_v46  ;;  %4842 = vmatpush3.bf16.msra.mxu0 %v4839_v42  ;;  %v3631_v42 = vld [vmem:[%s7938_s4 + $0x2e8] sm:$0xff] }
 0x1f8   : > { %4844 = vmatprep.subr.bf16.mxu0 %v4843_v48  ;;  %4962 = vmatpush3.bf16.msra.mxu1 %v4959_v45  ;;  %v3708_v45 = vld [vmem:[%s7938_s4 + $0x440] sm:$0xff]  ;;  %v4851_v29 = vpack.c.bf16 %v3631_v42, %v3630_v7  ;;  %v7327_v7 = vsel %vm364_vm2, %v2009_v5, %v2010_v53  ;;  %v2011_v42 = vrot.slane %v6988_v39, 7  ;;  %v2115_v5 = vld [vmem:[%s7938_s4 + $0x88] sm:$0xff] }
 0x1f9   : > { %3636 = vmatmul.mubr.msk.f32.gmra.mrb[88].mxu0 %vm310_vm3, %v7281_v58  ;;  %4964 = vmatprep.subr.bf16.mxu1 %v4963_v44 }
 0x1fa   : > { %2300 = vmatprep.mubr.f32.mxu0 %v6930_v62  ;;  %3717 = vmatmul.mubr.msk.f32.gmra.mrb[120].mxu1 %vm310_vm3, %v7281_v58 }
 0x1fb   : > { %2935 = vmatprep.mubr.f32.mxu1 %v6930_v62  ;;  %4846 = vmatpush3.bf16.msra.mxu0 %v4843_v48  ;;  %v3633_v48 = vld [vmem:[%s7938_s4 + $0x2f8] sm:$0xff]  ;;  %v4971_v62 = vpack.c.bf16 %v3709_v36, %v3708_v45 }
 0x1fc   : > { %4848 = vmatprep.subr.bf16.mxu0 %v4847_v28  ;;  %4966 = vmatpush3.bf16.msra.mxu1 %v4963_v44  ;;  %v3711_v44 = vld [vmem:[%s7938_s4 + $0x458] sm:$0xff]  ;;  %v4855_v45 = vpack.c.bf16 %v3633_v48, %v3632_v55  ;;  %v7352_v55 = vsel %vm364_vm2, %v2010_v53, %v2011_v42  ;;  %v2012_v48 = vrot.slane %v7014_v24, 7 }
 0x1fd   : > { %2301 = vmatmul.mubr.f32.gmra.mrb[90].mxu0 %v7306_v13  ;;  %4968 = vmatprep.subr.bf16.mxu1 %v4967_v47  ;;  %v4975_v36 = vpack.c.bf16 %v3711_v44, %v3710_v8  ;;  %v3715_v53 = vld [vmem:[%s7938_s4 + $0x478] sm:$0xff] }
 0x1fe   : > { %2305 = vmatprep.mubr.f32.mxu0 %v6960_v33  ;;  %2936 = vmatmul.mubr.f32.gmra.mrb[122].mxu1 %v7306_v13 }
 0x1ff   : > { %2940 = vmatprep.mubr.f32.mxu1 %v6960_v33  ;;  %4850 = vmatpush3.bf16.msra.mxu0 %v4847_v28  ;;  %v2114_v33 = vld [vmem:[%s7938_s4 + $0x80] sm:$0xff] }
 0x200   : > { %4852 = vmatprep.subr.bf16.mxu0 %v4851_v29  ;;  %4970 = vmatpush3.bf16.msra.mxu1 %v4967_v47  ;;  %v3712_v28 = vld [vmem:[%s7938_s4 + $0x460] sm:$0xff]  ;;  %v3713_v47 = vld [vmem:[%s7938_s4 + $0x468] sm:$0xff]  ;;  %v4859_v8 = vpack.c.bf16 %v2115_v5, %v2114_v33  ;;  %v2013_v33 = vrot.slane %v7034_v54, 7 }
 0x201   : > { %3637 = vmatmul.mubr.msk.f32.gmra.mrb[92].mxu0 %vm310_vm3, %v7327_v7  ;;  %4972 = vmatprep.subr.bf16.mxu1 %v4971_v62  ;;  %v4979_v44 = vpack.c.bf16 %v3713_v47, %v3712_v28  ;;  %v2015_v28 = vrot.slane %v7061_v15, 7 }
 0x202   : > { %2310 = vmatprep.mubr.f32.mxu0 %v6988_v39  ;;  %3718 = vmatmul.mubr.msk.f32.gmra.mrb[124].mxu1 %vm310_vm3, %v7327_v7 }
 0x203   : > { %2945 = vmatprep.mubr.f32.mxu1 %v6988_v39  ;;  %4854 = vmatpush3.bf16.msra.mxu0 %v4851_v29  ;;  %v3714_v29 = vld [vmem:[%s7938_s4 + $0x470] sm:$0xff] }
 0x204   : > { %4856 = vmatprep.subr.bf16.mxu0 %v4855_v45  ;;  %4974 = vmatpush3.bf16.msra.mxu1 %v4971_v62  ;;  %v7367_v62 = vsel %vm364_vm2, %v2011_v42, %v2012_v48  ;;  %v4983_v5 = vpack.c.bf16 %v3715_v53, %v3714_v29  ;;  %v7380_v42 = vsel %vm364_vm2, %v2012_v48, %v2013_v33  ;;  %v2016_v48 = vrot.slane %v7075_v6, 7 }
 0x205   : > { %2311 = vmatmul.mubr.f32.gmra.mrb[94].mxu0 %v7352_v55  ;;  %4976 = vmatprep.subr.bf16.mxu1 %v4975_v36  ;;  %v7998_v53 = vrot.slane %v7102_v17, 7 }
 0x206   : > { %2315 = vmatprep.mubr.f32.mxu0 %v7014_v24  ;;  %2946 = vmatmul.mubr.f32.gmra.mrb[126].mxu1 %v7352_v55 }
 0x207   : > { %2950 = vmatprep.mubr.f32.mxu1 %v7014_v24  ;;  %4858 = vmatpush3.bf16.msra.mxu0 %v4855_v45  ;;  %v2014_v45 = vrot.slane %v7049_v52, 7 }
 0x208   : > { %4978 = vmatpush3.bf16.msra.mxu1 %v4975_v36  ;;  %4860 = vmatprep.subr.bf16.mxu0 %v4859_v8  ;;  %v7411_v8 = vsel %vm364_vm2, %v2015_v28, %v2016_v48 }
 0x209   : > { %3638 = vmatmul.mubr.msk.f32.gmra.mrb[96].mxu0 %vm310_vm3, %v7367_v62  ;;  %4980 = vmatprep.subr.bf16.mxu1 %v4979_v44  ;;  %v7389_v36 = vsel %vm364_vm2, %v2013_v33, %v2014_v45  ;;  %v7402_v47 = vsel %vm364_vm2, %v2014_v45, %v2015_v28  ;;  %v2116_v45 = vld [vmem:[%s7938_s4 + $0x90] sm:$0xff]  ;;  %v2117_v28 = vld [vmem:[%s7938_s4 + $0x98] sm:$0xff] }
 0x20a   : > { %2320 = vmatprep.mubr.f32.mxu0 %v7034_v54  ;;  %3719 = vmatmul.mubr.msk.f32.gmra.mrb[128].mxu1 %vm310_vm3, %v7367_v62 }
 0x20b   : > { %2955 = vmatprep.mubr.f32.mxu1 %v7034_v54 }
 0x20c   : > { %4982 = vmatpush3.bf16.msra.mxu1 %v4979_v44  ;;  %v7414_v44 = vrot.slane %v7088_v59, 7 }
 0x20d   : > { %2321 = vmatmul.mubr.f32.gmra.mrb[98].mxu0 %v7380_v42  ;;  %4984 = vmatprep.subr.bf16.mxu1 %v4983_v5 }
 0x20e   : > { %2325 = vmatprep.mubr.f32.mxu0 %v7049_v52  ;;  %2956 = vmatmul.mubr.f32.gmra.mrb[130].mxu1 %v7380_v42  ;;  %v7427_v29 = vsel %vm364_vm2, %v2016_v48, %v7414_v44  ;;  %v2149_v33 = vsel %vm364_vm2, %v7414_v44, %v7998_v53  ;;  %v7999_v48 = vmax.f32 %v7137_v9, 0.0  ;;  %v4863_v53 = vpack.c.bf16 %v2117_v28, %v2116_v45  ;;  %v2119_v9 = vld [vmem:[%s7938_s4 + $0xa8] sm:$0xff] }
 0x20f   : > { %2960 = vmatprep.mubr.f32.mxu1 %v7049_v52  ;;  %7997 = vst [vmem:[#allocation4_spill] sm:$0xff] %v7427_v29  ;;  %v2103_v45 = vld [vmem:[%s7938_s4 + $0x28] sm:$0xff] }
 0x210   : > { %4986 = vmatpush3.bf16.msra.mxu1 %v4983_v5  ;;  %v2098_v5 = vld [vmem:[%s7938_s4] sm:$0xff] }
 0x211   : > { %3639 = vmatmul.mubr.msk.f32.gmra.mrb[100].mxu0 %vm310_vm3, %v7389_v36 }
 0x212   : > { %2330 = vmatprep.mubr.f32.mxu0 %v7061_v15  ;;  %3720 = vmatmul.mubr.msk.f32.gmra.mrb[132].mxu1 %vm310_vm3, %v7389_v36 }
 0x213   : > { %2965 = vmatprep.mubr.f32.mxu1 %v7061_v15 }
 0x215   : > { %2331 = vmatmul.mubr.f32.gmra.mrb[102].mxu0 %v7402_v47 }
 0x216   : > { %2335 = vmatprep.mubr.f32.mxu0 %v7075_v6  ;;  %2966 = vmatmul.mubr.f32.gmra.mrb[134].mxu1 %v7402_v47 }
 0x217   : > { %2970 = vmatprep.mubr.f32.mxu1 %v7075_v6 }
 0x219   : > { %3640 = vmatmul.mubr.msk.f32.gmra.mrb[104].mxu0 %vm310_vm3, %v7411_v8 }
 0x21a   : > { %2340 = vmatprep.mubr.f32.mxu0 %v7088_v59  ;;  %3721 = vmatmul.mubr.msk.f32.gmra.mrb[136].mxu1 %vm310_vm3, %v7411_v8 }
 0x21b   : > { %2975 = vmatprep.mubr.f32.mxu1 %v7088_v59 }
 0x21d   : > { %2341 = vmatmul.mubr.f32.gmra.mrb[106].mxu0 %v7427_v29 }
 0x21e   : > { %2345 = vmatprep.mubr.f32.mxu0 %v7102_v17  ;;  %2976 = vmatmul.mubr.f32.gmra.mrb[138].mxu1 %v7427_v29  ;;  %v2101_v29 = vld [vmem:[%s7938_s4 + $0x18] sm:$0xff] }
 0x21f   : > { %2980 = vmatprep.mubr.f32.mxu1 %v7102_v17  ;;  %v2099_v17 = vld [vmem:[%s7938_s4 + $0x8] sm:$0xff] }
 0x221   : > { %3641 = vmatmul.mubr.msk.f32.gmra.mrb[108].mxu0 %vm310_vm3, %v2149_v33 }
 0x222   : > { %2350 = vmatprep.mubr.f32.mxu0 %v7121_v49  ;;  %3722 = vmatmul.mubr.msk.f32.gmra.mrb[140].mxu1 %vm310_vm3, %v2149_v33  ;;  %v2100_v33 = vld [vmem:[%s7938_s4 + $0x10] sm:$0xff] }
 0x223   : > { %2985 = vmatprep.mubr.f32.mxu1 %v7121_v49  ;;  %v4861_v49 = vpack.c.bf16 %v2099_v17, %v2098_v5  ;;  %v2102_v17 = vld [vmem:[%s7938_s4 + $0x20] sm:$0xff] }
 0x224   : > { %v4869_v28 = vpack.c.bf16 %v2103_v45, %v2102_v17  ;;  %v2109_v17 = vld [vmem:[%s7938_s4 + $0x58] sm:$0xff]  ;;  %v2126_v45 = vld [vmem:[%s7938_s4 + $0xe0] sm:$0xff] }
 0x225   : > { %2351 = vmatmul.mubr.f32.gmra.mrb[110].mxu0 %v7163_v34 }
 0x226   : > { %4419 = vmatprep.mubr.f32.mxu0 %v6848_v63  ;;  %2986 = vmatmul.mubr.f32.gmra.mrb[142].mxu1 %v7163_v34  ;;  %v2118_v63 = vld [vmem:[%s7938_s4 + $0xa0] sm:$0xff]  ;;  %v4865_v34 = vpack.c.bf16 %v2101_v29, %v2100_v33  ;;  %v2120_v29 = vld [vmem:[%s7938_s4 + $0xb0] sm:$0xff] }
 0x227   : > { %3723 = vmatprep.mubr.msk.f32.mxu1 %vm7143_vm8, %v7999_v48  ;;  %v4867_v5 = vpack.c.bf16 %v2119_v9, %v2118_v63  ;;  %v2122_v48 = vld [vmem:[%s7938_s4 + $0xc0] sm:$0xff]  ;;  %v2107_v63 = vld [vmem:[%s7938_s4 + $0x48] sm:$0xff]  ;;  %v2124_v9 = vld [vmem:[%s7938_s4 + $0xd0] sm:$0xff] }
 0x228   : > { %v2106_v33 = vld [vmem:[%s7938_s4 + $0x40] sm:$0xff] }
 0x229   : > { %4420 = vmatmul.mubr.msk.f32.vlgmr.msra.gmra.mrb[112].mxu0 %vm313_vm1, %v6878_v18  ;;  %v8000_v18 = vmax.f32 %v7177_v51, 0.0  ;;  %v2104_v51 = vld [vmem:[%s7938_s4 + $0x30] sm:$0xff] }
 0x22a   : > { %4422 = vmatprep.mubr.f32.mxu0 %v6908_v10  ;;  %4862 = vmatpush3.bf16.msra.mxu0 %v4861_v49  ;;  %v2105_v49 = vld [vmem:[%s7938_s4 + $0x38] sm:$0xff] }
 0x22b   : > { %3724 = vmatmul.mubr.msk.f32.gmra.mrb[144].mxu1 %vm310_vm3, %v7207_v41  ;;  %4864 = vmatprep.subr.bf16.mxu0 %v4863_v53  ;;  %v2121_v41 = vld [vmem:[%s7938_s4 + $0xb8] sm:$0xff]  ;;  %v4873_v53 = vpack.c.bf16 %v2105_v49, %v2104_v51  ;;  %v2112_v51 = vld [vmem:[%s7938_s4 + $0x70] sm:$0xff] }
 0x22c   : > { %3725 = vmatprep.mubr.msk.f32.mxu1 %vm7143_vm8, %v8000_v18  ;;  %v4871_v20 = vpack.c.bf16 %v2121_v41, %v2120_v29  ;;  %v2110_v29 = vld [vmem:[%s7938_s4 + $0x60] sm:$0xff]  ;;  %v2111_v41 = vld [vmem:[%s7938_s4 + $0x68] sm:$0xff]  ;;  %v2113_v49 = vld [vmem:[%s7938_s4 + $0x78] sm:$0xff] }
 0x22d   : > { %4423 = vmatmul.mubr.msk.f32.gmra.mrb[114].mxu0 %vm313_vm1, %v6936_v0 }
 0x22e   : > { %4425 = vmatprep.mubr.f32.mxu0 %v6966_v37  ;;  %4866 = vmatpush3.bf16.msra.mxu0 %v4865_v34  ;;  %v4877_v34 = vpack.c.bf16 %v2107_v63, %v2106_v33 }
 0x22f   : > { %2996 = vmatmul.mubr.f32.gmra.mrb[146].mxu1 %v7236_v23  ;;  %4868 = vmatprep.subr.bf16.mxu0 %v4867_v5  ;;  %v2123_v23 = vld [vmem:[%s7938_s4 + $0xc8] sm:$0xff]  ;;  %v2108_v5 = vld [vmem:[%s7938_s4 + $0x50] sm:$0xff] }
 0x230   : > { %4531 = vmatprep.mubr.f32.mxu1 %v6908_v10  ;;  %v4875_v10 = vpack.c.bf16 %v2123_v23, %v2122_v48  ;;  %v4881_v18 = vpack.c.bf16 %v2109_v17, %v2108_v5 }
 0x231   : > { %4426 = vmatmul.mubr.msk.f32.gmra.mrb[116].mxu0 %vm313_vm1, %v6994_v26 }
 0x232   : > { %4428 = vmatprep.mubr.f32.mxu0 %v7020_v50  ;;  %4870 = vmatpush3.bf16.msra.mxu0 %v4869_v28  ;;  %v2128_v28 = vld [vmem:[%s7938_s4 + $0xf0] sm:$0xff] }
 0x233   : > { %4532 = vmatmul.mubr.msk.f32.vlgmr.msra.gmra.mrb[100].mxu1 %vm313_vm1, %v6936_v0  ;;  %4872 = vmatprep.subr.bf16.mxu0 %v4871_v20  ;;  %v2125_v0 = vld [vmem:[%s7938_s4 + $0xd8] sm:$0xff]  ;;  %v4885_v20 = vpack.c.bf16 %v2111_v41, %v2110_v29 }
 0x234   : > { %4534 = vmatprep.mubr.f32.mxu1 %v6966_v37  ;;  %v4879_v37 = vpack.c.bf16 %v2125_v0, %v2124_v9 }
 0x235   : > { %4429 = vmatmul.mubr.msk.f32.gmra.mrb[118].mxu0 %vm313_vm1, %v7040_v40 }
 0x236   : > { %4431 = vmatprep.mubr.f32.mxu0 %v7055_v16  ;;  %4874 = vmatpush3.bf16.msra.mxu0 %v4873_v53 }
 0x237   : > { %4535 = vmatmul.mubr.msk.f32.gmra.mrb[102].mxu1 %vm313_vm1, %v6994_v26  ;;  %4876 = vmatprep.subr.bf16.mxu0 %v4875_v10  ;;  %v2127_v26 = vld [vmem:[%s7938_s4 + $0xe8] sm:$0xff] }
 0x238   : > { %4537 = vmatprep.mubr.f32.mxu1 %v7020_v50  ;;  %v4883_v50 = vpack.c.bf16 %v2127_v26, %v2126_v45 }
 0x239   : > { %4432 = vmatmul.mubr.msk.f32.gmra.mrb[120].mxu0 %vm313_vm1, %v7067_v25 }
 0x23a   : > { %4434 = vmatprep.mubr.f32.mxu0 %v7081_v31  ;;  %4878 = vmatpush3.bf16.msra.mxu0 %v4877_v34 }
 0x23b   : > { %4538 = vmatmul.mubr.msk.f32.gmra.mrb[104].mxu1 %vm313_vm1, %v7040_v40  ;;  %4880 = vmatprep.subr.bf16.mxu0 %v4879_v37  ;;  %v2129_v40 = vld [vmem:[%s7938_s4 + $0xf8] sm:$0xff] }
 0x23c   : > { %4540 = vmatprep.mubr.f32.mxu1 %v7055_v16  ;;  %v4887_v16 = vpack.c.bf16 %v2129_v40, %v2128_v28 }
 0x23d   : > { %4435 = vmatmul.mubr.msk.f32.gmra.mrb[122].mxu0 %vm313_vm1, %v7094_v27 }
 0x23e   : > { %4437 = vmatprep.mubr.f32.mxu0 %v7108_v21  ;;  %4882 = vmatpush3.bf16.msra.mxu0 %v4881_v18 }
 0x23f   : > { %4541 = vmatmul.mubr.msk.f32.gmra.mrb[106].mxu1 %vm313_vm1, %v7067_v25  ;;  %4884 = vmatprep.subr.bf16.mxu0 %v4883_v50  ;;  %v4889_v25 = vpack.c.bf16 %v2113_v49, %v2112_v51 }
 0x240   : > { %4543 = vmatprep.mubr.f32.mxu1 %v7081_v31  ;;  %v8001_v31 = vmax.f32 %v6759_v56, 0.0  ;;  %v8003_v56 = vmax.f32 %v6756_v12, 0.0  ;;  %v8005_v12 = vld [vmem:[#allocation5_spill] sm:$0xff] }
 0x241   : > { %4438 = vmatmul.mubr.msk.f32.gmra.mrb[124].mxu0 %vm313_vm1, %v7134_v2 }
 0x242   : > { %4440 = vmatprep.mubr.f32.mxu0 %v7169_v43  ;;  %4886 = vmatpush3.bf16.msra.mxu0 %v4885_v20 }
 0x243   : > { %4544 = vmatmul.mubr.msk.f32.gmra.mrb[108].mxu1 %vm313_vm1, %v7094_v27  ;;  %4888 = vmatprep.subr.bf16.mxu0 %v4887_v16  ;;  %v8002_v27 = vrot.slane %v6781_v32, 7  ;;  %v8004_v32 = vld [vmem:[#allocation6_spill] sm:$0xff] }
 0x244   : > { %4546 = vmatprep.mubr.f32.mxu1 %v7108_v21 }
 0x245   : > { %4441 = vmatmul.mubr.msk.f32.gmra.mrb[126].mxu0 %vm313_vm1, %v7174_v38  ;;  %v2033_v21 = vsel %vm364_vm2, %v7414_v44, %v8002_v27 }
 0x246   : > { %4890 = vmatpush3.bf16.msra.mxu0 %v4889_v25  ;;  %3650 = vmatprep.mubr.msk.f32.mxu0 %vm6763_vm6, %v8001_v31 }
 0x247   : > { %4547 = vmatmul.mubr.msk.f32.gmra.mrb[110].mxu1 %vm313_vm1, %v7134_v2 }
 0x248   : > { %4549 = vmatprep.mubr.f32.mxu1 %v7169_v43 }
 0x249   : > { %3651 = vmatmul.mubr.msk.f32.vlgmr.msra.gmra.mrb[128].mxu0 %vm310_vm3, %v2033_v21 }
 0x24a   : > { %3652 = vmatprep.mubr.msk.f32.mxu0 %vm6763_vm6, %v8003_v56 }
 0x24b   : > { %4550 = vmatmul.mubr.msk.f32.gmra.mrb[112].mxu1 %vm313_vm1, %v7211_v3 }
 0x24c   : > { %4552 = vmatprep.mubr.f32.mxu1 %v7240_v30 }
 0x24d   : > { %2571 = vmatmul.mubr.f32.gmra.mrb[130].mxu0 %v6833_v35 }
 0x24e   : > { %2575 = vmatprep.mubr.f32.mxu0 %v6792_v19  ;;  %v8008_v19 = vld [vmem:[#allocation3_spill] sm:$0xff] }
 0x24f   : > { %4553 = vmatmul.mubr.msk.f32.gmra.mrb[114].mxu1 %vm313_vm1, %v7245_v1 }
 0x251   : > { %3653 = vmatmul.mubr.msk.f32.gmra.mrb[132].mxu0 %vm310_vm3, %v8004_v32 }
 0x252   : > { %2580 = vmatprep.mubr.f32.mxu0 %v8005_v12 }
 0x255   : > { %2581 = vmatmul.mubr.f32.gmra.mrb[134].mxu0 %v8006_v11 }
 0x256   : > { %2585 = vmatprep.mubr.f32.mxu0 %v6840_v61 }
 0x259   : > { %3654 = vmatmul.mubr.msk.f32.gmra.mrb[136].mxu0 %vm310_vm3, %v7220_v4  ;;  %v8009_v4 = vld [vmem:[#allocation4_spill] sm:$0xff] }
 0x25a   : > { %2590 = vmatprep.mubr.f32.mxu0 %v6872_v14 }
 0x25d   : > { %2591 = vmatmul.mubr.f32.gmra.mrb[138].mxu0 %v7259_v57 }
 0x25e   : > { %2595 = vmatprep.mubr.f32.mxu0 %v6902_v46 }
 0x261   : > { %3655 = vmatmul.mubr.msk.f32.gmra.mrb[140].mxu0 %vm310_vm3, %v7281_v58 }
 0x262   : > { %2600 = vmatprep.mubr.f32.mxu0 %v8007_v60 }
 0x265   : > { %2601 = vmatmul.mubr.f32.gmra.mrb[142].mxu0 %v7306_v13 }
 0x266   : > { %2605 = vmatprep.mubr.f32.mxu0 %v8008_v19 }
 0x269   : > { %3656 = vmatmul.mubr.msk.f32.gmra.mrb[144].mxu0 %vm310_vm3, %v7327_v7 }
 0x26a   : > { %2610 = vmatprep.mubr.f32.mxu0 %v6988_v39 }
 0x26d   : > { %2611 = vmatmul.mubr.f32.gmra.mrb[146].mxu0 %v7352_v55 }
 0x26e   : > { %2615 = vmatprep.mubr.f32.mxu0 %v7014_v24 }
 0x271   : > { %3657 = vmatmul.mubr.msk.f32.gmra.mrb[148].mxu0 %vm310_vm3, %v7367_v62 }
 0x272   : > { %2620 = vmatprep.mubr.f32.mxu0 %v7034_v54 }
 0x275   : > { %2621 = vmatmul.mubr.f32.gmra.mrb[150].mxu0 %v7380_v42 }
 0x276   : > { %2625 = vmatprep.mubr.f32.mxu0 %v7049_v52 }
 0x279   : > { %3658 = vmatmul.mubr.msk.f32.gmra.mrb[152].mxu0 %vm310_vm3, %v7389_v36 }
 0x27a   : > { %2630 = vmatprep.mubr.f32.mxu0 %v7061_v15 }
 0x27d   : > { %2631 = vmatmul.mubr.f32.gmra.mrb[154].mxu0 %v7402_v47 }
 0x27e   : > { %2635 = vmatprep.mubr.f32.mxu0 %v7075_v6 }
 0x281   : > { %3659 = vmatmul.mubr.msk.f32.gmra.mrb[156].mxu0 %vm310_vm3, %v7411_v8 }
 0x282   : > { %2640 = vmatprep.mubr.f32.mxu0 %v7088_v59 }
 0x285   : > { %2641 = vmatmul.mubr.f32.gmra.mrb[158].mxu0 %v8009_v4 }
 0x2bc   : > { %v3897_v35 = vpop.f32.mrb[80].mxu0 }
 0x2bd   : > { %v3898_v61 = vpop.f32.mrb[81].mxu0 }
 0x2be   : > { %v7670_v14 = vadd.f32 %v3898_v61, %v3897_v35 }
 0x2c0   : > { %v3900_v46 = vpop.f32.mrb[82].mxu0 }
 0x2c1   : > { %v3901_v39 = vpop.f32.mrb[83].mxu0 }
 0x2c2   : > { %v7672_v24 = vadd.f32 %v3901_v39, %v3900_v46 }
 0x2c4   : > { %v3903_v54 = vpop.f32.mrb[84].mxu0 }
 0x2c5   : > { %v3904_v52 = vpop.f32.mrb[85].mxu0  ;;  %v4121_v15 = vpop.f32.mrb[116].mxu1 }
 0x2c6   : > { %v7674_v6 = vadd.f32 %v3904_v52, %v3903_v54  ;;  %v4122_v2 = vpop.f32.mrb[117].mxu1 }
 0x2c7   : > { %v7676_v22 = vadd.f32 %v4122_v2, %v4121_v15 }
 0x2c8   : > { %v3906_v43 = vpop.f32.mrb[86].mxu0 }
 0x2c9   : > { %v3907_v59 = vpop.f32.mrb[87].mxu0  ;;  %v4124_v38 = vpop.f32.mrb[118].mxu1 }
 0x2ca   : > { %v7678_v3 = vadd.f32 %v3907_v59, %v3906_v43  ;;  %v4125_v30 = vpop.f32.mrb[119].mxu1 }
 0x2cb   : > { %v7680_v1 = vadd.f32 %v4125_v30, %v4124_v38 }
 0x2cc   : > { %v3909_v57 = vpop.f32.mrb[88].mxu0 }
 0x2cd   : > { %v3910_v58 = vpop.f32.mrb[89].mxu0  ;;  %v4127_v13 = vpop.f32.mrb[120].mxu1 }
 0x2ce   : > { %v7682_v7 = vadd.f32 %v3910_v58, %v3909_v57  ;;  %v4128_v55 = vpop.f32.mrb[121].mxu1 }
 0x2cf   : > { %v7684_v62 = vadd.f32 %v4128_v55, %v4127_v13 }
 0x2d0   : > { %v3912_v42 = vpop.f32.mrb[90].mxu0 }
 0x2d1   : > { %v3913_v36 = vpop.f32.mrb[91].mxu0  ;;  %v4130_v47 = vpop.f32.mrb[122].mxu1 }
 0x2d2   : > { %v7686_v8 = vadd.f32 %v3913_v36, %v3912_v42  ;;  %v4131_v44 = vpop.f32.mrb[123].mxu1 }
 0x2d3   : > { %v7688_v48 = vadd.f32 %v4131_v44, %v4130_v47 }
 0x2d4   : > { %v3915_v23 = vpop.f32.mrb[92].mxu0 }
 0x2d5   : > { %v3916_v53 = vpop.f32.mrb[93].mxu0  ;;  %v4133_v10 = vpop.f32.mrb[124].mxu1 }
 0x2d6   : > { %v7690_v33 = vadd.f32 %v3916_v53, %v3915_v23  ;;  %v4134_v63 = vpop.f32.mrb[125].mxu1 }
 0x2d7   : > { %v7692_v9 = vadd.f32 %v4134_v63, %v4133_v10 }
 0x2d8   : > { %v3918_v0 = vpop.f32.mrb[94].mxu0 }
 0x2d9   : > { %v3919_v34 = vpop.f32.mrb[95].mxu0  ;;  %v4136_v37 = vpop.f32.mrb[126].mxu1 }
 0x2da   : > { %v7694_v5 = vadd.f32 %v3919_v34, %v3918_v0  ;;  %v4137_v17 = vpop.f32.mrb[127].mxu1 }
 0x2db   : > { %v7696_v45 = vadd.f32 %v4137_v17, %v4136_v37 }
 0x2dc   : > { %v3921_v26 = vpop.f32.mrb[96].mxu0 }
 0x2dd   : > { %v3922_v18 = vpop.f32.mrb[97].mxu0  ;;  %v4139_v50 = vpop.f32.mrb[128].mxu1 }
 0x2de   : > { %v7698_v29 = vadd.f32 %v3922_v18, %v3921_v26  ;;  %v4140_v41 = vpop.f32.mrb[129].mxu1 }
 0x2df   : > { %v7700_v28 = vadd.f32 %v4140_v41, %v4139_v50 }
 0x2e0   : > { %v3924_v40 = vpop.f32.mrb[98].mxu0 }
 0x2e1   : > { %v3925_v20 = vpop.f32.mrb[99].mxu0  ;;  %v4142_v16 = vpop.f32.mrb[130].mxu1 }
 0x2e2   : > { %v7702_v51 = vadd.f32 %v3925_v20, %v3924_v40  ;;  %v4143_v49 = vpop.f32.mrb[131].mxu1 }
 0x2e3   : > { %v7704_v25 = vadd.f32 %v4143_v49, %v4142_v16 }
 0x2e4   : > { %v3927_v31 = vpop.f32.mrb[100].mxu0 }
 0x2e5   : > { %v3928_v27 = vpop.f32.mrb[101].mxu0  ;;  %v4145_v21 = vpop.f32.mrb[132].mxu1 }
 0x2e6   : > { %v7706_v56 = vadd.f32 %v3928_v27, %v3927_v31  ;;  %v4146_v32 = vpop.f32.mrb[133].mxu1 }
 0x2e7   : > { %v7708_v12 = vadd.f32 %v4146_v32, %v4145_v21 }
 0x2e8   : > { %v3930_v11 = vpop.f32.mrb[102].mxu0 }
 0x2e9   : > { %v3931_v60 = vpop.f32.mrb[103].mxu0  ;;  %v4148_v19 = vpop.f32.mrb[134].mxu1 }
 0x2ea   : > { %v3932_v4 = vadd.f32 %v3931_v60, %v3930_v11  ;;  %v4149_v35 = vpop.f32.mrb[135].mxu1 }
 0x2eb   : > { %v7710_v61 = vadd.f32 %v4149_v35, %v4148_v19 }
 0x2ec   : > { %v3933_v46 = vpop.f32.mrb[104].mxu0 }
 0x2ed   : > { %v3934_v39 = vpop.f32.mrb[105].mxu0  ;;  %v4151_v54 = vpop.f32.mrb[136].mxu1 }
 0x2ee   : > { %v3935_v52 = vadd.f32 %v3934_v39, %v3933_v46  ;;  %v4152_v15 = vpop.f32.mrb[137].mxu1 }
 0x2ef   : > { %v7712_v2 = vadd.f32 %v4152_v15, %v4151_v54 }
 0x2f0   : > { %v3936_v43 = vpop.f32.mrb[106].mxu0 }
 0x2f1   : > { %v3937_v59 = vpop.f32.mrb[107].mxu0  ;;  %v4154_v38 = vpop.f32.mrb[138].mxu1 }
 0x2f2   : > { %v3938_v30 = vadd.f32 %v3937_v59, %v3936_v43  ;;  %v4155_v57 = vpop.f32.mrb[139].mxu1 }
 0x2f3   : > { %v7714_v58 = vadd.f32 %v4155_v57, %v4154_v38 }
 0x2f4   : > { %v3939_v13 = vpop.f32.mrb[108].mxu0 }
 0x2f5   : > { %v3940_v55 = vpop.f32.mrb[109].mxu0  ;;  %v4157_v42 = vpop.f32.mrb[140].mxu1 }
 0x2f6   : > { %v3941_v36 = vadd.f32 %v3940_v55, %v3939_v13  ;;  %v4158_v47 = vpop.f32.mrb[141].mxu1 }
 0x2f7   : > { %v7716_v44 = vadd.f32 %v4158_v47, %v4157_v42 }
 0x2f8   : > { %v3942_v23 = vpop.f32.mrb[110].mxu0 }
 0x2f9   : > { %v3943_v53 = vpop.f32.mrb[111].mxu0  ;;  %v4160_v10 = vpop.f32.mrb[142].mxu1 }
 0x2fa   : > { %v3944_v63 = vadd.f32 %v3943_v53, %v3942_v23  ;;  %v4161_v0 = vpop.f32.mrb[143].mxu1 }
 0x2fb   : > { %v7718_v34 = vadd.f32 %v4161_v0, %v4160_v10 }
 0x2fc   : > { %v4421_v37 = vpop.f32.mrb[112].mxu0 }
 0x2fd   : > { %v7721_v17 = vadd.f32 %v4421_v37, %v7672_v24  ;;  %v2422_v26 = vpop.f32.mrb[113].mxu0 }
 0x2fe   : > { %v2423_v18 = vadd.f32 %v7670_v14, %v2422_v26  ;;  %v4163_v50 = vpop.f32.mrb[144].mxu1 }
 0x2ff   : > { %v4164_v41 = vpop.f32.mrb[145].mxu1 }
 0x300   : > { %v7724_v40 = vadd.f32 %v4164_v41, %v4163_v50  ;;  %v4424_v20 = vpop.f32.mrb[114].mxu0 }
 0x301   : > { %v7727_v16 = vadd.f32 %v4424_v20, %v7678_v3  ;;  %v2432_v49 = vpop.f32.mrb[115].mxu0 }
 0x302   : > { %v7730_v31 = vadd.f32 %v7674_v6, %v2432_v49  ;;  %v4166_v27 = vpop.f32.mrb[146].mxu1 }
 0x303   : > { %v4167_v21 = vpop.f32.mrb[147].mxu1 }
 0x304   : > { %v7732_v32 = vadd.f32 %v4167_v21, %v4166_v27  ;;  %v4427_v24 = vpop.f32.mrb[116].mxu0 }
 0x305   : > { %v7735_v11 = vadd.f32 %v4427_v24, %v7686_v8  ;;  %v2442_v14 = vpop.f32.mrb[117].mxu0 }
 0x306   : > { %v7738_v60 = vadd.f32 %v7682_v7, %v2442_v14  ;;  %v4533_v19 = vpop.f32.mrb[100].mxu1 }
 0x307   : > { %v3067_v35 = vpop.f32.mrb[101].mxu1 }
 0x308   : > { %v4430_v3 = vpop.f32.mrb[118].mxu0 }
 0x309   : > { %v7741_v46 = vadd.f32 %v4430_v3, %v7694_v5  ;;  %v2452_v6 = vpop.f32.mrb[119].mxu0 }
 0x30a   : > { %v7744_v39 = vadd.f32 %v7690_v33, %v2452_v6  ;;  %v7746_v54 = vpop.f32.mrb[102].mxu1  ;;  %v7797_v6 = vld [vmem:[%s7939_s5] ss:$0 sm:$0xff] }
 0x30b   : > { %v7748_v15 = vpop.f32.mrb[103].mxu1 }
 0x30c   : > { %v4433_v8 = vpop.f32.mrb[120].mxu0 }
 0x30d   : > { %v7751_v43 = vadd.f32 %v4433_v8, %v7702_v51  ;;  %v2462_v7 = vpop.f32.mrb[121].mxu0 }
 0x30e   : > { %v7754_v59 = vadd.f32 %v7698_v29, %v2462_v7  ;;  %v7756_v38 = vpop.f32.mrb[104].mxu1 }
 0x30f   : > { %v7758_v5 = vpop.f32.mrb[105].mxu1 }
 0x310   : > { %v4436_v57 = vpop.f32.mrb[122].mxu0 }
 0x311   : > { %v7760_v33 = vadd.f32 %v4436_v57, %v3932_v4  ;;  %v2472_v13 = vpop.f32.mrb[123].mxu0 }
 0x312   : > { %v7763_v55 = vadd.f32 %v7706_v56, %v2472_v13  ;;  %v7765_v42 = vpop.f32.mrb[106].mxu1  ;;  %v7805_v13 = vld [vmem:[%s7940_s6] ss:$0 sm:$0xff] }
 0x313   : > { %v7767_v51 = vpop.f32.mrb[107].mxu1 }
 0x314   : > { %v4439_v47 = vpop.f32.mrb[124].mxu0 }
 0x315   : > { %v7769_v23 = vadd.f32 %v4439_v47, %v3938_v30  ;;  %v2482_v29 = vpop.f32.mrb[125].mxu0 }
 0x316   : > { %v7771_v53 = vadd.f32 %v3935_v52, %v2482_v29  ;;  %v7773_v10 = vpop.f32.mrb[108].mxu1 }
 0x317   : > { %v7775_v0 = vpop.f32.mrb[109].mxu1 }
 0x318   : > { %v4442_v4 = vpop.f32.mrb[126].mxu0 }
 0x319   : > { %v7778_v37 = vadd.f32 %v4442_v4, %v3944_v63  ;;  %v2492_v56 = vpop.f32.mrb[127].mxu0 }
 0x31a   : > { %v7780_v26 = vadd.f32 %v3941_v36, %v2492_v56  ;;  %v7782_v50 = vpop.f32.mrb[110].mxu1  ;;  %v3734_v56 = vld [vmem:[%s5281_s9 + $0x20] sm:$0xff] }
 0x31b   : > { %v7784_v30 = vpop.f32.mrb[111].mxu1 }
 0x31c   : > { %v4009_v41 = vpop.f32.mrb[128].mxu0 }
 0x31d   : > { %v4010_v52 = vpop.f32.mrb[129].mxu0 }
 0x31e   : > { %v4011_v20 = vadd.f32 %v4010_v52, %v4009_v41  ;;  %v7786_v49 = vpop.f32.mrb[112].mxu1 }
 0x31f   : > { %v7788_v27 = vpop.f32.mrb[113].mxu1 }
 0x320   : > { %v2568_v21 = vadd.f32 %v4011_v20, %v2423_v18  ;;  %v4012_v63 = vpop.f32.mrb[130].mxu0 }
 0x321   : > { %v4013_v24 = vpop.f32.mrb[131].mxu0 }
 0x322   : > { %v4993_v36 = vadd.f32 %v7676_v22, %v2568_v21  ;;  %v4014_v14 = vadd.f32 %v4013_v24, %v4012_v63  ;;  %v7792_v3 = vpop.f32.mrb[114].mxu1 }
 0x323   : > { %v7799_v8 = vpop.f32.mrb[115].mxu1 }
 0x324   : > { %v4994_v7 = vadd.f32 %v4993_v36, %v3067_v35  ;;  %v2573_v18 = vadd.f32 %v4014_v14, %v7721_v17  ;;  %v4015_v57 = vpop.f32.mrb[132].mxu0 }
 0x325   : > { %v4016_v22 = vpop.f32.mrb[133].mxu0 }
 0x326   : > { %v3185_v47 = vmul.f32 %v4994_v7, %v7797_v6  ;;  %v4989_v29 = vadd.f32 %v7680_v1, %v2573_v18  ;;  %v4017_v4 = vadd.f32 %v4016_v22, %v4015_v57  ;;  %v3735_v1 = vld [vmem:[%s5281_s9 + $0x28] sm:$0xff] }
 0x328   : > { %v3208_v35 = vadd.f32 %v7805_v13, %v3185_v47  ;;  %v4990_v41 = vadd.f32 %v4989_v29, %v4533_v19  ;;  %v2578_v17 = vadd.f32 %v4017_v4, %v7730_v31  ;;  %v4018_v52 = vpop.f32.mrb[134].mxu0  ;;  %v3736_v4 = vld [vmem:[%s5281_s9 + $0x30] sm:$0xff] }
 0x329   : > { %v4019_v20 = vpop.f32.mrb[135].mxu0 }
 0x32a   : > { %v3224_v21 = vadd.f32 %v3734_v56, %v3208_v35  ;;  %v3186_v63 = vmul.f32 %v4990_v41, %v7797_v6  ;;  %v5001_v24 = vadd.f32 %v7684_v62, %v2578_v17  ;;  %v4020_v36 = vadd.f32 %v4019_v20, %v4018_v52 }
 0x32c   : > { %v3240_v14 = vmax.f32 %v3224_v21, 0.0  ;;  %v3209_v19 = vadd.f32 %v7805_v13, %v3186_v63  ;;  %v5002_v31 = vadd.f32 %v5001_v24, %v7748_v15  ;;  %v2583_v7 = vadd.f32 %v4020_v36, %v7727_v16  ;;  %v4021_v18 = vpop.f32.mrb[136].mxu0  ;;  %v3737_v63 = vld [vmem:[%s5281_s9 + $0x38] sm:$0xff] }
 0x32d   : > { %v4022_v57 = vpop.f32.mrb[137].mxu0 }
 0x32e   : > { %3256 = vst [vmem:[%s7817_s18] sm:$0xff] %v3240_v14  ;;  %v3225_v62 = vadd.f32 %v3735_v1, %v3209_v19  ;;  %v3187_v22 = vmul.f32 %v5002_v31, %v7797_v6  ;;  %v4997_v47 = vadd.f32 %v7688_v48, %v2583_v7  ;;  %v4023_v29 = vadd.f32 %v4022_v57, %v4021_v18  ;;  %v3738_v18 = vld [vmem:[%s5281_s9 + $0x40] sm:$0xff] }
 0x330   : > { %v3241_v56 = vmax.f32 %v3225_v62, 0.0  ;;  %v3210_v35 = vadd.f32 %v7805_v13, %v3187_v22  ;;  %v4998_v41 = vadd.f32 %v4997_v47, %v7746_v54  ;;  %v2588_v15 = vadd.f32 %v4023_v29, %v7738_v60  ;;  %v4024_v16 = vpop.f32.mrb[138].mxu0 }
 0x331   : > { %v4025_v17 = vpop.f32.mrb[139].mxu0 }
 0x332   : > { %3257 = vst [vmem:[%s7817_s18 + $0x8] sm:$0xff] %v3241_v56  ;;  %v3226_v52 = vadd.f32 %v3736_v4, %v3210_v35  ;;  %v3188_v20 = vmul.f32 %v4998_v41, %v7797_v6  ;;  %v5009_v21 = vadd.f32 %v7692_v9, %v2588_v15  ;;  %v4026_v48 = vadd.f32 %v4025_v17, %v4024_v16  ;;  %v3739_v35 = vld [vmem:[%s5281_s9 + $0x48] sm:$0xff] }
 0x334   : > { %v3242_v24 = vmax.f32 %v3226_v52, 0.0  ;;  %v3211_v36 = vadd.f32 %v7805_v13, %v3188_v20  ;;  %v5010_v1 = vadd.f32 %v5009_v21, %v7758_v5  ;;  %v2593_v54 = vadd.f32 %v4026_v48, %v7735_v11  ;;  %v4027_v60 = vpop.f32.mrb[140].mxu0  ;;  %v3740_v48 = vld [vmem:[%s5281_s9 + $0x50] sm:$0xff] }
 0x335   : > { %v4028_v14 = vpop.f32.mrb[141].mxu0 }
 0x336   : > { %3258 = vst [vmem:[%s7817_s18 + $0x10] sm:$0xff] %v3242_v24  ;;  %v3227_v19 = vadd.f32 %v3737_v63, %v3211_v36  ;;  %v3189_v31 = vmul.f32 %v5010_v1, %v7797_v6  ;;  %v5005_v7 = vadd.f32 %v7696_v45, %v2593_v54  ;;  %v4029_v9 = vadd.f32 %v4028_v14, %v4027_v60 }
 0x338   : > { %v3243_v57 = vmax.f32 %v3227_v19, 0.0  ;;  %v3212_v62 = vadd.f32 %v7805_v13, %v3189_v31  ;;  %v5006_v22 = vadd.f32 %v5005_v7, %v7756_v38  ;;  %v2598_v5 = vadd.f32 %v4029_v9, %v7744_v39  ;;  %v4030_v11 = vpop.f32.mrb[142].mxu0  ;;  %v3741_v19 = vld [vmem:[%s5281_s9 + $0x58] sm:$0xff] }
 0x339   : > { %v4031_v47 = vpop.f32.mrb[143].mxu0 }
 0x33a   : > { %3259 = vst [vmem:[%s7817_s18 + $0x18] sm:$0xff] %v3243_v57  ;;  %v3228_v29 = vadd.f32 %v3738_v18, %v3212_v62  ;;  %v3190_v4 = vmul.f32 %v5006_v22, %v7797_v6  ;;  %v5017_v56 = vadd.f32 %v7700_v28, %v2598_v5  ;;  %v4032_v45 = vadd.f32 %v4031_v47, %v4030_v11  ;;  %v3742_v5 = vld [vmem:[%s5281_s9 + $0x60] sm:$0xff] }
 0x33c   : > { %v3244_v41 = vmax.f32 %v3228_v29, 0.0  ;;  %v3213_v15 = vadd.f32 %v7805_v13, %v3190_v4  ;;  %v5018_v16 = vadd.f32 %v5017_v56, %v7767_v51  ;;  %v2603_v38 = vadd.f32 %v4032_v45, %v7741_v46  ;;  %v4033_v39 = vpop.f32.mrb[144].mxu0 }
 0x33d   : > { %v4034_v17 = vpop.f32.mrb[145].mxu0 }
 0x33e   : > { %3260 = vst [vmem:[%s7817_s18 + $0x20] sm:$0xff] %v3244_v41  ;;  %v3229_v52 = vadd.f32 %v3739_v35, %v3213_v15  ;;  %v3191_v20 = vmul.f32 %v5018_v16, %v7797_v6  ;;  %v5013_v21 = vadd.f32 %v7704_v25, %v2603_v38  ;;  %v4035_v28 = vadd.f32 %v4034_v17, %v4033_v39  ;;  %v3743_v41 = vld [vmem:[%s5281_s9 + $0x68] sm:$0xff] }
 0x340   : > { %v3245_v63 = vmax.f32 %v3229_v52, 0.0  ;;  %v3214_v24 = vadd.f32 %v7805_v13, %v3191_v20  ;;  %v5014_v36 = vadd.f32 %v5013_v21, %v7765_v42  ;;  %v2608_v51 = vadd.f32 %v4035_v28, %v7754_v59  ;;  %v4036_v46 = vpop.f32.mrb[146].mxu0  ;;  %v3744_v21 = vld [vmem:[%s5281_s9 + $0x70] sm:$0xff] }
 0x341   : > { %v4037_v1 = vpop.f32.mrb[147].mxu0 }
 0x342   : > { %3261 = vst [vmem:[%s7817_s18 + $0x28] sm:$0xff] %v3245_v63  ;;  %v3230_v54 = vadd.f32 %v3740_v48, %v3214_v24  ;;  %v3192_v60 = vmul.f32 %v5014_v36, %v7797_v6  ;;  %v5025_v14 = vadd.f32 %v7708_v12, %v2608_v51  ;;  %v4038_v25 = vadd.f32 %v4037_v1, %v4036_v46  ;;  %v3745_v1 = vld [vmem:[%s5281_s9 + $0x78] sm:$0xff] }
 0x344   : > { %v3246_v31 = vmax.f32 %v3230_v54, 0.0  ;;  %v3215_v7 = vadd.f32 %v7805_v13, %v3192_v60  ;;  %v5026_v9 = vadd.f32 %v5025_v14, %v7775_v0  ;;  %v2613_v42 = vadd.f32 %v4038_v25, %v7751_v43  ;;  %v4039_v59 = vpop.f32.mrb[148].mxu0 }
 0x345   : > { %v4040_v18 = vpop.f32.mrb[149].mxu0 }
 0x346   : > { %3262 = vst [vmem:[%s7817_s18 + $0x30] sm:$0xff] %v3246_v31  ;;  %v3231_v57 = vadd.f32 %v3741_v19, %v3215_v7  ;;  %v3193_v62 = vmul.f32 %v5026_v9, %v7797_v6  ;;  %v5021_v22 = vadd.f32 %v7710_v61, %v2613_v42  ;;  %v4041_v12 = vadd.f32 %v4040_v18, %v4039_v59  ;;  %v3746_v9 = vld [vmem:[%s5281_s9 + $0x80] sm:$0xff] }
 0x348   : > { %v3247_v11 = vmax.f32 %v3231_v57, 0.0  ;;  %v3216_v47 = vadd.f32 %v7805_v13, %v3193_v62  ;;  %v5022_v29 = vadd.f32 %v5021_v22, %v7773_v10  ;;  %v2618_v0 = vadd.f32 %v4041_v12, %v7763_v55  ;;  %v4042_v43 = vpop.f32.mrb[150].mxu0 }
 0x349   : > { %v4043_v4 = vpop.f32.mrb[151].mxu0 }
 0x34a   : > { %3263 = vst [vmem:[%s7817_s18 + $0x38] sm:$0xff] %v3247_v11  ;;  %v3232_v56 = vadd.f32 %v3742_v5, %v3216_v47  ;;  %v3194_v45 = vmul.f32 %v5022_v29, %v7797_v6  ;;  %v5033_v35 = vadd.f32 %v7712_v2, %v2618_v0  ;;  %v4044_v61 = vadd.f32 %v4043_v4, %v4042_v43  ;;  %v3747_v5 = vld [vmem:[%s5281_s9 + $0x88] sm:$0xff]  ;;  %v3748_v4 = vld [vmem:[%s5281_s9 + $0x90] sm:$0xff] }
 0x34c   : > { %v3248_v15 = vmax.f32 %v3232_v56, 0.0  ;;  %v3217_v16 = vadd.f32 %v7805_v13, %v3194_v45  ;;  %v5034_v38 = vadd.f32 %v5033_v35, %v7784_v30  ;;  %v2623_v10 = vadd.f32 %v4044_v61, %v7760_v33  ;;  %v4045_v55 = vpop.f32.mrb[152].mxu0  ;;  %v3749_v61 = vld [vmem:[%s5281_s9 + $0x98] sm:$0xff] }
 0x34d   : > { %v4046_v39 = vpop.f32.mrb[153].mxu0 }
 0x34e   : > { %3264 = vst [vmem:[%s7817_s18 + $0x40] sm:$0xff] %v3248_v15  ;;  %v3233_v17 = vadd.f32 %v3743_v41, %v3217_v16  ;;  %v3195_v52 = vmul.f32 %v5034_v38, %v7797_v6  ;;  %v5029_v20 = vadd.f32 %v7714_v58, %v2623_v10  ;;  %v4047_v2 = vadd.f32 %v4046_v39, %v4045_v55 }
 0x350   : > { %v3249_v28 = vmax.f32 %v3233_v17, 0.0  ;;  %v3218_v48 = vadd.f32 %v7805_v13, %v3195_v52  ;;  %v5030_v63 = vadd.f32 %v5029_v20, %v7782_v50  ;;  %v2628_v30 = vadd.f32 %v4047_v2, %v7771_v53  ;;  %v4048_v33 = vpop.f32.mrb[154].mxu0 }
 0x351   : > { %v4049_v24 = vpop.f32.mrb[155].mxu0 }
 0x352   : > { %3265 = vst [vmem:[%s7817_s18 + $0x48] sm:$0xff] %v3249_v28  ;;  %v3234_v36 = vadd.f32 %v3744_v21, %v3218_v48  ;;  %v3196_v51 = vmul.f32 %v5030_v63, %v7797_v6  ;;  %v5041_v46 = vadd.f32 %v7716_v44, %v2628_v30  ;;  %v4050_v58 = vadd.f32 %v4049_v24, %v4048_v33 }
 0x354   : > { %v3250_v54 = vmax.f32 %v3234_v36, 0.0  ;;  %v3219_v60 = vadd.f32 %v7805_v13, %v3196_v51  ;;  %v5042_v14 = vadd.f32 %v5041_v46, %v7788_v27  ;;  %v2633_v50 = vadd.f32 %v4050_v58, %v7769_v23  ;;  %v4051_v53 = vpop.f32.mrb[156].mxu0 }
 0x355   : > { %v4052_v25 = vpop.f32.mrb[157].mxu0 }
 0x356   : > { %3266 = vst [vmem:[%s7817_s18 + $0x50] sm:$0xff] %v3250_v54  ;;  %v3235_v19 = vadd.f32 %v3745_v1, %v3219_v60  ;;  %v3197_v31 = vmul.f32 %v5042_v14, %v7797_v6  ;;  %v5037_v7 = vadd.f32 %v7718_v34, %v2633_v50  ;;  %v4053_v44 = vadd.f32 %v4052_v25, %v4051_v53 }
 0x358   : > { %v3251_v42 = vmax.f32 %v3235_v19, 0.0  ;;  %v3220_v59 = vadd.f32 %v7805_v13, %v3197_v31  ;;  %v5038_v27 = vadd.f32 %v5037_v7, %v7786_v49  ;;  %v2638_v18 = vadd.f32 %v4053_v44, %v7780_v26  ;;  %v4054_v23 = vpop.f32.mrb[158].mxu0 }
 0x359   : > { %v4055_v57 = vpop.f32.mrb[159].mxu0 }
 0x35a   : > { %3267 = vst [vmem:[%s7817_s18 + $0x58] sm:$0xff] %v3251_v42  ;;  %v3236_v62 = vadd.f32 %v3746_v9, %v3220_v59  ;;  %v3198_v22 = vmul.f32 %v5038_v27, %v7797_v6  ;;  %v5049_v34 = vadd.f32 %v7724_v40, %v2638_v18  ;;  %v4056_v12 = vadd.f32 %v4055_v57, %v4054_v23 }
 0x35c   : > { %v3252_v11 = vmax.f32 %v3236_v62, 0.0  ;;  %v3221_v47 = vadd.f32 %v7805_v13, %v3198_v22  ;;  %v5050_v49 = vadd.f32 %v5049_v34, %v7799_v8  ;;  %v2643_v26 = vadd.f32 %v4056_v12, %v7778_v37 }
 0x35e   : > { %3268 = vst [vmem:[%s7817_s18 + $0x60] sm:$0xff] %v3252_v11  ;;  %v3237_v29 = vadd.f32 %v3747_v5, %v3221_v47  ;;  %v3199_v0 = vmul.f32 %v5050_v49, %v7797_v6  ;;  %v5045_v43 = vadd.f32 %v7732_v32, %v2643_v26 }
 0x360   : > { %v3253_v40 = vmax.f32 %v3237_v29, 0.0  ;;  %v3222_v56 = vadd.f32 %v7805_v13, %v3199_v0  ;;  %v5046_v45 = vadd.f32 %v5045_v43, %v7792_v3 }
 0x362   : > { %3269 = vst [vmem:[%s7817_s18 + $0x68] sm:$0xff] %v3253_v40  ;;  %v3238_v35 = vadd.f32 %v3748_v4, %v3222_v56  ;;  %v3200_v8 = vmul.f32 %v5046_v45, %v7797_v6 }
 0x364   : > { %v3254_v41 = vmax.f32 %v3238_v35, 0.0  ;;  %v3223_v37 = vadd.f32 %v7805_v13, %v3200_v8 }
 0x366   : > { %3270 = vst [vmem:[%s7817_s18 + $0x70] sm:$0xff] %v3254_v41  ;;  %v3239_v15 = vadd.f32 %v3749_v61, %v3223_v37 }
 0x368   : > { %v3255_v16 = vmax.f32 %v3239_v15, 0.0 }
 0x36a   : > { %3271 = vst [vmem:[%s7817_s18 + $0x78] sm:$0xff] %v3255_v16 }
 0x36b PF: > { %s17_s28 = sadd.s32 1, %s5152_s28   ;;  %s8010_s24 = smov %s5144_s26 }
 0x36c   : > { %p14_p9 = scmp.ge.s32.totalorder %s17_s28, 6   ;;  %s8011_s25 = smov %s5148_s27 }
 0x36d   : > { %s8012_s26 = smov %s8015_s29  ;;  %s8013_s27 = smov %s8019_s30 }
 0x36e   :  { %16 = sbr.rel (!%p14_p9) target bundleno = 3 (0x3), region = 85 }

</bundles_post_ra>
